<compile_context>
chip_gen: v7x
topology: tpu7x:2x2x1
jax: 0.10.0
libtpu: 0.0.40
codegen_flags: <defaults>
</compile_context>

<pallas_src>
import functools

import jax
import jax.numpy as jnp
from jax import lax
from jax.experimental import pallas as pl
from jax.experimental.pallas import tpu as pltpu


# ------------------------------ Pallas kernel ------------------------------- #

def _down3d_kernel(x_ref, w1_ref, b1_ref, w2_ref, b2_ref, mask_ref,
                   o_ref, h1_ref, *, offsets, s_out, off_int):
    """Fused [Conv3d(3, pad=1, no bias) * BNscale + BNbias, ReLU] x 2 for one batch elem.

    x_ref:    (Cin_p, Sp_pad)      zero-padded pooled input, flat spatial on lanes.
    w1_ref:   (27, Cmid, Cin_p)    per-tap conv1 weights (BN scale folded in).
    w2_ref:   (27, Cout, Cmid)     per-tap conv2 weights (BN scale folded in).
    b*_ref:   (C, 1)               folded BatchNorm bias.
    mask_ref: (1, s_out)           1.0 at valid (non wrap-around) flat output positions.
    o_ref:    (Cout, Sp_pad)       zero-padded output volume (only interior written).
    h1_ref:   (Cmid, Sp_pad)       zero-padded intermediate activation (VMEM only).
    """
    f32 = jnp.float32
    cmid = h1_ref.shape[0]
    sp_pad = h1_ref.shape[1]
    mask = mask_ref[...]                                    # (1, s_out)

    # ---- conv1: direct per-tap MXU accumulation (no im2col scratch / stores) ----
    acc1 = None
    for k, base in enumerate(offsets):                      # 27 static taps
        t = jnp.dot(w1_ref[k], x_ref[:, pl.ds(base, s_out)],
                    preferred_element_type=f32)             # (Cmid, s_out)
        acc1 = t if acc1 is None else acc1 + t
    # BN bias + ReLU; the mask zeroes wrap-around lanes so conv2's halo taps read 0.
    y1 = jnp.maximum(acc1 + b1_ref[...], 0.0) * mask

    # Intermediate stays zero-padded in VMEM: zero only the two halo strips
    # (re-done every grid step — scratch is core-private under "parallel" semantics).
    h1_ref[:, pl.ds(0, off_int)] = jnp.zeros((cmid, off_int), f32)
    tail = sp_pad - (off_int + s_out)
    if tail > 0:
        h1_ref[:, pl.ds(off_int + s_out, tail)] = jnp.zeros((cmid, tail), f32)
    h1_ref[:, pl.ds(off_int, s_out)] = y1

    # ---- conv2: direct per-tap MXU accumulation -----------------------------------
    acc2 = None
    for k, base in enumerate(offsets):
        t = jnp.dot(w2_ref[k], h1_ref[:, pl.ds(base, s_out)],
                    preferred_element_type=f32)             # (Cout, s_out)
        acc2 = t if acc2 is None else acc2 + t
    y2 = jnp.maximum(acc2 + b2_ref[...], 0.0)

    # No o_ref zero-fill / y2 mask: the wrapper's interior crop discards every halo /
    # wrap-around lane, so their (unwritten) contents are never consumed.
    o_ref[:, pl.ds(off_int, s_out)] = y2.astype(o_ref.dtype)


# ------------------------------ JAX wrapper --------------------------------- #

def fold_conv_weight(w_oidhw, cin_p, scale):
    """PyTorch (O, I, 3, 3, 3) weight * per-out-channel BN scale -> (27, O, cin_p).

    Tap order (axis 0) is kd-major, then kh, then kw — matching the kernel's offsets.
    """
    O, I = w_oidhw.shape[:2]
    w = jnp.transpose(w_oidhw, (2, 3, 4, 0, 1)).reshape(27, O, I)
    w = w * scale[None, :, None]                       # fold BN scale into the weights
    return jnp.pad(w, ((0, 0), (0, 0), (0, cin_p - I)))


def down3d_forward(x, params):
    """Down3d forward. x: (N, Cin, D0, H0, W0) -> (N, Cout, D0//2, H0//2, W0//2)."""
    w1f, b1, w2f, b2 = params
    N, Cin, D0, H0, W0 = x.shape
    D, H, W = D0 // 2, H0 // 2, W0 // 2
    _, Cmid, Cin_p = w1f.shape
    _, Cout, _ = w2f.shape

    Dp, Hp, Wp = D + 2, H + 2, W + 2
    Sp = Dp * Hp * Wp
    Sp_pad = pl.cdiv(Sp, 128) * 128                          # lane-align the flat volume
    s_out = (D - 1) * Hp * Wp + (H - 1) * Wp + W             # flat span over outputs
    off_int = Hp * Wp + Wp + 1                               # flat offset of voxel (0,0,0)
    offsets = tuple(kd * Hp * Wp + kh * Wp + kw
                    for kd in range(3) for kh in range(3) for kw in range(3))

    # --- XLA glue: 2x2x2 max-pool, halo pad, channel pad, lane pad ---
    # TODO(synk): fold pool + pads into the kernel (stride-2 lane gather) to remove this
    # pooled-activation HBM round trip.
    xp = x.reshape(N, Cin, D, 2, H, 2, W, 2).max(axis=(3, 5, 7))
    xpad = jnp.pad(xp, ((0, 0), (0, Cin_p - Cin), (1, 1), (1, 1), (1, 1)))
    xpad = xpad.reshape(N, Cin_p, Sp)
    xpad = jnp.pad(xpad, ((0, 0), (0, 0), (0, Sp_pad - Sp)))

    # Valid-output mask in padded-flat coords (kills wrap-around rows of conv1's output
    # so conv2's halo taps read zeros).  Tiny (1, s_out) constant.
    p = jnp.arange(s_out)
    valid = ((p % Wp) < W) & (((p // Wp) % Hp) < H)
    mask = valid.astype(jnp.float32).reshape(1, s_out)

    kernel = functools.partial(_down3d_kernel, offsets=offsets,
                               s_out=s_out, off_int=off_int)

    out_pad = pl.pallas_call(
        kernel,
        out_shape=jax.ShapeDtypeStruct((N, Cout, Sp_pad), x.dtype),
        grid=(N,),
        in_specs=[
            pl.BlockSpec((None, Cin_p, Sp_pad), lambda n: (n, 0, 0)),
            pl.BlockSpec((27, Cmid, Cin_p), lambda n: (0, 0, 0)),
            pl.BlockSpec((Cmid, 1), lambda n: (0, 0)),
            pl.BlockSpec((27, Cout, Cmid), lambda n: (0, 0, 0)),
            pl.BlockSpec((Cout, 1), lambda n: (0, 0)),
            pl.BlockSpec((1, s_out), lambda n: (0, 0)),
        ],
        out_specs=pl.BlockSpec((None, Cout, Sp_pad), lambda n: (n, 0, 0)),
        scratch_shapes=[pltpu.VMEM((Cmid, Sp_pad), jnp.float32)],   # padded intermediate
        compiler_params=pltpu.CompilerParams(
            dimension_semantics=("parallel",),
            # Per-step VMEM here is well under 1 MiB; 32 MiB keeps headroom while staying
            # safe on v7x (64 MiB/TC).  On v5e/v6e this can be raised toward ~100 MiB for
            # larger resident slabs; add a D-slab grid axis before scaling volume on v7x.
            vmem_limit_bytes=32 * 1024 * 1024),
    )(xpad, w1f, b1.reshape(Cmid, 1), w2f, b2.reshape(Cout, 1), mask)

    # Extract the interior of the padded output volume (single XLA slice).
    out = out_pad[:, :, :Sp].reshape(N, Cout, Dp, Hp, Wp)[:, :, 1:D + 1, 1:H + 1, 1:W + 1]
    return out


# -------------------------------- Reference --------------------------------- #

def _ref_forward(x, w1_oi, s1, b1, w2_oi, s2, b2):
    """Pure-JAX/XLA reference (NCDHW, PyTorch OIDHW weights)."""
    xp = lax.reduce_window(x, -jnp.inf, lax.max,
                           window_dimensions=(1, 1, 2, 2, 2),
                           window_strides=(1, 1, 2, 2, 2), padding="VALID")

    def conv(v, w):
        return lax.conv_general_dilated(
            v, w, window_strides=(1, 1, 1),
            padding=((1, 1), (1, 1), (1, 1)),
            dimension_numbers=("NCDHW", "OIDHW", "NCDHW"))

    def bn_relu(v, s, b):
        return jnp.maximum(v * s[None, :, None, None, None]
                           + b[None, :, None, None, None], 0.0)

    y = bn_relu(conv(xp, w1_oi), s1, b1)
    y = bn_relu(conv(y, w2_oi), s2, b2)
    return y


# ----------------------------------- Main ------------------------------------ #

if __name__ == "__main__":
    N, Cin, Cout = 2, 4, 8
    D0 = H0 = W0 = 16
    Cmid = Cout
    eps = 1e-5
    Cin_p = ((Cin + 7) // 8) * 8          # pad input channels to a sublane multiple

    key = jax.random.PRNGKey(0)
    ks = jax.random.split(key, 12)

    x = jax.random.normal(ks[0], (N, Cin, D0, H0, W0), jnp.float32)

    # Conv weights in PyTorch layout (O, I, 3, 3, 3), deterministic init.
    w1_oi = jax.random.normal(ks[1], (Cmid, Cin, 3, 3, 3), jnp.float32) * 0.1
    w2_oi = jax.random.normal(ks[2], (Cout, Cmid, 3, 3, 3), jnp.float32) * 0.1

    def make_bn(kg, kb, km, kv, c):
        gamma = 1.0 + 0.1 * jax.random.normal(kg, (c,), jnp.float32)
        beta = 0.1 * jax.random.normal(kb, (c,), jnp.float32)
        mean = 0.1 * jax.random.normal(km, (c,), jnp.float32)
        var = jax.random.uniform(kv, (c,), jnp.float32, minval=0.5, maxval=1.5)
        scale = gamma / jnp.sqrt(var + eps)
        bias = beta - mean * scale
        return scale, bias

    s1, b1 = make_bn(ks[3], ks[4], ks[5], ks[6], Cmid)
    s2, b2 = make_bn(ks[7], ks[8], ks[9], ks[10], Cout)

    # Folded, channel-padded weights for the Pallas kernel (BN scale folded in).
    w1f = fold_conv_weight(w1_oi, Cin_p, s1)        # (27, Cmid, Cin_p)
    w2f = fold_conv_weight(w2_oi, Cmid, s2)         # (27, Cout, Cmid)
    params = (w1f, b1, w2f, b2)

    out = jax.jit(down3d_forward)(x, params)
    out = jax.block_until_ready(out)

    ref = _ref_forward(x, w1_oi, s1, b1, w2_oi, s2, b2)

    assert out.shape == (N, Cout, D0 // 2, H0 // 2, W0 // 2), out.shape
    # Tolerance kept at 2e-2 because XLA's reference conv and the Mosaic MXU may use
    # different f32 matmul pass precision; the fused math is otherwise identical to the
    # previously validated revision modulo BN-scale folding (an exact per-channel rescale
    # of the weights).  Pin precision=HIGHEST on both sides before tightening further.
    assert jnp.allclose(out, ref, atol=2e-2, rtol=2e-2), float(
        jnp.max(jnp.abs(out - ref)))

    print("KERNEL_OK")
</pallas_src>

<mosaic_0001>
module attributes {stable_mosaic.version = 11 : i64} {
  func.func @_down3d_kernel(%arg0: i32, %arg1: memref<1x8x1024xf32, #tpu.memory_space<vmem>>, %arg2: memref<27x8x8xf32, #tpu.memory_space<vmem>>, %arg3: memref<8x1xf32, #tpu.memory_space<vmem>>, %arg4: memref<27x8x8xf32, #tpu.memory_space<vmem>>, %arg5: memref<8x1xf32, #tpu.memory_space<vmem>>, %arg6: memref<1x778xf32, #tpu.memory_space<vmem>>, %arg7: memref<1x8x1024xf32, #tpu.memory_space<vmem>>, %arg8: memref<8x1024xf32, #tpu.memory_space<vmem>>) attributes {dimension_semantics = [#tpu.dimension_semantics<parallel>], iteration_bounds = array<i64: 2>, scalar_prefetch = 0 : i64, scratch_operands = 1 : i64, tpu.core_type = #tpu.core_type<tc>, window_params = [{transform_indices = @transform_0, window_bounds = array<i64: 1, 8, 1024>}, {pipeline_mode = #tpu.pipeline_mode<synchronous>, transform_indices = @transform_1, window_bounds = array<i64: 27, 8, 8>}, {pipeline_mode = #tpu.pipeline_mode<synchronous>, transform_indices = @transform_2, window_bounds = array<i64: 8, 1>}, {pipeline_mode = #tpu.pipeline_mode<synchronous>, transform_indices = @transform_3, window_bounds = array<i64: 27, 8, 8>}, {pipeline_mode = #tpu.pipeline_mode<synchronous>, transform_indices = @transform_4, window_bounds = array<i64: 8, 1>}, {pipeline_mode = #tpu.pipeline_mode<synchronous>, transform_indices = @transform_5, window_bounds = array<i64: 1, 778>}, {transform_indices = @transform_6, window_bounds = array<i64: 1, 8, 1024>}]} {
    %c0 = arith.constant 0 : index
    %c0_0 = arith.constant 0 : index
    %0 = vector.load %arg6[%c0, %c0_0] : memref<1x778xf32, #tpu.memory_space<vmem>>, vector<1x778xf32>
    %c0_1 = arith.constant 0 : index
    %c0_2 = arith.constant 0 : index
    %c0_3 = arith.constant 0 : index
    %1 = vector.load %arg2[%c0_1, %c0_2, %c0_3] : memref<27x8x8xf32, #tpu.memory_space<vmem>>, vector<1x8x8xf32>
    %2 = vector.shape_cast %1 : vector<1x8x8xf32> to vector<8x8xf32>
    %c0_4 = arith.constant 0 : index
    %c0_5 = arith.constant 0 : index
    %c0_6 = arith.constant 0 : index
    %3 = vector.load %arg1[%c0_4, %c0_5, %c0_6] : memref<1x8x1024xf32, #tpu.memory_space<vmem>>, vector<1x8x778xf32>
    %4 = vector.shape_cast %3 : vector<1x8x778xf32> to vector<8x778xf32>
    %cst = arith.constant dense<0.000000e+00> : vector<8x778xf32>
    %5 = tpu.matmul %2, %4, %cst {dimension_numbers = #tpu.dot_dimension_numbers<[1], [0], [0], [1], [0, 0, 1, 1], [], []>} : vector<8x8xf32>, vector<8x778xf32>, vector<8x778xf32> -> vector<8x778xf32>
    %c1 = arith.constant 1 : index
    %c0_7 = arith.constant 0 : index
    %c0_8 = arith.constant 0 : index
    %6 = vector.load %arg2[%c1, %c0_7, %c0_8] : memref<27x8x8xf32, #tpu.memory_space<vmem>>, vector<1x8x8xf32>
    %7 = vector.shape_cast %6 : vector<1x8x8xf32> to vector<8x8xf32>
    %c0_9 = arith.constant 0 : index
    %c0_10 = arith.constant 0 : index
    %c1_11 = arith.constant 1 : index
    %8 = vector.load %arg1[%c0_9, %c0_10, %c1_11] : memref<1x8x1024xf32, #tpu.memory_space<vmem>>, vector<1x8x778xf32>
    %9 = vector.shape_cast %8 : vector<1x8x778xf32> to vector<8x778xf32>
    %cst_12 = arith.constant dense<0.000000e+00> : vector<8x778xf32>
    %10 = tpu.matmul %7, %9, %cst_12 {dimension_numbers = #tpu.dot_dimension_numbers<[1], [0], [0], [1], [0, 0, 1, 1], [], []>} : vector<8x8xf32>, vector<8x778xf32>, vector<8x778xf32> -> vector<8x778xf32>
    %11 = arith.addf %5, %10 : vector<8x778xf32>
    %c2 = arith.constant 2 : index
    %c0_13 = arith.constant 0 : index
    %c0_14 = arith.constant 0 : index
    %12 = vector.load %arg2[%c2, %c0_13, %c0_14] : memref<27x8x8xf32, #tpu.memory_space<vmem>>, vector<1x8x8xf32>
    %13 = vector.shape_cast %12 : vector<1x8x8xf32> to vector<8x8xf32>
    %c0_15 = arith.constant 0 : index
    %c0_16 = arith.constant 0 : index
    %c2_17 = arith.constant 2 : index
    %14 = vector.load %arg1[%c0_15, %c0_16, %c2_17] : memref<1x8x1024xf32, #tpu.memory_space<vmem>>, vector<1x8x778xf32>
    %15 = vector.shape_cast %14 : vector<1x8x778xf32> to vector<8x778xf32>
    %cst_18 = arith.constant dense<0.000000e+00> : vector<8x778xf32>
    %16 = tpu.matmul %13, %15, %cst_18 {dimension_numbers = #tpu.dot_dimension_numbers<[1], [0], [0], [1], [0, 0, 1, 1], [], []>} : vector<8x8xf32>, vector<8x778xf32>, vector<8x778xf32> -> vector<8x778xf32>
    %17 = arith.addf %11, %16 : vector<8x778xf32>
    %c3 = arith.constant 3 : index
    %c0_19 = arith.constant 0 : index
    %c0_20 = arith.constant 0 : index
    %18 = vector.load %arg2[%c3, %c0_19, %c0_20] : memref<27x8x8xf32, #tpu.memory_space<vmem>>, vector<1x8x8xf32>
    %19 = vector.shape_cast %18 : vector<1x8x8xf32> to vector<8x8xf32>
    %c0_21 = arith.constant 0 : index
    %c0_22 = arith.constant 0 : index
    %c10 = arith.constant 10 : index
    %20 = vector.load %arg1[%c0_21, %c0_22, %c10] : memref<1x8x1024xf32, #tpu.memory_space<vmem>>, vector<1x8x778xf32>
    %21 = vector.shape_cast %20 : vector<1x8x778xf32> to vector<8x778xf32>
    %cst_23 = arith.constant dense<0.000000e+00> : vector<8x778xf32>
    %22 = tpu.matmul %19, %21, %cst_23 {dimension_numbers = #tpu.dot_dimension_numbers<[1], [0], [0], [1], [0, 0, 1, 1], [], []>} : vector<8x8xf32>, vector<8x778xf32>, vector<8x778xf32> -> vector<8x778xf32>
    %23 = arith.addf %17, %22 : vector<8x778xf32>
    %c4 = arith.constant 4 : index
    %c0_24 = arith.constant 0 : index
    %c0_25 = arith.constant 0 : index
    %24 = vector.load %arg2[%c4, %c0_24, %c0_25] : memref<27x8x8xf32, #tpu.memory_space<vmem>>, vector<1x8x8xf32>
    %25 = vector.shape_cast %24 : vector<1x8x8xf32> to vector<8x8xf32>
    %c0_26 = arith.constant 0 : index
    %c0_27 = arith.constant 0 : index
    %c11 = arith.constant 11 : index
    %26 = vector.load %arg1[%c0_26, %c0_27, %c11] : memref<1x8x1024xf32, #tpu.memory_space<vmem>>, vector<1x8x778xf32>
    %27 = vector.shape_cast %26 : vector<1x8x778xf32> to vector<8x778xf32>
    %cst_28 = arith.constant dense<0.000000e+00> : vector<8x778xf32>
    %28 = tpu.matmul %25, %27, %cst_28 {dimension_numbers = #tpu.dot_dimension_numbers<[1], [0], [0], [1], [0, 0, 1, 1], [], []>} : vector<8x8xf32>, vector<8x778xf32>, vector<8x778xf32> -> vector<8x778xf32>
    %29 = arith.addf %23, %28 : vector<8x778xf32>
    %c5 = arith.constant 5 : index
    %c0_29 = arith.constant 0 : index
    %c0_30 = arith.constant 0 : index
    %30 = vector.load %arg2[%c5, %c0_29, %c0_30] : memref<27x8x8xf32, #tpu.memory_space<vmem>>, vector<1x8x8xf32>
    %31 = vector.shape_cast %30 : vector<1x8x8xf32> to vector<8x8xf32>
    %c0_31 = arith.constant 0 : index
    %c0_32 = arith.constant 0 : index
    %c12 = arith.constant 12 : index
    %32 = vector.load %arg1[%c0_31, %c0_32, %c12] : memref<1x8x1024xf32, #tpu.memory_space<vmem>>, vector<1x8x778xf32>
    %33 = vector.shape_cast %32 : vector<1x8x778xf32> to vector<8x778xf32>
    %cst_33 = arith.constant dense<0.000000e+00> : vector<8x778xf32>
    %34 = tpu.matmul %31, %33, %cst_33 {dimension_numbers = #tpu.dot_dimension_numbers<[1], [0], [0], [1], [0, 0, 1, 1], [], []>} : vector<8x8xf32>, vector<8x778xf32>, vector<8x778xf32> -> vector<8x778xf32>
    %35 = arith.addf %29, %34 : vector<8x778xf32>
    %c6 = arith.constant 6 : index
    %c0_34 = arith.constant 0 : index
    %c0_35 = arith.constant 0 : index
    %36 = vector.load %arg2[%c6, %c0_34, %c0_35] : memref<27x8x8xf32, #tpu.memory_space<vmem>>, vector<1x8x8xf32>
    %37 = vector.shape_cast %36 : vector<1x8x8xf32> to vector<8x8xf32>
    %c0_36 = arith.constant 0 : index
    %c0_37 = arith.constant 0 : index
    %c20 = arith.constant 20 : index
    %38 = vector.load %arg1[%c0_36, %c0_37, %c20] : memref<1x8x1024xf32, #tpu.memory_space<vmem>>, vector<1x8x778xf32>
    %39 = vector.shape_cast %38 : vector<1x8x778xf32> to vector<8x778xf32>
    %cst_38 = arith.constant dense<0.000000e+00> : vector<8x778xf32>
    %40 = tpu.matmul %37, %39, %cst_38 {dimension_numbers = #tpu.dot_dimension_numbers<[1], [0], [0], [1], [0, 0, 1, 1], [], []>} : vector<8x8xf32>, vector<8x778xf32>, vector<8x778xf32> -> vector<8x778xf32>
    %41 = arith.addf %35, %40 : vector<8x778xf32>
    %c7 = arith.constant 7 : index
    %c0_39 = arith.constant 0 : index
    %c0_40 = arith.constant 0 : index
    %42 = vector.load %arg2[%c7, %c0_39, %c0_40] : memref<27x8x8xf32, #tpu.memory_space<vmem>>, vector<1x8x8xf32>
    %43 = vector.shape_cast %42 : vector<1x8x8xf32> to vector<8x8xf32>
    %c0_41 = arith.constant 0 : index
    %c0_42 = arith.constant 0 : index
    %c21 = arith.constant 21 : index
    %44 = vector.load %arg1[%c0_41, %c0_42, %c21] : memref<1x8x1024xf32, #tpu.memory_space<vmem>>, vector<1x8x778xf32>
    %45 = vector.shape_cast %44 : vector<1x8x778xf32> to vector<8x778xf32>
    %cst_43 = arith.constant dense<0.000000e+00> : vector<8x778xf32>
    %46 = tpu.matmul %43, %45, %cst_43 {dimension_numbers = #tpu.dot_dimension_numbers<[1], [0], [0], [1], [0, 0, 1, 1], [], []>} : vector<8x8xf32>, vector<8x778xf32>, vector<8x778xf32> -> vector<8x778xf32>
    %47 = arith.addf %41, %46 : vector<8x778xf32>
    %c8 = arith.constant 8 : index
    %c0_44 = arith.constant 0 : index
    %c0_45 = arith.constant 0 : index
    %48 = vector.load %arg2[%c8, %c0_44, %c0_45] : memref<27x8x8xf32, #tpu.memory_space<vmem>>, vector<1x8x8xf32>
    %49 = vector.shape_cast %48 : vector<1x8x8xf32> to vector<8x8xf32>
    %c0_46 = arith.constant 0 : index
    %c0_47 = arith.constant 0 : index
    %c22 = arith.constant 22 : index
    %50 = vector.load %arg1[%c0_46, %c0_47, %c22] : memref<1x8x1024xf32, #tpu.memory_space<vmem>>, vector<1x8x778xf32>
    %51 = vector.shape_cast %50 : vector<1x8x778xf32> to vector<8x778xf32>
    %cst_48 = arith.constant dense<0.000000e+00> : vector<8x778xf32>
    %52 = tpu.matmul %49, %51, %cst_48 {dimension_numbers = #tpu.dot_dimension_numbers<[1], [0], [0], [1], [0, 0, 1, 1], [], []>} : vector<8x8xf32>, vector<8x778xf32>, vector<8x778xf32> -> vector<8x778xf32>
    %53 = arith.addf %47, %52 : vector<8x778xf32>
    %c9 = arith.constant 9 : index
    %c0_49 = arith.constant 0 : index
    %c0_50 = arith.constant 0 : index
    %54 = vector.load %arg2[%c9, %c0_49, %c0_50] : memref<27x8x8xf32, #tpu.memory_space<vmem>>, vector<1x8x8xf32>
    %55 = vector.shape_cast %54 : vector<1x8x8xf32> to vector<8x8xf32>
    %c0_51 = arith.constant 0 : index
    %c0_52 = arith.constant 0 : index
    %c100 = arith.constant 100 : index
    %56 = vector.load %arg1[%c0_51, %c0_52, %c100] : memref<1x8x1024xf32, #tpu.memory_space<vmem>>, vector<1x8x778xf32>
    %57 = vector.shape_cast %56 : vector<1x8x778xf32> to vector<8x778xf32>
    %cst_53 = arith.constant dense<0.000000e+00> : vector<8x778xf32>
    %58 = tpu.matmul %55, %57, %cst_53 {dimension_numbers = #tpu.dot_dimension_numbers<[1], [0], [0], [1], [0, 0, 1, 1], [], []>} : vector<8x8xf32>, vector<8x778xf32>, vector<8x778xf32> -> vector<8x778xf32>
    %59 = arith.addf %53, %58 : vector<8x778xf32>
    %c10_54 = arith.constant 10 : index
    %c0_55 = arith.constant 0 : index
    %c0_56 = arith.constant 0 : index
    %60 = vector.load %arg2[%c10_54, %c0_55, %c0_56] : memref<27x8x8xf32, #tpu.memory_space<vmem>>, vector<1x8x8xf32>
    %61 = vector.shape_cast %60 : vector<1x8x8xf32> to vector<8x8xf32>
    %c0_57 = arith.constant 0 : index
    %c0_58 = arith.constant 0 : index
    %c101 = arith.constant 101 : index
    %62 = vector.load %arg1[%c0_57, %c0_58, %c101] : memref<1x8x1024xf32, #tpu.memory_space<vmem>>, vector<1x8x778xf32>
    %63 = vector.shape_cast %62 : vector<1x8x778xf32> to vector<8x778xf32>
    %cst_59 = arith.constant dense<0.000000e+00> : vector<8x778xf32>
    %64 = tpu.matmul %61, %63, %cst_59 {dimension_numbers = #tpu.dot_dimension_numbers<[1], [0], [0], [1], [0, 0, 1, 1], [], []>} : vector<8x8xf32>, vector<8x778xf32>, vector<8x778xf32> -> vector<8x778xf32>
    %65 = arith.addf %59, %64 : vector<8x778xf32>
    %c11_60 = arith.constant 11 : index
    %c0_61 = arith.constant 0 : index
    %c0_62 = arith.constant 0 : index
    %66 = vector.load %arg2[%c11_60, %c0_61, %c0_62] : memref<27x8x8xf32, #tpu.memory_space<vmem>>, vector<1x8x8xf32>
    %67 = vector.shape_cast %66 : vector<1x8x8xf32> to vector<8x8xf32>
    %c0_63 = arith.constant 0 : index
    %c0_64 = arith.constant 0 : index
    %c102 = arith.constant 102 : index
    %68 = vector.load %arg1[%c0_63, %c0_64, %c102] : memref<1x8x1024xf32, #tpu.memory_space<vmem>>, vector<1x8x778xf32>
    %69 = vector.shape_cast %68 : vector<1x8x778xf32> to vector<8x778xf32>
    %cst_65 = arith.constant dense<0.000000e+00> : vector<8x778xf32>
    %70 = tpu.matmul %67, %69, %cst_65 {dimension_numbers = #tpu.dot_dimension_numbers<[1], [0], [0], [1], [0, 0, 1, 1], [], []>} : vector<8x8xf32>, vector<8x778xf32>, vector<8x778xf32> -> vector<8x778xf32>
    %71 = arith.addf %65, %70 : vector<8x778xf32>
    %c12_66 = arith.constant 12 : index
    %c0_67 = arith.constant 0 : index
    %c0_68 = arith.constant 0 : index
    %72 = vector.load %arg2[%c12_66, %c0_67, %c0_68] : memref<27x8x8xf32, #tpu.memory_space<vmem>>, vector<1x8x8xf32>
    %73 = vector.shape_cast %72 : vector<1x8x8xf32> to vector<8x8xf32>
    %c0_69 = arith.constant 0 : index
    %c0_70 = arith.constant 0 : index
    %c110 = arith.constant 110 : index
    %74 = vector.load %arg1[%c0_69, %c0_70, %c110] : memref<1x8x1024xf32, #tpu.memory_space<vmem>>, vector<1x8x778xf32>
    %75 = vector.shape_cast %74 : vector<1x8x778xf32> to vector<8x778xf32>
    %cst_71 = arith.constant dense<0.000000e+00> : vector<8x778xf32>
    %76 = tpu.matmul %73, %75, %cst_71 {dimension_numbers = #tpu.dot_dimension_numbers<[1], [0], [0], [1], [0, 0, 1, 1], [], []>} : vector<8x8xf32>, vector<8x778xf32>, vector<8x778xf32> -> vector<8x778xf32>
    %77 = arith.addf %71, %76 : vector<8x778xf32>
    %c13 = arith.constant 13 : index
    %c0_72 = arith.constant 0 : index
    %c0_73 = arith.constant 0 : index
    %78 = vector.load %arg2[%c13, %c0_72, %c0_73] : memref<27x8x8xf32, #tpu.memory_space<vmem>>, vector<1x8x8xf32>
    %79 = vector.shape_cast %78 : vector<1x8x8xf32> to vector<8x8xf32>
    %c0_74 = arith.constant 0 : index
    %c0_75 = arith.constant 0 : index
    %c111 = arith.constant 111 : index
    %80 = vector.load %arg1[%c0_74, %c0_75, %c111] : memref<1x8x1024xf32, #tpu.memory_space<vmem>>, vector<1x8x778xf32>
    %81 = vector.shape_cast %80 : vector<1x8x778xf32> to vector<8x778xf32>
    %cst_76 = arith.constant dense<0.000000e+00> : vector<8x778xf32>
    %82 = tpu.matmul %79, %81, %cst_76 {dimension_numbers = #tpu.dot_dimension_numbers<[1], [0], [0], [1], [0, 0, 1, 1], [], []>} : vector<8x8xf32>, vector<8x778xf32>, vector<8x778xf32> -> vector<8x778xf32>
    %83 = arith.addf %77, %82 : vector<8x778xf32>
    %c14 = arith.constant 14 : index
    %c0_77 = arith.constant 0 : index
    %c0_78 = arith.constant 0 : index
    %84 = vector.load %arg2[%c14, %c0_77, %c0_78] : memref<27x8x8xf32, #tpu.memory_space<vmem>>, vector<1x8x8xf32>
    %85 = vector.shape_cast %84 : vector<1x8x8xf32> to vector<8x8xf32>
    %c0_79 = arith.constant 0 : index
    %c0_80 = arith.constant 0 : index
    %c112 = arith.constant 112 : index
    %86 = vector.load %arg1[%c0_79, %c0_80, %c112] : memref<1x8x1024xf32, #tpu.memory_space<vmem>>, vector<1x8x778xf32>
    %87 = vector.shape_cast %86 : vector<1x8x778xf32> to vector<8x778xf32>
    %cst_81 = arith.constant dense<0.000000e+00> : vector<8x778xf32>
    %88 = tpu.matmul %85, %87, %cst_81 {dimension_numbers = #tpu.dot_dimension_numbers<[1], [0], [0], [1], [0, 0, 1, 1], [], []>} : vector<8x8xf32>, vector<8x778xf32>, vector<8x778xf32> -> vector<8x778xf32>
    %89 = arith.addf %83, %88 : vector<8x778xf32>
    %c15 = arith.constant 15 : index
    %c0_82 = arith.constant 0 : index
    %c0_83 = arith.constant 0 : index
    %90 = vector.load %arg2[%c15, %c0_82, %c0_83] : memref<27x8x8xf32, #tpu.memory_space<vmem>>, vector<1x8x8xf32>
    %91 = vector.shape_cast %90 : vector<1x8x8xf32> to vector<8x8xf32>
    %c0_84 = arith.constant 0 : index
    %c0_85 = arith.constant 0 : index
    %c120 = arith.constant 120 : index
    %92 = vector.load %arg1[%c0_84, %c0_85, %c120] : memref<1x8x1024xf32, #tpu.memory_space<vmem>>, vector<1x8x778xf32>
    %93 = vector.shape_cast %92 : vector<1x8x778xf32> to vector<8x778xf32>
    %cst_86 = arith.constant dense<0.000000e+00> : vector<8x778xf32>
    %94 = tpu.matmul %91, %93, %cst_86 {dimension_numbers = #tpu.dot_dimension_numbers<[1], [0], [0], [1], [0, 0, 1, 1], [], []>} : vector<8x8xf32>, vector<8x778xf32>, vector<8x778xf32> -> vector<8x778xf32>
    %95 = arith.addf %89, %94 : vector<8x778xf32>
    %c16 = arith.constant 16 : index
    %c0_87 = arith.constant 0 : index
    %c0_88 = arith.constant 0 : index
    %96 = vector.load %arg2[%c16, %c0_87, %c0_88] : memref<27x8x8xf32, #tpu.memory_space<vmem>>, vector<1x8x8xf32>
    %97 = vector.shape_cast %96 : vector<1x8x8xf32> to vector<8x8xf32>
    %c0_89 = arith.constant 0 : index
    %c0_90 = arith.constant 0 : index
    %c121 = arith.constant 121 : index
    %98 = vector.load %arg1[%c0_89, %c0_90, %c121] : memref<1x8x1024xf32, #tpu.memory_space<vmem>>, vector<1x8x778xf32>
    %99 = vector.shape_cast %98 : vector<1x8x778xf32> to vector<8x778xf32>
    %cst_91 = arith.constant dense<0.000000e+00> : vector<8x778xf32>
    %100 = tpu.matmul %97, %99, %cst_91 {dimension_numbers = #tpu.dot_dimension_numbers<[1], [0], [0], [1], [0, 0, 1, 1], [], []>} : vector<8x8xf32>, vector<8x778xf32>, vector<8x778xf32> -> vector<8x778xf32>
    %101 = arith.addf %95, %100 : vector<8x778xf32>
    %c17 = arith.constant 17 : index
    %c0_92 = arith.constant 0 : index
    %c0_93 = arith.constant 0 : index
    %102 = vector.load %arg2[%c17, %c0_92, %c0_93] : memref<27x8x8xf32, #tpu.memory_space<vmem>>, vector<1x8x8xf32>
    %103 = vector.shape_cast %102 : vector<1x8x8xf32> to vector<8x8xf32>
    %c0_94 = arith.constant 0 : index
    %c0_95 = arith.constant 0 : index
    %c122 = arith.constant 122 : index
    %104 = vector.load %arg1[%c0_94, %c0_95, %c122] : memref<1x8x1024xf32, #tpu.memory_space<vmem>>, vector<1x8x778xf32>
    %105 = vector.shape_cast %104 : vector<1x8x778xf32> to vector<8x778xf32>
    %cst_96 = arith.constant dense<0.000000e+00> : vector<8x778xf32>
    %106 = tpu.matmul %103, %105, %cst_96 {dimension_numbers = #tpu.dot_dimension_numbers<[1], [0], [0], [1], [0, 0, 1, 1], [], []>} : vector<8x8xf32>, vector<8x778xf32>, vector<8x778xf32> -> vector<8x778xf32>
    %107 = arith.addf %101, %106 : vector<8x778xf32>
    %c18 = arith.constant 18 : index
    %c0_97 = arith.constant 0 : index
    %c0_98 = arith.constant 0 : index
    %108 = vector.load %arg2[%c18, %c0_97, %c0_98] : memref<27x8x8xf32, #tpu.memory_space<vmem>>, vector<1x8x8xf32>
    %109 = vector.shape_cast %108 : vector<1x8x8xf32> to vector<8x8xf32>
    %c0_99 = arith.constant 0 : index
    %c0_100 = arith.constant 0 : index
    %c200 = arith.constant 200 : index
    %110 = vector.load %arg1[%c0_99, %c0_100, %c200] : memref<1x8x1024xf32, #tpu.memory_space<vmem>>, vector<1x8x778xf32>
    %111 = vector.shape_cast %110 : vector<1x8x778xf32> to vector<8x778xf32>
    %cst_101 = arith.constant dense<0.000000e+00> : vector<8x778xf32>
    %112 = tpu.matmul %109, %111, %cst_101 {dimension_numbers = #tpu.dot_dimension_numbers<[1], [0], [0], [1], [0, 0, 1, 1], [], []>} : vector<8x8xf32>, vector<8x778xf32>, vector<8x778xf32> -> vector<8x778xf32>
    %113 = arith.addf %107, %112 : vector<8x778xf32>
    %c19 = arith.constant 19 : index
    %c0_102 = arith.constant 0 : index
    %c0_103 = arith.constant 0 : index
    %114 = vector.load %arg2[%c19, %c0_102, %c0_103] : memref<27x8x8xf32, #tpu.memory_space<vmem>>, vector<1x8x8xf32>
    %115 = vector.shape_cast %114 : vector<1x8x8xf32> to vector<8x8xf32>
    %c0_104 = arith.constant 0 : index
    %c0_105 = arith.constant 0 : index
    %c201 = arith.constant 201 : index
    %116 = vector.load %arg1[%c0_104, %c0_105, %c201] : memref<1x8x1024xf32, #tpu.memory_space<vmem>>, vector<1x8x778xf32>
    %117 = vector.shape_cast %116 : vector<1x8x778xf32> to vector<8x778xf32>
    %cst_106 = arith.constant dense<0.000000e+00> : vector<8x778xf32>
    %118 = tpu.matmul %115, %117, %cst_106 {dimension_numbers = #tpu.dot_dimension_numbers<[1], [0], [0], [1], [0, 0, 1, 1], [], []>} : vector<8x8xf32>, vector<8x778xf32>, vector<8x778xf32> -> vector<8x778xf32>
    %119 = arith.addf %113, %118 : vector<8x778xf32>
    %c20_107 = arith.constant 20 : index
    %c0_108 = arith.constant 0 : index
    %c0_109 = arith.constant 0 : index
    %120 = vector.load %arg2[%c20_107, %c0_108, %c0_109] : memref<27x8x8xf32, #tpu.memory_space<vmem>>, vector<1x8x8xf32>
    %121 = vector.shape_cast %120 : vector<1x8x8xf32> to vector<8x8xf32>
    %c0_110 = arith.constant 0 : index
    %c0_111 = arith.constant 0 : index
    %c202 = arith.constant 202 : index
    %122 = vector.load %arg1[%c0_110, %c0_111, %c202] : memref<1x8x1024xf32, #tpu.memory_space<vmem>>, vector<1x8x778xf32>
    %123 = vector.shape_cast %122 : vector<1x8x778xf32> to vector<8x778xf32>
    %cst_112 = arith.constant dense<0.000000e+00> : vector<8x778xf32>
    %124 = tpu.matmul %121, %123, %cst_112 {dimension_numbers = #tpu.dot_dimension_numbers<[1], [0], [0], [1], [0, 0, 1, 1], [], []>} : vector<8x8xf32>, vector<8x778xf32>, vector<8x778xf32> -> vector<8x778xf32>
    %125 = arith.addf %119, %124 : vector<8x778xf32>
    %c21_113 = arith.constant 21 : index
    %c0_114 = arith.constant 0 : index
    %c0_115 = arith.constant 0 : index
    %126 = vector.load %arg2[%c21_113, %c0_114, %c0_115] : memref<27x8x8xf32, #tpu.memory_space<vmem>>, vector<1x8x8xf32>
    %127 = vector.shape_cast %126 : vector<1x8x8xf32> to vector<8x8xf32>
    %c0_116 = arith.constant 0 : index
    %c0_117 = arith.constant 0 : index
    %c210 = arith.constant 210 : index
    %128 = vector.load %arg1[%c0_116, %c0_117, %c210] : memref<1x8x1024xf32, #tpu.memory_space<vmem>>, vector<1x8x778xf32>
    %129 = vector.shape_cast %128 : vector<1x8x778xf32> to vector<8x778xf32>
    %cst_118 = arith.constant dense<0.000000e+00> : vector<8x778xf32>
    %130 = tpu.matmul %127, %129, %cst_118 {dimension_numbers = #tpu.dot_dimension_numbers<[1], [0], [0], [1], [0, 0, 1, 1], [], []>} : vector<8x8xf32>, vector<8x778xf32>, vector<8x778xf32> -> vector<8x778xf32>
    %131 = arith.addf %125, %130 : vector<8x778xf32>
    %c22_119 = arith.constant 22 : index
    %c0_120 = arith.constant 0 : index
    %c0_121 = arith.constant 0 : index
    %132 = vector.load %arg2[%c22_119, %c0_120, %c0_121] : memref<27x8x8xf32, #tpu.memory_space<vmem>>, vector<1x8x8xf32>
    %133 = vector.shape_cast %132 : vector<1x8x8xf32> to vector<8x8xf32>
    %c0_122 = arith.constant 0 : index
    %c0_123 = arith.constant 0 : index
    %c211 = arith.constant 211 : index
    %134 = vector.load %arg1[%c0_122, %c0_123, %c211] : memref<1x8x1024xf32, #tpu.memory_space<vmem>>, vector<1x8x778xf32>
    %135 = vector.shape_cast %134 : vector<1x8x778xf32> to vector<8x778xf32>
    %cst_124 = arith.constant dense<0.000000e+00> : vector<8x778xf32>
    %136 = tpu.matmul %133, %135, %cst_124 {dimension_numbers = #tpu.dot_dimension_numbers<[1], [0], [0], [1], [0, 0, 1, 1], [], []>} : vector<8x8xf32>, vector<8x778xf32>, vector<8x778xf32> -> vector<8x778xf32>
    %137 = arith.addf %131, %136 : vector<8x778xf32>
    %c23 = arith.constant 23 : index
    %c0_125 = arith.constant 0 : index
    %c0_126 = arith.constant 0 : index
    %138 = vector.load %arg2[%c23, %c0_125, %c0_126] : memref<27x8x8xf32, #tpu.memory_space<vmem>>, vector<1x8x8xf32>
    %139 = vector.shape_cast %138 : vector<1x8x8xf32> to vector<8x8xf32>
    %c0_127 = arith.constant 0 : index
    %c0_128 = arith.constant 0 : index
    %c212 = arith.constant 212 : index
    %140 = vector.load %arg1[%c0_127, %c0_128, %c212] : memref<1x8x1024xf32, #tpu.memory_space<vmem>>, vector<1x8x778xf32>
    %141 = vector.shape_cast %140 : vector<1x8x778xf32> to vector<8x778xf32>
    %cst_129 = arith.constant dense<0.000000e+00> : vector<8x778xf32>
    %142 = tpu.matmul %139, %141, %cst_129 {dimension_numbers = #tpu.dot_dimension_numbers<[1], [0], [0], [1], [0, 0, 1, 1], [], []>} : vector<8x8xf32>, vector<8x778xf32>, vector<8x778xf32> -> vector<8x778xf32>
    %143 = arith.addf %137, %142 : vector<8x778xf32>
    %c24 = arith.constant 24 : index
    %c0_130 = arith.constant 0 : index
    %c0_131 = arith.constant 0 : index
    %144 = vector.load %arg2[%c24, %c0_130, %c0_131] : memref<27x8x8xf32, #tpu.memory_space<vmem>>, vector<1x8x8xf32>
    %145 = vector.shape_cast %144 : vector<1x8x8xf32> to vector<8x8xf32>
    %c0_132 = arith.constant 0 : index
    %c0_133 = arith.constant 0 : index
    %c220 = arith.constant 220 : index
    %146 = vector.load %arg1[%c0_132, %c0_133, %c220] : memref<1x8x1024xf32, #tpu.memory_space<vmem>>, vector<1x8x778xf32>
    %147 = vector.shape_cast %146 : vector<1x8x778xf32> to vector<8x778xf32>
    %cst_134 = arith.constant dense<0.000000e+00> : vector<8x778xf32>
    %148 = tpu.matmul %145, %147, %cst_134 {dimension_numbers = #tpu.dot_dimension_numbers<[1], [0], [0], [1], [0, 0, 1, 1], [], []>} : vector<8x8xf32>, vector<8x778xf32>, vector<8x778xf32> -> vector<8x778xf32>
    %149 = arith.addf %143, %148 : vector<8x778xf32>
    %c25 = arith.constant 25 : index
    %c0_135 = arith.constant 0 : index
    %c0_136 = arith.constant 0 : index
    %150 = vector.load %arg2[%c25, %c0_135, %c0_136] : memref<27x8x8xf32, #tpu.memory_space<vmem>>, vector<1x8x8xf32>
    %151 = vector.shape_cast %150 : vector<1x8x8xf32> to vector<8x8xf32>
    %c0_137 = arith.constant 0 : index
    %c0_138 = arith.constant 0 : index
    %c221 = arith.constant 221 : index
    %152 = vector.load %arg1[%c0_137, %c0_138, %c221] : memref<1x8x1024xf32, #tpu.memory_space<vmem>>, vector<1x8x778xf32>
    %153 = vector.shape_cast %152 : vector<1x8x778xf32> to vector<8x778xf32>
    %cst_139 = arith.constant dense<0.000000e+00> : vector<8x778xf32>
    %154 = tpu.matmul %151, %153, %cst_139 {dimension_numbers = #tpu.dot_dimension_numbers<[1], [0], [0], [1], [0, 0, 1, 1], [], []>} : vector<8x8xf32>, vector<8x778xf32>, vector<8x778xf32> -> vector<8x778xf32>
    %155 = arith.addf %149, %154 : vector<8x778xf32>
    %c26 = arith.constant 26 : index
    %c0_140 = arith.constant 0 : index
    %c0_141 = arith.constant 0 : index
    %156 = vector.load %arg2[%c26, %c0_140, %c0_141] : memref<27x8x8xf32, #tpu.memory_space<vmem>>, vector<1x8x8xf32>
    %157 = vector.shape_cast %156 : vector<1x8x8xf32> to vector<8x8xf32>
    %c0_142 = arith.constant 0 : index
    %c0_143 = arith.constant 0 : index
    %c222 = arith.constant 222 : index
    %158 = vector.load %arg1[%c0_142, %c0_143, %c222] : memref<1x8x1024xf32, #tpu.memory_space<vmem>>, vector<1x8x778xf32>
    %159 = vector.shape_cast %158 : vector<1x8x778xf32> to vector<8x778xf32>
    %cst_144 = arith.constant dense<0.000000e+00> : vector<8x778xf32>
    %160 = tpu.matmul %157, %159, %cst_144 {dimension_numbers = #tpu.dot_dimension_numbers<[1], [0], [0], [1], [0, 0, 1, 1], [], []>} : vector<8x8xf32>, vector<8x778xf32>, vector<8x778xf32> -> vector<8x778xf32>
    %161 = arith.addf %155, %160 : vector<8x778xf32>
    %c0_145 = arith.constant 0 : index
    %c0_146 = arith.constant 0 : index
    %162 = vector.load %arg3[%c0_145, %c0_146] : memref<8x1xf32, #tpu.memory_space<vmem>>, vector<8x1xf32>
    %163 = vector.broadcast %162 : vector<8x1xf32> to vector<8x778xf32>
    %164 = arith.addf %161, %163 : vector<8x778xf32>
    %cst_147 = arith.constant 0.000000e+00 : f32
    %165 = vector.broadcast %cst_147 : f32 to vector<8x778xf32>
    %166 = arith.maximumf %164, %165 : vector<8x778xf32>
    %167 = vector.broadcast %0 : vector<1x778xf32> to vector<8x778xf32>
    %168 = arith.mulf %166, %167 : vector<8x778xf32>
    %cst_148 = arith.constant 0.000000e+00 : f32
    %169 = vector.broadcast %cst_148 : f32 to vector<8x111xf32>
    %c0_149 = arith.constant 0 : index
    %c0_150 = arith.constant 0 : index
    %170 = vector.load %arg8[%c0_149, %c0_150] : memref<8x1024xf32, #tpu.memory_space<vmem>>, vector<8x111xf32>
    tpu.vector_store %arg8[%c0_149, %c0_150], %169 {strides = array<i32>} : memref<8x1024xf32, #tpu.memory_space<vmem>>, vector<8x111xf32>,
    %cst_151 = arith.constant 0.000000e+00 : f32
    %171 = vector.broadcast %cst_151 : f32 to vector<8x135xf32>
    %c0_152 = arith.constant 0 : index
    %c889 = arith.constant 889 : index
    %172 = vector.load %arg8[%c0_152, %c889] : memref<8x1024xf32, #tpu.memory_space<vmem>>, vector<8x135xf32>
    tpu.vector_store %arg8[%c0_152, %c889], %171 {strides = array<i32>} : memref<8x1024xf32, #tpu.memory_space<vmem>>, vector<8x135xf32>,
    %c0_153 = arith.constant 0 : index
    %c111_154 = arith.constant 111 : index
    %173 = vector.load %arg8[%c0_153, %c111_154] : memref<8x1024xf32, #tpu.memory_space<vmem>>, vector<8x778xf32>
    tpu.vector_store %arg8[%c0_153, %c111_154], %168 {strides = array<i32>} : memref<8x1024xf32, #tpu.memory_space<vmem>>, vector<8x778xf32>,
    %c0_155 = arith.constant 0 : index
    %c0_156 = arith.constant 0 : index
    %c0_157 = arith.constant 0 : index
    %174 = vector.load %arg4[%c0_155, %c0_156, %c0_157] : memref<27x8x8xf32, #tpu.memory_space<vmem>>, vector<1x8x8xf32>
    %175 = vector.shape_cast %174 : vector<1x8x8xf32> to vector<8x8xf32>
    %c0_158 = arith.constant 0 : index
    %c0_159 = arith.constant 0 : index
    %176 = vector.load %arg8[%c0_158, %c0_159] : memref<8x1024xf32, #tpu.memory_space<vmem>>, vector<8x778xf32>
    %cst_160 = arith.constant dense<0.000000e+00> : vector<8x778xf32>
    %177 = tpu.matmul %175, %176, %cst_160 {dimension_numbers = #tpu.dot_dimension_numbers<[1], [0], [0], [1], [0, 0, 1, 1], [], []>} : vector<8x8xf32>, vector<8x778xf32>, vector<8x778xf32> -> vector<8x778xf32>
    %c1_161 = arith.constant 1 : index
    %c0_162 = arith.constant 0 : index
    %c0_163 = arith.constant 0 : index
    %178 = vector.load %arg4[%c1_161, %c0_162, %c0_163] : memref<27x8x8xf32, #tpu.memory_space<vmem>>, vector<1x8x8xf32>
    %179 = vector.shape_cast %178 : vector<1x8x8xf32> to vector<8x8xf32>
    %c0_164 = arith.constant 0 : index
    %c1_165 = arith.constant 1 : index
    %180 = vector.load %arg8[%c0_164, %c1_165] : memref<8x1024xf32, #tpu.memory_space<vmem>>, vector<8x778xf32>
    %cst_166 = arith.constant dense<0.000000e+00> : vector<8x778xf32>
    %181 = tpu.matmul %179, %180, %cst_166 {dimension_numbers = #tpu.dot_dimension_numbers<[1], [0], [0], [1], [0, 0, 1, 1], [], []>} : vector<8x8xf32>, vector<8x778xf32>, vector<8x778xf32> -> vector<8x778xf32>
    %182 = arith.addf %177, %181 : vector<8x778xf32>
    %c2_167 = arith.constant 2 : index
    %c0_168 = arith.constant 0 : index
    %c0_169 = arith.constant 0 : index
    %183 = vector.load %arg4[%c2_167, %c0_168, %c0_169] : memref<27x8x8xf32, #tpu.memory_space<vmem>>, vector<1x8x8xf32>
    %184 = vector.shape_cast %183 : vector<1x8x8xf32> to vector<8x8xf32>
    %c0_170 = arith.constant 0 : index
    %c2_171 = arith.constant 2 : index
    %185 = vector.load %arg8[%c0_170, %c2_171] : memref<8x1024xf32, #tpu.memory_space<vmem>>, vector<8x778xf32>
    %cst_172 = arith.constant dense<0.000000e+00> : vector<8x778xf32>
    %186 = tpu.matmul %184, %185, %cst_172 {dimension_numbers = #tpu.dot_dimension_numbers<[1], [0], [0], [1], [0, 0, 1, 1], [], []>} : vector<8x8xf32>, vector<8x778xf32>, vector<8x778xf32> -> vector<8x778xf32>
    %187 = arith.addf %182, %186 : vector<8x778xf32>
    %c3_173 = arith.constant 3 : index
    %c0_174 = arith.constant 0 : index
    %c0_175 = arith.constant 0 : index
    %188 = vector.load %arg4[%c3_173, %c0_174, %c0_175] : memref<27x8x8xf32, #tpu.memory_space<vmem>>, vector<1x8x8xf32>
    %189 = vector.shape_cast %188 : vector<1x8x8xf32> to vector<8x8xf32>
    %c0_176 = arith.constant 0 : index
    %c10_177 = arith.constant 10 : index
    %190 = vector.load %arg8[%c0_176, %c10_177] : memref<8x1024xf32, #tpu.memory_space<vmem>>, vector<8x778xf32>
    %cst_178 = arith.constant dense<0.000000e+00> : vector<8x778xf32>
    %191 = tpu.matmul %189, %190, %cst_178 {dimension_numbers = #tpu.dot_dimension_numbers<[1], [0], [0], [1], [0, 0, 1, 1], [], []>} : vector<8x8xf32>, vector<8x778xf32>, vector<8x778xf32> -> vector<8x778xf32>
    %192 = arith.addf %187, %191 : vector<8x778xf32>
    %c4_179 = arith.constant 4 : index
    %c0_180 = arith.constant 0 : index
    %c0_181 = arith.constant 0 : index
    %193 = vector.load %arg4[%c4_179, %c0_180, %c0_181] : memref<27x8x8xf32, #tpu.memory_space<vmem>>, vector<1x8x8xf32>
    %194 = vector.shape_cast %193 : vector<1x8x8xf32> to vector<8x8xf32>
    %c0_182 = arith.constant 0 : index
    %c11_183 = arith.constant 11 : index
    %195 = vector.load %arg8[%c0_182, %c11_183] : memref<8x1024xf32, #tpu.memory_space<vmem>>, vector<8x778xf32>
    %cst_184 = arith.constant dense<0.000000e+00> : vector<8x778xf32>
    %196 = tpu.matmul %194, %195, %cst_184 {dimension_numbers = #tpu.dot_dimension_numbers<[1], [0], [0], [1], [0, 0, 1, 1], [], []>} : vector<8x8xf32>, vector<8x778xf32>, vector<8x778xf32> -> vector<8x778xf32>
    %197 = arith.addf %192, %196 : vector<8x778xf32>
    %c5_185 = arith.constant 5 : index
    %c0_186 = arith.constant 0 : index
    %c0_187 = arith.constant 0 : index
    %198 = vector.load %arg4[%c5_185, %c0_186, %c0_187] : memref<27x8x8xf32, #tpu.memory_space<vmem>>, vector<1x8x8xf32>
    %199 = vector.shape_cast %198 : vector<1x8x8xf32> to vector<8x8xf32>
    %c0_188 = arith.constant 0 : index
    %c12_189 = arith.constant 12 : index
    %200 = vector.load %arg8[%c0_188, %c12_189] : memref<8x1024xf32, #tpu.memory_space<vmem>>, vector<8x778xf32>
    %cst_190 = arith.constant dense<0.000000e+00> : vector<8x778xf32>
    %201 = tpu.matmul %199, %200, %cst_190 {dimension_numbers = #tpu.dot_dimension_numbers<[1], [0], [0], [1], [0, 0, 1, 1], [], []>} : vector<8x8xf32>, vector<8x778xf32>, vector<8x778xf32> -> vector<8x778xf32>
    %202 = arith.addf %197, %201 : vector<8x778xf32>
    %c6_191 = arith.constant 6 : index
    %c0_192 = arith.constant 0 : index
    %c0_193 = arith.constant 0 : index
    %203 = vector.load %arg4[%c6_191, %c0_192, %c0_193] : memref<27x8x8xf32, #tpu.memory_space<vmem>>, vector<1x8x8xf32>
    %204 = vector.shape_cast %203 : vector<1x8x8xf32> to vector<8x8xf32>
    %c0_194 = arith.constant 0 : index
    %c20_195 = arith.constant 20 : index
    %205 = vector.load %arg8[%c0_194, %c20_195] : memref<8x1024xf32, #tpu.memory_space<vmem>>, vector<8x778xf32>
    %cst_196 = arith.constant dense<0.000000e+00> : vector<8x778xf32>
    %206 = tpu.matmul %204, %205, %cst_196 {dimension_numbers = #tpu.dot_dimension_numbers<[1], [0], [0], [1], [0, 0, 1, 1], [], []>} : vector<8x8xf32>, vector<8x778xf32>, vector<8x778xf32> -> vector<8x778xf32>
    %207 = arith.addf %202, %206 : vector<8x778xf32>
    %c7_197 = arith.constant 7 : index
    %c0_198 = arith.constant 0 : index
    %c0_199 = arith.constant 0 : index
    %208 = vector.load %arg4[%c7_197, %c0_198, %c0_199] : memref<27x8x8xf32, #tpu.memory_space<vmem>>, vector<1x8x8xf32>
    %209 = vector.shape_cast %208 : vector<1x8x8xf32> to vector<8x8xf32>
    %c0_200 = arith.constant 0 : index
    %c21_201 = arith.constant 21 : index
    %210 = vector.load %arg8[%c0_200, %c21_201] : memref<8x1024xf32, #tpu.memory_space<vmem>>, vector<8x778xf32>
    %cst_202 = arith.constant dense<0.000000e+00> : vector<8x778xf32>
    %211 = tpu.matmul %209, %210, %cst_202 {dimension_numbers = #tpu.dot_dimension_numbers<[1], [0], [0], [1], [0, 0, 1, 1], [], []>} : vector<8x8xf32>, vector<8x778xf32>, vector<8x778xf32> -> vector<8x778xf32>
    %212 = arith.addf %207, %211 : vector<8x778xf32>
    %c8_203 = arith.constant 8 : index
    %c0_204 = arith.constant 0 : index
    %c0_205 = arith.constant 0 : index
    %213 = vector.load %arg4[%c8_203, %c0_204, %c0_205] : memref<27x8x8xf32, #tpu.memory_space<vmem>>, vector<1x8x8xf32>
    %214 = vector.shape_cast %213 : vector<1x8x8xf32> to vector<8x8xf32>
    %c0_206 = arith.constant 0 : index
    %c22_207 = arith.constant 22 : index
    %215 = vector.load %arg8[%c0_206, %c22_207] : memref<8x1024xf32, #tpu.memory_space<vmem>>, vector<8x778xf32>
    %cst_208 = arith.constant dense<0.000000e+00> : vector<8x778xf32>
    %216 = tpu.matmul %214, %215, %cst_208 {dimension_numbers = #tpu.dot_dimension_numbers<[1], [0], [0], [1], [0, 0, 1, 1], [], []>} : vector<8x8xf32>, vector<8x778xf32>, vector<8x778xf32> -> vector<8x778xf32>
    %217 = arith.addf %212, %216 : vector<8x778xf32>
    %c9_209 = arith.constant 9 : index
    %c0_210 = arith.constant 0 : index
    %c0_211 = arith.constant 0 : index
    %218 = vector.load %arg4[%c9_209, %c0_210, %c0_211] : memref<27x8x8xf32, #tpu.memory_space<vmem>>, vector<1x8x8xf32>
    %219 = vector.shape_cast %218 : vector<1x8x8xf32> to vector<8x8xf32>
    %c0_212 = arith.constant 0 : index
    %c100_213 = arith.constant 100 : index
    %220 = vector.load %arg8[%c0_212, %c100_213] : memref<8x1024xf32, #tpu.memory_space<vmem>>, vector<8x778xf32>
    %cst_214 = arith.constant dense<0.000000e+00> : vector<8x778xf32>
    %221 = tpu.matmul %219, %220, %cst_214 {dimension_numbers = #tpu.dot_dimension_numbers<[1], [0], [0], [1], [0, 0, 1, 1], [], []>} : vector<8x8xf32>, vector<8x778xf32>, vector<8x778xf32> -> vector<8x778xf32>
    %222 = arith.addf %217, %221 : vector<8x778xf32>
    %c10_215 = arith.constant 10 : index
    %c0_216 = arith.constant 0 : index
    %c0_217 = arith.constant 0 : index
    %223 = vector.load %arg4[%c10_215, %c0_216, %c0_217] : memref<27x8x8xf32, #tpu.memory_space<vmem>>, vector<1x8x8xf32>
    %224 = vector.shape_cast %223 : vector<1x8x8xf32> to vector<8x8xf32>
    %c0_218 = arith.constant 0 : index
    %c101_219 = arith.constant 101 : index
    %225 = vector.load %arg8[%c0_218, %c101_219] : memref<8x1024xf32, #tpu.memory_space<vmem>>, vector<8x778xf32>
    %cst_220 = arith.constant dense<0.000000e+00> : vector<8x778xf32>
    %226 = tpu.matmul %224, %225, %cst_220 {dimension_numbers = #tpu.dot_dimension_numbers<[1], [0], [0], [1], [0, 0, 1, 1], [], []>} : vector<8x8xf32>, vector<8x778xf32>, vector<8x778xf32> -> vector<8x778xf32>
    %227 = arith.addf %222, %226 : vector<8x778xf32>
    %c11_221 = arith.constant 11 : index
    %c0_222 = arith.constant 0 : index
    %c0_223 = arith.constant 0 : index
    %228 = vector.load %arg4[%c11_221, %c0_222, %c0_223] : memref<27x8x8xf32, #tpu.memory_space<vmem>>, vector<1x8x8xf32>
    %229 = vector.shape_cast %228 : vector<1x8x8xf32> to vector<8x8xf32>
    %c0_224 = arith.constant 0 : index
    %c102_225 = arith.constant 102 : index
    %230 = vector.load %arg8[%c0_224, %c102_225] : memref<8x1024xf32, #tpu.memory_space<vmem>>, vector<8x778xf32>
    %cst_226 = arith.constant dense<0.000000e+00> : vector<8x778xf32>
    %231 = tpu.matmul %229, %230, %cst_226 {dimension_numbers = #tpu.dot_dimension_numbers<[1], [0], [0], [1], [0, 0, 1, 1], [], []>} : vector<8x8xf32>, vector<8x778xf32>, vector<8x778xf32> -> vector<8x778xf32>
    %232 = arith.addf %227, %231 : vector<8x778xf32>
    %c12_227 = arith.constant 12 : index
    %c0_228 = arith.constant 0 : index
    %c0_229 = arith.constant 0 : index
    %233 = vector.load %arg4[%c12_227, %c0_228, %c0_229] : memref<27x8x8xf32, #tpu.memory_space<vmem>>, vector<1x8x8xf32>
    %234 = vector.shape_cast %233 : vector<1x8x8xf32> to vector<8x8xf32>
    %c0_230 = arith.constant 0 : index
    %c110_231 = arith.constant 110 : index
    %235 = vector.load %arg8[%c0_230, %c110_231] : memref<8x1024xf32, #tpu.memory_space<vmem>>, vector<8x778xf32>
    %cst_232 = arith.constant dense<0.000000e+00> : vector<8x778xf32>
    %236 = tpu.matmul %234, %235, %cst_232 {dimension_numbers = #tpu.dot_dimension_numbers<[1], [0], [0], [1], [0, 0, 1, 1], [], []>} : vector<8x8xf32>, vector<8x778xf32>, vector<8x778xf32> -> vector<8x778xf32>
    %237 = arith.addf %232, %236 : vector<8x778xf32>
    %c13_233 = arith.constant 13 : index
    %c0_234 = arith.constant 0 : index
    %c0_235 = arith.constant 0 : index
    %238 = vector.load %arg4[%c13_233, %c0_234, %c0_235] : memref<27x8x8xf32, #tpu.memory_space<vmem>>, vector<1x8x8xf32>
    %239 = vector.shape_cast %238 : vector<1x8x8xf32> to vector<8x8xf32>
    %c0_236 = arith.constant 0 : index
    %c111_237 = arith.constant 111 : index
    %240 = vector.load %arg8[%c0_236, %c111_237] : memref<8x1024xf32, #tpu.memory_space<vmem>>, vector<8x778xf32>
    %cst_238 = arith.constant dense<0.000000e+00> : vector<8x778xf32>
    %241 = tpu.matmul %239, %240, %cst_238 {dimension_numbers = #tpu.dot_dimension_numbers<[1], [0], [0], [1], [0, 0, 1, 1], [], []>} : vector<8x8xf32>, vector<8x778xf32>, vector<8x778xf32> -> vector<8x778xf32>
    %242 = arith.addf %237, %241 : vector<8x778xf32>
    %c14_239 = arith.constant 14 : index
    %c0_240 = arith.constant 0 : index
    %c0_241 = arith.constant 0 : index
    %243 = vector.load %arg4[%c14_239, %c0_240, %c0_241] : memref<27x8x8xf32, #tpu.memory_space<vmem>>, vector<1x8x8xf32>
    %244 = vector.shape_cast %243 : vector<1x8x8xf32> to vector<8x8xf32>
    %c0_242 = arith.constant 0 : index
    %c112_243 = arith.constant 112 : index
    %245 = vector.load %arg8[%c0_242, %c112_243] : memref<8x1024xf32, #tpu.memory_space<vmem>>, vector<8x778xf32>
    %cst_244 = arith.constant dense<0.000000e+00> : vector<8x778xf32>
    %246 = tpu.matmul %244, %245, %cst_244 {dimension_numbers = #tpu.dot_dimension_numbers<[1], [0], [0], [1], [0, 0, 1, 1], [], []>} : vector<8x8xf32>, vector<8x778xf32>, vector<8x778xf32> -> vector<8x778xf32>
    %247 = arith.addf %242, %246 : vector<8x778xf32>
    %c15_245 = arith.constant 15 : index
    %c0_246 = arith.constant 0 : index
    %c0_247 = arith.constant 0 : index
    %248 = vector.load %arg4[%c15_245, %c0_246, %c0_247] : memref<27x8x8xf32, #tpu.memory_space<vmem>>, vector<1x8x8xf32>
    %249 = vector.shape_cast %248 : vector<1x8x8xf32> to vector<8x8xf32>
    %c0_248 = arith.constant 0 : index
    %c120_249 = arith.constant 120 : index
    %250 = vector.load %arg8[%c0_248, %c120_249] : memref<8x1024xf32, #tpu.memory_space<vmem>>, vector<8x778xf32>
    %cst_250 = arith.constant dense<0.000000e+00> : vector<8x778xf32>
    %251 = tpu.matmul %249, %250, %cst_250 {dimension_numbers = #tpu.dot_dimension_numbers<[1], [0], [0], [1], [0, 0, 1, 1], [], []>} : vector<8x8xf32>, vector<8x778xf32>, vector<8x778xf32> -> vector<8x778xf32>
    %252 = arith.addf %247, %251 : vector<8x778xf32>
    %c16_251 = arith.constant 16 : index
    %c0_252 = arith.constant 0 : index
    %c0_253 = arith.constant 0 : index
    %253 = vector.load %arg4[%c16_251, %c0_252, %c0_253] : memref<27x8x8xf32, #tpu.memory_space<vmem>>, vector<1x8x8xf32>
    %254 = vector.shape_cast %253 : vector<1x8x8xf32> to vector<8x8xf32>
    %c0_254 = arith.constant 0 : index
    %c121_255 = arith.constant 121 : index
    %255 = vector.load %arg8[%c0_254, %c121_255] : memref<8x1024xf32, #tpu.memory_space<vmem>>, vector<8x778xf32>
    %cst_256 = arith.constant dense<0.000000e+00> : vector<8x778xf32>
    %256 = tpu.matmul %254, %255, %cst_256 {dimension_numbers = #tpu.dot_dimension_numbers<[1], [0], [0], [1], [0, 0, 1, 1], [], []>} : vector<8x8xf32>, vector<8x778xf32>, vector<8x778xf32> -> vector<8x778xf32>
    %257 = arith.addf %252, %256 : vector<8x778xf32>
    %c17_257 = arith.constant 17 : index
    %c0_258 = arith.constant 0 : index
    %c0_259 = arith.constant 0 : index
    %258 = vector.load %arg4[%c17_257, %c0_258, %c0_259] : memref<27x8x8xf32, #tpu.memory_space<vmem>>, vector<1x8x8xf32>
    %259 = vector.shape_cast %258 : vector<1x8x8xf32> to vector<8x8xf32>
    %c0_260 = arith.constant 0 : index
    %c122_261 = arith.constant 122 : index
    %260 = vector.load %arg8[%c0_260, %c122_261] : memref<8x1024xf32, #tpu.memory_space<vmem>>, vector<8x778xf32>
    %cst_262 = arith.constant dense<0.000000e+00> : vector<8x778xf32>
    %261 = tpu.matmul %259, %260, %cst_262 {dimension_numbers = #tpu.dot_dimension_numbers<[1], [0], [0], [1], [0, 0, 1, 1], [], []>} : vector<8x8xf32>, vector<8x778xf32>, vector<8x778xf32> -> vector<8x778xf32>
    %262 = arith.addf %257, %261 : vector<8x778xf32>
    %c18_263 = arith.constant 18 : index
    %c0_264 = arith.constant 0 : index
    %c0_265 = arith.constant 0 : index
    %263 = vector.load %arg4[%c18_263, %c0_264, %c0_265] : memref<27x8x8xf32, #tpu.memory_space<vmem>>, vector<1x8x8xf32>
    %264 = vector.shape_cast %263 : vector<1x8x8xf32> to vector<8x8xf32>
    %c0_266 = arith.constant 0 : index
    %c200_267 = arith.constant 200 : index
    %265 = vector.load %arg8[%c0_266, %c200_267] : memref<8x1024xf32, #tpu.memory_space<vmem>>, vector<8x778xf32>
    %cst_268 = arith.constant dense<0.000000e+00> : vector<8x778xf32>
    %266 = tpu.matmul %264, %265, %cst_268 {dimension_numbers = #tpu.dot_dimension_numbers<[1], [0], [0], [1], [0, 0, 1, 1], [], []>} : vector<8x8xf32>, vector<8x778xf32>, vector<8x778xf32> -> vector<8x778xf32>
    %267 = arith.addf %262, %266 : vector<8x778xf32>
    %c19_269 = arith.constant 19 : index
    %c0_270 = arith.constant 0 : index
    %c0_271 = arith.constant 0 : index
    %268 = vector.load %arg4[%c19_269, %c0_270, %c0_271] : memref<27x8x8xf32, #tpu.memory_space<vmem>>, vector<1x8x8xf32>
    %269 = vector.shape_cast %268 : vector<1x8x8xf32> to vector<8x8xf32>
    %c0_272 = arith.constant 0 : index
    %c201_273 = arith.constant 201 : index
    %270 = vector.load %arg8[%c0_272, %c201_273] : memref<8x1024xf32, #tpu.memory_space<vmem>>, vector<8x778xf32>
    %cst_274 = arith.constant dense<0.000000e+00> : vector<8x778xf32>
    %271 = tpu.matmul %269, %270, %cst_274 {dimension_numbers = #tpu.dot_dimension_numbers<[1], [0], [0], [1], [0, 0, 1, 1], [], []>} : vector<8x8xf32>, vector<8x778xf32>, vector<8x778xf32> -> vector<8x778xf32>
    %272 = arith.addf %267, %271 : vector<8x778xf32>
    %c20_275 = arith.constant 20 : index
    %c0_276 = arith.constant 0 : index
    %c0_277 = arith.constant 0 : index
    %273 = vector.load %arg4[%c20_275, %c0_276, %c0_277] : memref<27x8x8xf32, #tpu.memory_space<vmem>>, vector<1x8x8xf32>
    %274 = vector.shape_cast %273 : vector<1x8x8xf32> to vector<8x8xf32>
    %c0_278 = arith.constant 0 : index
    %c202_279 = arith.constant 202 : index
    %275 = vector.load %arg8[%c0_278, %c202_279] : memref<8x1024xf32, #tpu.memory_space<vmem>>, vector<8x778xf32>
    %cst_280 = arith.constant dense<0.000000e+00> : vector<8x778xf32>
    %276 = tpu.matmul %274, %275, %cst_280 {dimension_numbers = #tpu.dot_dimension_numbers<[1], [0], [0], [1], [0, 0, 1, 1], [], []>} : vector<8x8xf32>, vector<8x778xf32>, vector<8x778xf32> -> vector<8x778xf32>
    %277 = arith.addf %272, %276 : vector<8x778xf32>
    %c21_281 = arith.constant 21 : index
    %c0_282 = arith.constant 0 : index
    %c0_283 = arith.constant 0 : index
    %278 = vector.load %arg4[%c21_281, %c0_282, %c0_283] : memref<27x8x8xf32, #tpu.memory_space<vmem>>, vector<1x8x8xf32>
    %279 = vector.shape_cast %278 : vector<1x8x8xf32> to vector<8x8xf32>
    %c0_284 = arith.constant 0 : index
    %c210_285 = arith.constant 210 : index
    %280 = vector.load %arg8[%c0_284, %c210_285] : memref<8x1024xf32, #tpu.memory_space<vmem>>, vector<8x778xf32>
    %cst_286 = arith.constant dense<0.000000e+00> : vector<8x778xf32>
    %281 = tpu.matmul %279, %280, %cst_286 {dimension_numbers = #tpu.dot_dimension_numbers<[1], [0], [0], [1], [0, 0, 1, 1], [], []>} : vector<8x8xf32>, vector<8x778xf32>, vector<8x778xf32> -> vector<8x778xf32>
    %282 = arith.addf %277, %281 : vector<8x778xf32>
    %c22_287 = arith.constant 22 : index
    %c0_288 = arith.constant 0 : index
    %c0_289 = arith.constant 0 : index
    %283 = vector.load %arg4[%c22_287, %c0_288, %c0_289] : memref<27x8x8xf32, #tpu.memory_space<vmem>>, vector<1x8x8xf32>
    %284 = vector.shape_cast %283 : vector<1x8x8xf32> to vector<8x8xf32>
    %c0_290 = arith.constant 0 : index
    %c211_291 = arith.constant 211 : index
    %285 = vector.load %arg8[%c0_290, %c211_291] : memref<8x1024xf32, #tpu.memory_space<vmem>>, vector<8x778xf32>
    %cst_292 = arith.constant dense<0.000000e+00> : vector<8x778xf32>
    %286 = tpu.matmul %284, %285, %cst_292 {dimension_numbers = #tpu.dot_dimension_numbers<[1], [0], [0], [1], [0, 0, 1, 1], [], []>} : vector<8x8xf32>, vector<8x778xf32>, vector<8x778xf32> -> vector<8x778xf32>
    %287 = arith.addf %282, %286 : vector<8x778xf32>
    %c23_293 = arith.constant 23 : index
    %c0_294 = arith.constant 0 : index
    %c0_295 = arith.constant 0 : index
    %288 = vector.load %arg4[%c23_293, %c0_294, %c0_295] : memref<27x8x8xf32, #tpu.memory_space<vmem>>, vector<1x8x8xf32>
    %289 = vector.shape_cast %288 : vector<1x8x8xf32> to vector<8x8xf32>
    %c0_296 = arith.constant 0 : index
    %c212_297 = arith.constant 212 : index
    %290 = vector.load %arg8[%c0_296, %c212_297] : memref<8x1024xf32, #tpu.memory_space<vmem>>, vector<8x778xf32>
    %cst_298 = arith.constant dense<0.000000e+00> : vector<8x778xf32>
    %291 = tpu.matmul %289, %290, %cst_298 {dimension_numbers = #tpu.dot_dimension_numbers<[1], [0], [0], [1], [0, 0, 1, 1], [], []>} : vector<8x8xf32>, vector<8x778xf32>, vector<8x778xf32> -> vector<8x778xf32>
    %292 = arith.addf %287, %291 : vector<8x778xf32>
    %c24_299 = arith.constant 24 : index
    %c0_300 = arith.constant 0 : index
    %c0_301 = arith.constant 0 : index
    %293 = vector.load %arg4[%c24_299, %c0_300, %c0_301] : memref<27x8x8xf32, #tpu.memory_space<vmem>>, vector<1x8x8xf32>
    %294 = vector.shape_cast %293 : vector<1x8x8xf32> to vector<8x8xf32>
    %c0_302 = arith.constant 0 : index
    %c220_303 = arith.constant 220 : index
    %295 = vector.load %arg8[%c0_302, %c220_303] : memref<8x1024xf32, #tpu.memory_space<vmem>>, vector<8x778xf32>
    %cst_304 = arith.constant dense<0.000000e+00> : vector<8x778xf32>
    %296 = tpu.matmul %294, %295, %cst_304 {dimension_numbers = #tpu.dot_dimension_numbers<[1], [0], [0], [1], [0, 0, 1, 1], [], []>} : vector<8x8xf32>, vector<8x778xf32>, vector<8x778xf32> -> vector<8x778xf32>
    %297 = arith.addf %292, %296 : vector<8x778xf32>
    %c25_305 = arith.constant 25 : index
    %c0_306 = arith.constant 0 : index
    %c0_307 = arith.constant 0 : index
    %298 = vector.load %arg4[%c25_305, %c0_306, %c0_307] : memref<27x8x8xf32, #tpu.memory_space<vmem>>, vector<1x8x8xf32>
    %299 = vector.shape_cast %298 : vector<1x8x8xf32> to vector<8x8xf32>
    %c0_308 = arith.constant 0 : index
    %c221_309 = arith.constant 221 : index
    %300 = vector.load %arg8[%c0_308, %c221_309] : memref<8x1024xf32, #tpu.memory_space<vmem>>, vector<8x778xf32>
    %cst_310 = arith.constant dense<0.000000e+00> : vector<8x778xf32>
    %301 = tpu.matmul %299, %300, %cst_310 {dimension_numbers = #tpu.dot_dimension_numbers<[1], [0], [0], [1], [0, 0, 1, 1], [], []>} : vector<8x8xf32>, vector<8x778xf32>, vector<8x778xf32> -> vector<8x778xf32>
    %302 = arith.addf %297, %301 : vector<8x778xf32>
    %c26_311 = arith.constant 26 : index
    %c0_312 = arith.constant 0 : index
    %c0_313 = arith.constant 0 : index
    %303 = vector.load %arg4[%c26_311, %c0_312, %c0_313] : memref<27x8x8xf32, #tpu.memory_space<vmem>>, vector<1x8x8xf32>
    %304 = vector.shape_cast %303 : vector<1x8x8xf32> to vector<8x8xf32>
    %c0_314 = arith.constant 0 : index
    %c222_315 = arith.constant 222 : index
    %305 = vector.load %arg8[%c0_314, %c222_315] : memref<8x1024xf32, #tpu.memory_space<vmem>>, vector<8x778xf32>
    %cst_316 = arith.constant dense<0.000000e+00> : vector<8x778xf32>
    %306 = tpu.matmul %304, %305, %cst_316 {dimension_numbers = #tpu.dot_dimension_numbers<[1], [0], [0], [1], [0, 0, 1, 1], [], []>} : vector<8x8xf32>, vector<8x778xf32>, vector<8x778xf32> -> vector<8x778xf32>
    %307 = arith.addf %302, %306 : vector<8x778xf32>
    %c0_317 = arith.constant 0 : index
    %c0_318 = arith.constant 0 : index
    %308 = vector.load %arg5[%c0_317, %c0_318] : memref<8x1xf32, #tpu.memory_space<vmem>>, vector<8x1xf32>
    %309 = vector.broadcast %308 : vector<8x1xf32> to vector<8x778xf32>
    %310 = arith.addf %307, %309 : vector<8x778xf32>
    %cst_319 = arith.constant 0.000000e+00 : f32
    %311 = vector.broadcast %cst_319 : f32 to vector<8x778xf32>
    %312 = arith.maximumf %310, %311 : vector<8x778xf32>
    %c0_320 = arith.constant 0 : index
    %c0_321 = arith.constant 0 : index
    %c111_322 = arith.constant 111 : index
    %313 = vector.load %arg7[%c0_320, %c0_321, %c111_322] : memref<1x8x1024xf32, #tpu.memory_space<vmem>>, vector<1x8x778xf32>
    %314 = vector.shape_cast %313 : vector<1x8x778xf32> to vector<8x778xf32>
    %315 = vector.shape_cast %312 : vector<8x778xf32> to vector<1x8x778xf32>
    tpu.vector_store %arg7[%c0_320, %c0_321, %c111_322], %315 {strides = array<i32>} : memref<1x8x1024xf32, #tpu.memory_space<vmem>>, vector<1x8x778xf32>,
    return
  }
  func.func @transform_0(%arg0: i32) -> (i32, i32, i32) {
    %c0_i32 = arith.constant 0 : i32
    %c0_i32_0 = arith.constant 0 : i32
    %c0_i32_1 = arith.constant 0 : i32
    return %arg0, %c0_i32, %c0_i32_0 : i32, i32, i32
  }
  func.func @transform_1(%arg0: i32) -> (i32, i32, i32) {
    %c0_i32 = arith.constant 0 : i32
    %c0_i32_0 = arith.constant 0 : i32
    %c0_i32_1 = arith.constant 0 : i32
    %c0_i32_2 = arith.constant 0 : i32
    return %c0_i32, %c0_i32_0, %c0_i32_1 : i32, i32, i32
  }
  func.func @transform_2(%arg0: i32) -> (i32, i32) {
    %c0_i32 = arith.constant 0 : i32
    %c0_i32_0 = arith.constant 0 : i32
    %c0_i32_1 = arith.constant 0 : i32
    return %c0_i32, %c0_i32_0 : i32, i32
  }
  func.func @transform_3(%arg0: i32) -> (i32, i32, i32) {
    %c0_i32 = arith.constant 0 : i32
    %c0_i32_0 = arith.constant 0 : i32
    %c0_i32_1 = arith.constant 0 : i32
    %c0_i32_2 = arith.constant 0 : i32
    return %c0_i32, %c0_i32_0, %c0_i32_1 : i32, i32, i32
  }
  func.func @transform_4(%arg0: i32) -> (i32, i32) {
    %c0_i32 = arith.constant 0 : i32
    %c0_i32_0 = arith.constant 0 : i32
    %c0_i32_1 = arith.constant 0 : i32
    return %c0_i32, %c0_i32_0 : i32, i32
  }
  func.func @transform_5(%arg0: i32) -> (i32, i32) {
    %c0_i32 = arith.constant 0 : i32
    %c0_i32_0 = arith.constant 0 : i32
    %c0_i32_1 = arith.constant 0 : i32
    return %c0_i32, %c0_i32_0 : i32, i32
  }
  func.func @transform_6(%arg0: i32) -> (i32, i32, i32) {
    %c0_i32 = arith.constant 0 : i32
    %c0_i32_0 = arith.constant 0 : i32
    %c0_i32_1 = arith.constant 0 : i32
    return %arg0, %c0_i32, %c0_i32_0 : i32, i32, i32
  }
}

</mosaic_0001>

<bundles_post_ra>
// kernel: down3d_forward.1
= control target key start
LH: loop header
LB: loop body
LE: loop exit
PB: predicated region body
PF: predicated region fallthrough
CT: control target
= control target key end

     0   :  { %s18987_s21 = smov 0   ;;  %s21517_s0 = inlined_call_operand.vmem [shape: f32[2,8,1024], index: 0, kind: input, shape index: {}]   ;;  %s21518_s1 = inlined_call_operand.vmem [shape: f32[27,8,8], index: 1, kind: input, shape index: {}]   ;;  %s21519_s2 = inlined_call_operand.vmem [shape: f32[8,1], index: 2, kind: input, shape index: {}]   ;;  %s21520_s3 = inlined_call_operand.vmem [shape: f32[27,8,8], index: 3, kind: input, shape index: {}]   ;;  %s21521_s4 = inlined_call_operand.vmem [shape: f32[8,1], index: 4, kind: input, shape index: {}]   ;;  %s21522_s5 = inlined_call_operand.vmem [shape: f32[1,778], index: 5, kind: input, shape index: {}]   ;;  %s21523_s6 = inlined_call_operand.vmem [shape: f32[2,8,1024], index: 6, kind: output, shape index: {}]  }
   0x1 LB: > { %s17888_s22 = sadd.s32 4294967295, %s18920_s21   ;;  %p17892_p0 = scmp.ge.s32.totalorder %s18920_s21, 1  ;;  %s18920_s21 = sphi %s18987_s21, %s16_s21  }
   0x2   : > { %p212_p1 = scmp.lt.s32.totalorder %s18920_s21, 3 }
   0x4   : > { %p213_p2 = pnand %p17892_p0, %p212_p1 }
   0x6   : > { %216 = sbr.rel (%p213_p2) target bundleno = 1693 (0x69d), region = 44 }
   0xd   : > { %p242_p3 = scmp.lt.s32.totalorder %s17888_s22, 1  ;;  %v18922_v0 = vmov 0.0   ;;  %s18923_s27 = smov 127   ;;  %vm284_vm0 = vcmask 1039360   ;;  %v17897_v13 = vld [vmem:[%s21518_s1 + $0x8] sm:$0xff]  ;;  %vm298_vm1 = vcmask 64512  }
   0xe   : > { %366 = vmatprep.mubr.f32.mxu0 %v18922_v0  ;;  %9037 = vst [vmem:[#allocation2 + $0x38] sm:$0xff] %v18922_v0  ;;  %437 = vmatprep.mubr.f32.mxu1 %v18922_v0  ;;  %s18924_s28 = smov 126   ;;  %s18925_s29 = smov 118   ;;  %vm18933_vm2 = vmmov 0   ;;  %v253_v25 = vld [vmem:[%s21518_s1] sm:$0xff]  ;;  %vm887_vm3 = vcmask 1031168  }
   0xf   : > { %s21726_s22 = smov (!%p242_p3, %s17888_s22), 1  ;;  %s18926_s30 = smov 117   ;;  %v17906_v37 = vld [vmem:[%s21518_s1 + $0x10] sm:$0xff]  ;;  %vm1210_vm4 = vcmask 965632   ;;  %v17911_v46 = vld [vmem:[%s21518_s1 + $0x18] sm:$0xff]  ;;  %vm1533_vm5 = vcmask 957440  }
  0x10   : > { %s21524_s23 = sshll.u32 %s21726_s22, 6  ;;  %s18927_s7 = smov 116   ;;  %v17916_v60 = vld [vmem:[%s21518_s1 + $0x20] sm:$0xff]  ;;  %vm1856_vm6 = vcmask 949248   ;;  %vm2179_vm7 = vcmask 883712   ;;  %vm2502_vm8 = vcmask 875520  }
  0x11   : > { %s19003_s26 = scalar_lea.vmem %s21517_s0, %s21524_s23  ;;  %s18928_s8 = smov 108   ;;  %vm2825_vm9 = vcmask 867328   ;;  %vm3148_vm10 = vcmask 228352   ;;  %vm21541_vm11 = vcmask 220160   ;;  %vm21540_vm12 = vcmask 211968  }
  0x12   : > { %v19009_v1 = vld [vmem:[%s19003_s26 + $0x8] sm:$0xff]  ;;  %v19012_v2 = vld [vmem:[%s19003_s26] sm:$0xff]  ;;  %v19019_v3 = vld [vmem:[%s19003_s26 + $0x10] sm:$0xff]  ;;  %s18929_s9 = smov 107   ;;  %s18930_s10 = smov 106   ;;  %vm21537_vm13 = vcmask 146432  }
  0x13   : > { %272 = vrot.lane.b32.xlu0 %v19009_v1, %s18923_s27  ;;  %270 = vrot.lane.b32.xlu1 %v19012_v2, %s18923_s27  ;;  %v19022_v4 = vld [vmem:[%s19003_s26 + $0x18] sm:$0xff]  ;;  %v19029_v5 = vld [vmem:[%s19003_s26 + $0x20] sm:$0xff]  ;;  %s18931_s11 = smov 28   ;;  %s18932_s14 = smov 27   ;;  %vm21534_vm14 = vcmask 138240   ;;  %vm21531_vm15 = vcmask 130048  }
  0x14   : > { %v19032_v6 = vld [vmem:[%s19003_s26 + $0x28] sm:$0xff]  ;;  %v19039_v7 = vld [vmem:[%s19003_s26 + $0x30] sm:$0xff]  ;;  %s18934_s17 = smov 26   ;;  %s18935_s25 = smov 18  }
  0x15   : > { %s18936_s15 = smov 17   ;;  %s18937_s19 = smov 16  }
  0x16   : > { %s18938_s12 = smov 8   ;;  %s18939_s18 = smov 7  }
  0x17   : > { %274 = vrot.lane.b32.xlu0 %v19019_v3, %s18923_s27  ;;  %276 = vrot.lane.b32.xlu1 %v19022_v4, %s18923_s27  ;;  %s18940_s13 = smov 6   ;;  %s18941_s20 = smov 56  }
  0x18   : > { %s21525_s24 = smov 55   ;;  %s21529_s23 = smov 54  }
  0x1b   : > { %278 = vrot.lane.b32.xlu0 %v19029_v5, %s18923_s27  ;;  %280 = vrot.lane.b32.xlu1 %v19032_v6, %s18923_s27 }
  0x1f   : > { %282 = vrot.lane.b32.xlu0 %v19039_v7, %s18923_s27  ;;  %875 = vrot.lane.b32.xlu1 %v19009_v1, %s18924_s28 }
  0x23   : > { %877 = vrot.lane.b32.xlu0 %v19019_v3, %s18924_s28  ;;  %873 = vrot.lane.b32.xlu1 %v19012_v2, %s18924_s28 }
  0x27   : > { %879 = vrot.lane.b32.xlu0 %v19022_v4, %s18924_s28  ;;  %881 = vrot.lane.b32.xlu1 %v19029_v5, %s18924_s28 }
  0x2b   : > { %883 = vrot.lane.b32.xlu0 %v19032_v6, %s18924_s28  ;;  %885 = vrot.lane.b32.xlu1 %v19039_v7, %s18924_s28 }
  0x2f   : > { %1198 = vrot.lane.b32.xlu0 %v19009_v1, %s18925_s29  ;;  %1200 = vrot.lane.b32.xlu1 %v19019_v3, %s18925_s29 }
  0x33   : > { %1196 = vrot.lane.b32.xlu0 %v19012_v2, %s18925_s29  ;;  %1202 = vrot.lane.b32.xlu1 %v19022_v4, %s18925_s29 }
  0x37   : > { %1204 = vrot.lane.b32.xlu0 %v19029_v5, %s18925_s29  ;;  %1206 = vrot.lane.b32.xlu1 %v19032_v6, %s18925_s29 }
  0x3b   : > { %1208 = vrot.lane.b32.xlu0 %v19039_v7, %s18925_s29  ;;  %1521 = vrot.lane.b32.xlu1 %v19009_v1, %s18926_s30 }
  0x3f   : > { %1523 = vrot.lane.b32.xlu0 %v19019_v3, %s18926_s30  ;;  %1519 = vrot.lane.b32.xlu1 %v19012_v2, %s18926_s30 }
  0x43   : > { %1525 = vrot.lane.b32.xlu0 %v19022_v4, %s18926_s30  ;;  %1527 = vrot.lane.b32.xlu1 %v19029_v5, %s18926_s30 }
  0x47   : > { %1529 = vrot.lane.b32.xlu0 %v19032_v6, %s18926_s30  ;;  %1531 = vrot.lane.b32.xlu1 %v19039_v7, %s18926_s30 }
  0x4b   : > { %1844 = vrot.lane.b32.xlu0 %v19009_v1, %s18927_s7  ;;  %1846 = vrot.lane.b32.xlu1 %v19019_v3, %s18927_s7 }
  0x4f   : > { %1842 = vrot.lane.b32.xlu0 %v19012_v2, %s18927_s7  ;;  %1848 = vrot.lane.b32.xlu1 %v19022_v4, %s18927_s7 }
  0x53   : > { %1850 = vrot.lane.b32.xlu0 %v19029_v5, %s18927_s7  ;;  %1852 = vrot.lane.b32.xlu1 %v19032_v6, %s18927_s7 }
  0x57   : > { %1854 = vrot.lane.b32.xlu0 %v19039_v7, %s18927_s7  ;;  %2167 = vrot.lane.b32.xlu1 %v19009_v1, %s18928_s8 }
  0x5b   : > { %2169 = vrot.lane.b32.xlu0 %v19019_v3, %s18928_s8  ;;  %2165 = vrot.lane.b32.xlu1 %v19012_v2, %s18928_s8 }
  0x5f   : > { %2171 = vrot.lane.b32.xlu0 %v19022_v4, %s18928_s8  ;;  %2173 = vrot.lane.b32.xlu1 %v19029_v5, %s18928_s8 }
  0x63   : > { %2175 = vrot.lane.b32.xlu0 %v19032_v6, %s18928_s8  ;;  %2177 = vrot.lane.b32.xlu1 %v19039_v7, %s18928_s8 }
  0x67   : > { %2490 = vrot.lane.b32.xlu0 %v19009_v1, %s18929_s9  ;;  %2492 = vrot.lane.b32.xlu1 %v19019_v3, %s18929_s9 }
  0x6b   : > { %2488 = vrot.lane.b32.xlu0 %v19012_v2, %s18929_s9  ;;  %2494 = vrot.lane.b32.xlu1 %v19022_v4, %s18929_s9 }
  0x6f   : > { %2496 = vrot.lane.b32.xlu0 %v19029_v5, %s18929_s9  ;;  %2498 = vrot.lane.b32.xlu1 %v19032_v6, %s18929_s9 }
  0x73   : > { %2500 = vrot.lane.b32.xlu0 %v19039_v7, %s18929_s9  ;;  %2813 = vrot.lane.b32.xlu1 %v19009_v1, %s18930_s10 }
  0x77   : > { %2815 = vrot.lane.b32.xlu0 %v19019_v3, %s18930_s10  ;;  %2811 = vrot.lane.b32.xlu1 %v19012_v2, %s18930_s10 }
  0x7b   : > { %2817 = vrot.lane.b32.xlu0 %v19022_v4, %s18930_s10  ;;  %2819 = vrot.lane.b32.xlu1 %v19029_v5, %s18930_s10 }
  0x7f   : > { %2821 = vrot.lane.b32.xlu0 %v19032_v6, %s18930_s10  ;;  %2823 = vrot.lane.b32.xlu1 %v19039_v7, %s18930_s10 }
  0x83   : > { %3136 = vrot.lane.b32.xlu0 %v19009_v1, %s18931_s11  ;;  %3138 = vrot.lane.b32.xlu1 %v19019_v3, %s18931_s11 }
  0x85   : > { %v273_v8 = vpop.permute.xlu0 %272  ;;  %v271_v9 = vpop.permute.xlu1 %270 }
  0x86   : > { %v285_v14 = vsel %vm284_vm0, %v271_v9, %v273_v8 }
  0x87   : > { %3134 = vrot.lane.b32.xlu0 %v19012_v2, %s18931_s11  ;;  %3140 = vrot.lane.b32.xlu1 %v19022_v4, %s18931_s11 }
  0x89   : > { %v275_v10 = vpop.permute.xlu0 %274  ;;  %v277_v11 = vpop.permute.xlu1 %276 }
  0x8a   : > { %v286_v12 = vsel %vm284_vm0, %v273_v8, %v275_v10  ;;  %v287_v18 = vsel %vm284_vm0, %v275_v10, %v277_v11 }
  0x8b   : > { %302 = vmatprep.subr.mxu0 %v286_v12  ;;  %3142 = vrot.lane.b32.xlu0 %v19029_v5, %s18931_s11 }
  0x8c   : > { %3144 = vrot.lane.b32.xlu1 %v19032_v6, %s18931_s11  ;;  %303 = vmatpush1.msra.mxu0 %v285_v14 }
  0x8d   : > { %v279_v15 = vpop.permute.xlu0 %278  ;;  %v281_v16 = vpop.permute.xlu1 %280  ;;  %17898 = vmatmul.mubr.msk.f32.vlgmr.msra.gmra.mrb[0].mxu0 %vm298_vm1, %v17897_v13 }
  0x8e   : > { %v288_v17 = vsel %vm284_vm0, %v277_v11, %v279_v15  ;;  %508 = vmatprep.mubr.f32.mxu0 %v18922_v0  ;;  %v289_v22 = vsel %vm284_vm0, %v279_v15, %v281_v16  ;;  %v17921_v15 = vld [vmem:[%s21518_s1 + $0x28] sm:$0xff] }
  0x8f   : > { %3146 = vrot.lane.b32.xlu0 %v19039_v7, %s18931_s11  ;;  %373 = vmatprep.subr.mxu1 %v288_v17 }
  0x90   : > { %3459 = vrot.lane.b32.xlu1 %v19009_v1, %s18932_s14  ;;  %374 = vmatpush1.msra.mxu1 %v287_v18 }
  0x91   : > { %v283_v19 = vpop.permute.xlu0 %282  ;;  %17899 = vmatmul.mubr.msk.f32.vlgmr.msra.gmra.mrb[0].mxu1 %vm298_vm1, %v17897_v13  ;;  %18277 = vmatprep.subr.mxu1 %v18922_v0  ;;  %v876_v20 = vpop.permute.xlu1 %875 }
  0x92   : > { %18278 = vmatpush3.msra.mxu1 %v283_v19  ;;  %v290_v21 = vsel %vm284_vm0, %v281_v16, %v283_v19  ;;  %18279 = vmatprep.mubr.msk.f32.mxu1 %vm18933_vm2, %v18922_v0 }
  0x93   : > { %3461 = vrot.lane.b32.xlu0 %v19019_v3, %s18932_s14  ;;  %444 = vmatprep.subr.mxu0 %v290_v21 }
  0x94   : > { %3457 = vrot.lane.b32.xlu1 %v19012_v2, %s18932_s14  ;;  %445 = vmatpush1.msra.mxu0 %v289_v22 }
  0x95   : > { %v878_v23 = vpop.permute.xlu0 %877  ;;  %17900 = vmatmul.mubr.msk.f32.vlgmr.msra.gmra.mrb[2].mxu0 %vm298_vm1, %v17897_v13  ;;  %18280 = vmatmul.mubr.msk.f32.vlgmr.msra.gmra.mrb[2].mxu1 %vm298_vm1, %v17897_v13  ;;  %v874_v24 = vpop.permute.xlu1 %873 }
  0x96   : > { %588 = vmatprep.subr.mxu0 %v19009_v1  ;;  %659 = vmatprep.subr.mxu1 %v19022_v4  ;;  %v889_v28 = vsel %vm887_vm3, %v876_v20, %v878_v23  ;;  %v888_v32 = vsel %vm887_vm3, %v874_v24, %v876_v20 }
  0x97   : > { %3463 = vrot.lane.b32.xlu0 %v19022_v4, %s18932_s14  ;;  %589 = vmatpush1.msra.mxu0 %v19012_v2 }
  0x98   : > { %3465 = vrot.lane.b32.xlu1 %v19029_v5, %s18932_s14  ;;  %652 = vmatprep.mubr.f32.mxu0 %v18922_v0 }
  0x99   : > { %660 = vmatpush1.msra.mxu1 %v19019_v3  ;;  %723 = vmatprep.mubr.f32.mxu1 %v18922_v0  ;;  %v880_v26 = vpop.permute.xlu0 %879  ;;  %v882_v27 = vpop.permute.xlu1 %881 }
  0x9a   : > { %730 = vmatprep.subr.mxu0 %v19032_v6  ;;  %17902 = vmatmul.mubr.msk.f32.vlgmr.msra.gmra.mrb[0].mxu0 %vm298_vm1, %v253_v25  ;;  %v891_v29 = vsel %vm887_vm3, %v880_v26, %v882_v27  ;;  %v890_v33 = vsel %vm887_vm3, %v878_v23, %v880_v26 }
  0x9b   : > { %17903 = vmatmul.mubr.msk.f32.vlgmr.msra.gmra.mrb[0].mxu1 %vm298_vm1, %v253_v25  ;;  %731 = vmatpush1.msra.mxu0 %v19029_v5 }
  0x9c   : > { %18282 = vmatprep.subr.mxu1 %v18922_v0  ;;  %904 = vmatprep.subr.mxu0 %v889_v28  ;;  %v17926_v28 = vld [vmem:[%s21518_s1 + $0x30] sm:$0xff] }
  0x9d   : > { %18283 = vmatpush3.msra.mxu1 %v19039_v7  ;;  %3467 = vrot.lane.b32.xlu0 %v19032_v6, %s18932_s14  ;;  %v884_v30 = vpop.permute.xlu0 %883  ;;  %v886_v31 = vpop.permute.xlu1 %885 }
  0x9e   : > { %3469 = vrot.lane.b32.xlu1 %v19039_v7, %s18932_s14  ;;  %975 = vmatprep.subr.mxu1 %v891_v29  ;;  %v893_v34 = vsel %vm887_vm3, %v884_v30, %v886_v31  ;;  %v892_v38 = vsel %vm887_vm3, %v882_v27, %v884_v30 }
  0x9f   : > { %794 = vmatprep.mubr.f32.mxu0 %v18922_v0  ;;  %18284 = vmatprep.mubr.msk.f32.mxu1 %vm18933_vm2, %v18922_v0 }
  0xa0   : > { %17904 = vmatmul.mubr.msk.f32.vlgmr.msra.gmra.mrb[2].mxu0 %vm298_vm1, %v253_v25  ;;  %18285 = vmatmul.mubr.msk.f32.vlgmr.msra.gmra.mrb[4].mxu1 %vm298_vm1, %v253_v25 }
  0xa1   : > { %905 = vmatpush1.msra.mxu0 %v888_v32  ;;  %976 = vmatpush1.msra.mxu1 %v890_v33  ;;  %v1199_v35 = vpop.permute.xlu0 %1198  ;;  %v1201_v36 = vpop.permute.xlu1 %1200 }
  0xa2   : > { %3782 = vrot.lane.b32.xlu0 %v19009_v1, %s18934_s17  ;;  %3784 = vrot.lane.b32.xlu1 %v19019_v3, %s18934_s17  ;;  %v1212_v39 = vsel %vm1210_vm4, %v1199_v35, %v1201_v36 }
  0xa3   : > { %1046 = vmatprep.subr.mxu0 %v893_v34  ;;  %968 = vmatprep.mubr.f32.mxu0 %v18922_v0 }
  0xa4   : > { %1039 = vmatprep.mubr.f32.mxu1 %v18922_v0  ;;  %18287 = vmatprep.subr.mxu1 %v18922_v0 }
  0xa5   : > { %17907 = vmatmul.mubr.msk.f32.vlgmr.msra.gmra.mrb[0].mxu0 %vm298_vm1, %v17906_v37  ;;  %17908 = vmatmul.mubr.msk.f32.vlgmr.msra.gmra.mrb[0].mxu1 %vm298_vm1, %v17906_v37  ;;  %v1197_v40 = vpop.permute.xlu0 %1196  ;;  %v1203_v41 = vpop.permute.xlu1 %1202 }
  0xa6   : > { %1047 = vmatpush1.msra.mxu0 %v892_v38  ;;  %18288 = vmatpush3.msra.mxu1 %v886_v31  ;;  %v1211_v42 = vsel %vm1210_vm4, %v1197_v40, %v1199_v35  ;;  %v1213_v47 = vsel %vm1210_vm4, %v1201_v36, %v1203_v41 }
  0xa7   : > { %3780 = vrot.lane.b32.xlu0 %v19012_v2, %s18934_s17  ;;  %3786 = vrot.lane.b32.xlu1 %v19022_v4, %s18934_s17 }
  0xa8   : > { %1227 = vmatprep.subr.mxu0 %v1212_v39  ;;  %1110 = vmatprep.mubr.f32.mxu0 %v18922_v0 }
  0xa9   : > { %17909 = vmatmul.mubr.msk.f32.vlgmr.msra.gmra.mrb[2].mxu0 %vm298_vm1, %v17906_v37  ;;  %v1205_v43 = vpop.permute.xlu0 %1204  ;;  %18289 = vmatprep.mubr.msk.f32.mxu1 %vm18933_vm2, %v18922_v0  ;;  %v1207_v44 = vpop.permute.xlu1 %1206 }
  0xaa   : > { %1228 = vmatpush1.msra.mxu0 %v1211_v42  ;;  %18290 = vmatmul.mubr.msk.f32.vlgmr.msra.gmra.mrb[6].mxu1 %vm298_vm1, %v17906_v37  ;;  %v1214_v45 = vsel %vm1210_vm4, %v1203_v41, %v1205_v43  ;;  %v1215_v51 = vsel %vm1210_vm4, %v1205_v43, %v1207_v44  ;;  %v17931_v43 = vld [vmem:[%s21518_s1 + $0x38] sm:$0xff] }
  0xab   : > { %3788 = vrot.lane.b32.xlu0 %v19029_v5, %s18934_s17  ;;  %3790 = vrot.lane.b32.xlu1 %v19032_v6, %s18934_s17 }
  0xac   : > { %1298 = vmatprep.subr.mxu1 %v1214_v45  ;;  %1362 = vmatprep.mubr.f32.mxu1 %v18922_v0 }
  0xad   : > { %1299 = vmatpush1.msra.mxu1 %v1213_v47  ;;  %v1209_v48 = vpop.permute.xlu0 %1208  ;;  %v1522_v49 = vpop.permute.xlu1 %1521  ;;  %1291 = vmatprep.mubr.f32.mxu0 %v18922_v0  ;;  %v19380_v47 = vld [vmem:[%s19003_s26 + $0x38] sm:$0xff] }
  0xae   : > { %18292 = vmatprep.subr.mxu1 %v18922_v0  ;;  %17913 = vmatmul.mubr.msk.f32.vlgmr.msra.gmra.mrb[0].mxu1 %vm298_vm1, %v17911_v46  ;;  %v1216_v50 = vsel %vm1210_vm4, %v1207_v44, %v1209_v48 }
  0xaf   : > { %3792 = vrot.lane.b32.xlu0 %v19039_v7, %s18934_s17  ;;  %4105 = vrot.lane.b32.xlu1 %v19009_v1, %s18935_s25 }
  0xb0   : > { %18293 = vmatpush3.msra.mxu1 %v1209_v48  ;;  %1369 = vmatprep.subr.mxu0 %v1216_v50 }
  0xb1   : > { %17912 = vmatmul.mubr.msk.f32.vlgmr.msra.gmra.mrb[0].mxu0 %vm298_vm1, %v17911_v46  ;;  %v1524_v52 = vpop.permute.xlu0 %1523  ;;  %v1520_v53 = vpop.permute.xlu1 %1519  ;;  %18294 = vmatprep.mubr.msk.f32.mxu1 %vm18933_vm2, %v18922_v0 }
  0xb2   : > { %1370 = vmatpush1.msra.mxu0 %v1215_v51  ;;  %1433 = vmatprep.mubr.f32.mxu0 %v18922_v0  ;;  %v1535_v54 = vsel %vm1533_vm5, %v1522_v49, %v1524_v52  ;;  %v1534_v55 = vsel %vm1533_vm5, %v1520_v53, %v1522_v49 }
  0xb3   : > { %4107 = vrot.lane.b32.xlu0 %v19019_v3, %s18935_s25  ;;  %4103 = vrot.lane.b32.xlu1 %v19012_v2, %s18935_s25 }
  0xb4   : > { %1550 = vmatprep.subr.mxu0 %v1535_v54  ;;  %18295 = vmatmul.mubr.msk.f32.vlgmr.msra.gmra.mrb[8].mxu1 %vm298_vm1, %v17911_v46 }
  0xb5   : > { %17914 = vmatmul.mubr.msk.f32.vlgmr.msra.gmra.mrb[2].mxu0 %vm298_vm1, %v17911_v46  ;;  %v1526_v56 = vpop.permute.xlu0 %1525  ;;  %v1528_v57 = vpop.permute.xlu1 %1527  ;;  %1685 = vmatprep.mubr.f32.mxu1 %v18922_v0 }
  0xb6   : > { %1551 = vmatpush1.msra.mxu0 %v1534_v55  ;;  %v1537_v58 = vsel %vm1533_vm5, %v1526_v56, %v1528_v57  ;;  %v1536_v59 = vsel %vm1533_vm5, %v1524_v52, %v1526_v56  ;;  %1614 = vmatprep.mubr.f32.mxu0 %v18922_v0 }
  0xb7   : > { %4109 = vrot.lane.b32.xlu0 %v19022_v4, %s18935_s25  ;;  %4111 = vrot.lane.b32.xlu1 %v19029_v5, %s18935_s25 }
  0xb8   : > { %1621 = vmatprep.subr.mxu1 %v1537_v58 }
  0xb9   : > { %1622 = vmatpush1.msra.mxu1 %v1536_v59  ;;  %v1530_v61 = vpop.permute.xlu0 %1529  ;;  %v1532_v62 = vpop.permute.xlu1 %1531  ;;  %17917 = vmatmul.mubr.msk.f32.vlgmr.msra.gmra.mrb[0].mxu0 %vm298_vm1, %v17916_v60 }
  0xba   : > { %v1539_v63 = vsel %vm1533_vm5, %v1530_v61, %v1532_v62  ;;  %v1538_v8 = vsel %vm1533_vm5, %v1528_v57, %v1530_v61  ;;  %18297 = vmatprep.subr.mxu1 %v18922_v0  ;;  %17918 = vmatmul.mubr.msk.f32.vlgmr.msra.gmra.mrb[0].mxu1 %vm298_vm1, %v17916_v60  ;;  %v17936_v57 = vld [vmem:[%s21518_s1 + $0x40] sm:$0xff] }
  0xbb   : > { %4113 = vrot.lane.b32.xlu0 %v19032_v6, %s18935_s25  ;;  %4115 = vrot.lane.b32.xlu1 %v19039_v7, %s18935_s25 }
  0xbc   : > { %1692 = vmatprep.subr.mxu0 %v1539_v63  ;;  %18298 = vmatpush3.msra.mxu1 %v1532_v62 }
  0xbd   : > { %1693 = vmatpush1.msra.mxu0 %v1538_v8  ;;  %v1845_v9 = vpop.permute.xlu0 %1844  ;;  %v1847_v10 = vpop.permute.xlu1 %1846  ;;  %1756 = vmatprep.mubr.f32.mxu0 %v18922_v0 }
  0xbe   : > { %v1858_v11 = vsel %vm1856_vm6, %v1845_v9, %v1847_v10  ;;  %17919 = vmatmul.mubr.msk.f32.vlgmr.msra.gmra.mrb[2].mxu0 %vm298_vm1, %v17916_v60  ;;  %18299 = vmatprep.mubr.msk.f32.mxu1 %vm18933_vm2, %v18922_v0 }
  0xbf   : > { %4428 = vrot.lane.b32.xlu0 %v19009_v1, %s18936_s15  ;;  %4430 = vrot.lane.b32.xlu1 %v19019_v3, %s18936_s15 }
  0xc0   : > { %1873 = vmatprep.subr.mxu0 %v1858_v11  ;;  %18300 = vmatmul.mubr.msk.f32.vlgmr.msra.gmra.mrb[10].mxu1 %vm298_vm1, %v17916_v60 }
  0xc1   : > { %v1843_v12 = vpop.permute.xlu0 %1842  ;;  %v1849_v13 = vpop.permute.xlu1 %1848  ;;  %2008 = vmatprep.mubr.f32.mxu1 %v18922_v0  ;;  %1937 = vmatprep.mubr.f32.mxu0 %v18922_v0 }
  0xc2   : > { %v1857_v14 = vsel %vm1856_vm6, %v1843_v12, %v1845_v9  ;;  %v1859_v19 = vsel %vm1856_vm6, %v1847_v10, %v1849_v13 }
  0xc3   : > { %4426 = vrot.lane.b32.xlu0 %v19012_v2, %s18936_s15  ;;  %4432 = vrot.lane.b32.xlu1 %v19022_v4, %s18936_s15 }
  0xc4   : > { %1874 = vmatpush1.msra.mxu0 %v1857_v14 }
  0xc5   : > { %v1851_v16 = vpop.permute.xlu0 %1850  ;;  %v1853_v17 = vpop.permute.xlu1 %1852  ;;  %17922 = vmatmul.mubr.msk.f32.vlgmr.msra.gmra.mrb[0].mxu0 %vm298_vm1, %v17921_v15 }
  0xc6   : > { %v1860_v18 = vsel %vm1856_vm6, %v1849_v13, %v1851_v16  ;;  %2079 = vmatprep.mubr.f32.mxu0 %v18922_v0  ;;  %v1861_v23 = vsel %vm1856_vm6, %v1851_v16, %v1853_v17  ;;  %v17941_v16 = vld [vmem:[%s21518_s1 + $0x48] sm:$0xff] }
  0xc7   : > { %4434 = vrot.lane.b32.xlu0 %v19029_v5, %s18936_s15  ;;  %4436 = vrot.lane.b32.xlu1 %v19032_v6, %s18936_s15 }
  0xc8   : > { %1944 = vmatprep.subr.mxu1 %v1860_v18 }
  0xc9   : > { %1945 = vmatpush1.msra.mxu1 %v1859_v19  ;;  %v1855_v20 = vpop.permute.xlu0 %1854  ;;  %v2168_v21 = vpop.permute.xlu1 %2167 }
  0xca   : > { %18302 = vmatprep.subr.mxu1 %v18922_v0  ;;  %17923 = vmatmul.mubr.msk.f32.vlgmr.msra.gmra.mrb[0].mxu1 %vm298_vm1, %v17921_v15  ;;  %v1862_v22 = vsel %vm1856_vm6, %v1853_v17, %v1855_v20 }
  0xcb   : > { %4438 = vrot.lane.b32.xlu0 %v19039_v7, %s18936_s15  ;;  %4751 = vrot.lane.b32.xlu1 %v19009_v1, %s18937_s19 }
  0xcc   : > { %18303 = vmatpush3.msra.mxu1 %v1855_v20  ;;  %2015 = vmatprep.subr.mxu0 %v1862_v22 }
  0xcd   : > { %2016 = vmatpush1.msra.mxu0 %v1861_v23  ;;  %v2170_v24 = vpop.permute.xlu0 %2169  ;;  %v2166_v25 = vpop.permute.xlu1 %2165  ;;  %18304 = vmatprep.mubr.msk.f32.mxu1 %vm18933_vm2, %v18922_v0 }
  0xce   : > { %v2180_v26 = vsel %vm2179_vm7, %v2166_v25, %v2168_v21  ;;  %v2181_v27 = vsel %vm2179_vm7, %v2168_v21, %v2170_v24  ;;  %17924 = vmatmul.mubr.msk.f32.vlgmr.msra.gmra.mrb[2].mxu0 %vm298_vm1, %v17921_v15  ;;  %18305 = vmatmul.mubr.msk.f32.vlgmr.msra.gmra.mrb[12].mxu1 %vm298_vm1, %v17921_v15 }
  0xcf   : > { %4753 = vrot.lane.b32.xlu0 %v19019_v3, %s18937_s19  ;;  %4749 = vrot.lane.b32.xlu1 %v19012_v2, %s18937_s19 }
  0xd0   : > { %2196 = vmatprep.subr.mxu0 %v2181_v27  ;;  %2260 = vmatprep.mubr.f32.mxu0 %v18922_v0 }
  0xd1   : > { %2197 = vmatpush1.msra.mxu0 %v2180_v26  ;;  %v2172_v29 = vpop.permute.xlu0 %2171  ;;  %v2174_v30 = vpop.permute.xlu1 %2173  ;;  %2331 = vmatprep.mubr.f32.mxu1 %v18922_v0 }
  0xd2   : > { %v2183_v31 = vsel %vm2179_vm7, %v2172_v29, %v2174_v30  ;;  %v2182_v32 = vsel %vm2179_vm7, %v2170_v24, %v2172_v29  ;;  %17927 = vmatmul.mubr.msk.f32.vlgmr.msra.gmra.mrb[0].mxu0 %vm298_vm1, %v17926_v28 }
  0xd3   : > { %4755 = vrot.lane.b32.xlu0 %v19022_v4, %s18937_s19  ;;  %4757 = vrot.lane.b32.xlu1 %v19029_v5, %s18937_s19 }
  0xd4   : > { %2267 = vmatprep.subr.mxu1 %v2183_v31  ;;  %2402 = vmatprep.mubr.f32.mxu0 %v18922_v0 }
  0xd5   : > { %2268 = vmatpush1.msra.mxu1 %v2182_v32  ;;  %v2176_v33 = vpop.permute.xlu0 %2175  ;;  %v2178_v34 = vpop.permute.xlu1 %2177 }
  0xd6   : > { %v2185_v35 = vsel %vm2179_vm7, %v2176_v33, %v2178_v34  ;;  %v2184_v36 = vsel %vm2179_vm7, %v2174_v30, %v2176_v33  ;;  %18307 = vmatprep.subr.mxu1 %v18922_v0  ;;  %17928 = vmatmul.mubr.msk.f32.vlgmr.msra.gmra.mrb[0].mxu1 %vm298_vm1, %v17926_v28 }
  0xd7   : > { %4759 = vrot.lane.b32.xlu0 %v19032_v6, %s18937_s19  ;;  %4761 = vrot.lane.b32.xlu1 %v19039_v7, %s18937_s19 }
  0xd8   : > { %2338 = vmatprep.subr.mxu0 %v2185_v35  ;;  %18308 = vmatpush3.msra.mxu1 %v2178_v34 }
  0xd9   : > { %2339 = vmatpush1.msra.mxu0 %v2184_v36  ;;  %v2491_v37 = vpop.permute.xlu0 %2490  ;;  %v2493_v38 = vpop.permute.xlu1 %2492  ;;  %18309 = vmatprep.mubr.msk.f32.mxu1 %vm18933_vm2, %v18922_v0 }
  0xda   : > { %v2504_v39 = vsel %vm2502_vm8, %v2491_v37, %v2493_v38  ;;  %17929 = vmatmul.mubr.msk.f32.vlgmr.msra.gmra.mrb[2].mxu0 %vm298_vm1, %v17926_v28  ;;  %18310 = vmatmul.mubr.msk.f32.vlgmr.msra.gmra.mrb[14].mxu1 %vm298_vm1, %v17926_v28  ;;  %v17946_v28 = vld [vmem:[%s21518_s1 + $0x50] sm:$0xff] }
  0xdb   : > { %5090 = vrot.lane.b32.xlu0 %v19009_v1, %s18938_s12  ;;  %5092 = vrot.lane.b32.xlu1 %v19019_v3, %s18938_s12 }
  0xdc   : > { %2519 = vmatprep.subr.mxu0 %v2504_v39  ;;  %2654 = vmatprep.mubr.f32.mxu1 %v18922_v0 }
  0xdd   : > { %v2489_v40 = vpop.permute.xlu0 %2488  ;;  %v2495_v41 = vpop.permute.xlu1 %2494  ;;  %2583 = vmatprep.mubr.f32.mxu0 %v18922_v0 }
  0xde   : > { %v2503_v42 = vsel %vm2502_vm8, %v2489_v40, %v2491_v37  ;;  %v2505_v48 = vsel %vm2502_vm8, %v2493_v38, %v2495_v41 }
  0xdf   : > { %5088 = vrot.lane.b32.xlu0 %v19012_v2, %s18938_s12  ;;  %5094 = vrot.lane.b32.xlu1 %v19022_v4, %s18938_s12 }
  0xe0   : > { %2520 = vmatpush1.msra.mxu0 %v2503_v42 }
  0xe1   : > { %v2497_v44 = vpop.permute.xlu0 %2496  ;;  %v2499_v45 = vpop.permute.xlu1 %2498  ;;  %17932 = vmatmul.mubr.msk.f32.vlgmr.msra.gmra.mrb[0].mxu0 %vm298_vm1, %v17931_v43 }
  0xe2   : > { %v2506_v46 = vsel %vm2502_vm8, %v2495_v41, %v2497_v44  ;;  %2725 = vmatprep.mubr.f32.mxu0 %v18922_v0  ;;  %v2507_v52 = vsel %vm2502_vm8, %v2497_v44, %v2499_v45 }
  0xe3   : > { %5096 = vrot.lane.b32.xlu0 %v19029_v5, %s18938_s12  ;;  %5098 = vrot.lane.b32.xlu1 %v19032_v6, %s18938_s12 }
  0xe4   : > { %2590 = vmatprep.subr.mxu1 %v2506_v46 }
  0xe5   : > { %2591 = vmatpush1.msra.mxu1 %v2505_v48  ;;  %v2501_v49 = vpop.permute.xlu0 %2500  ;;  %v2814_v50 = vpop.permute.xlu1 %2813 }
  0xe6   : > { %18312 = vmatprep.subr.mxu1 %v18922_v0  ;;  %17933 = vmatmul.mubr.msk.f32.vlgmr.msra.gmra.mrb[0].mxu1 %vm298_vm1, %v17931_v43  ;;  %v2508_v51 = vsel %vm2502_vm8, %v2499_v45, %v2501_v49 }
  0xe7   : > { %5100 = vrot.lane.b32.xlu0 %v19039_v7, %s18938_s12  ;;  %5102 = vrot.lane.b32.xlu1 %v19380_v47, %s18938_s12 }
  0xe8   : > { %18313 = vmatpush3.msra.mxu1 %v2501_v49  ;;  %2661 = vmatprep.subr.mxu0 %v2508_v51  ;;  %v19527_v49 = vld [vmem:[#allocation2 + $0x38] sm:$0xff]  ;;  %v19536_v51 = vld [vmem:[%s19003_s26 + $0x10] sm:$0xff] }
  0xe9   : > { %2662 = vmatpush1.msra.mxu0 %v2507_v52  ;;  %v2816_v53 = vpop.permute.xlu0 %2815  ;;  %v2812_v54 = vpop.permute.xlu1 %2811  ;;  %18314 = vmatprep.mubr.msk.f32.mxu1 %vm18933_vm2, %v18922_v0  ;;  %v17956_v52 = vld [vmem:[%s21518_s1 + $0x60] sm:$0xff] }
  0xea   : > { %v2826_v55 = vsel %vm2825_vm9, %v2812_v54, %v2814_v50  ;;  %v2827_v56 = vsel %vm2825_vm9, %v2814_v50, %v2816_v53  ;;  %17934 = vmatmul.mubr.msk.f32.vlgmr.msra.gmra.mrb[2].mxu0 %vm298_vm1, %v17931_v43  ;;  %18315 = vmatmul.mubr.msk.f32.vlgmr.msra.gmra.mrb[16].mxu1 %vm298_vm1, %v17931_v43  ;;  %v17951_v43 = vld [vmem:[%s21518_s1 + $0x58] sm:$0xff] }
  0xeb   : > { %5415 = vrot.lane.b32.xlu0 %v19009_v1, %s18939_s18  ;;  %5417 = vrot.lane.b32.xlu1 %v19019_v3, %s18939_s18 }
  0xec   : > { %2842 = vmatprep.subr.mxu0 %v2827_v56  ;;  %2906 = vmatprep.mubr.f32.mxu0 %v18922_v0 }
  0xed   : > { %2843 = vmatpush1.msra.mxu0 %v2826_v55  ;;  %v2818_v58 = vpop.permute.xlu0 %2817  ;;  %v2820_v59 = vpop.permute.xlu1 %2819  ;;  %2977 = vmatprep.mubr.f32.mxu1 %v18922_v0 }
  0xee   : > { %v2829_v60 = vsel %vm2825_vm9, %v2818_v58, %v2820_v59  ;;  %v2828_v61 = vsel %vm2825_vm9, %v2816_v53, %v2818_v58  ;;  %17937 = vmatmul.mubr.msk.f32.vlgmr.msra.gmra.mrb[0].mxu0 %vm298_vm1, %v17936_v57  ;;  %v19544_v53 = vld [vmem:[%s19003_s26 + $0x18] sm:$0xff]  ;;  %v19554_v58 = vld [vmem:[%s19003_s26 + $0x8] sm:$0xff] }
  0xef   : > { %5413 = vrot.lane.b32.xlu0 %v19012_v2, %s18939_s18  ;;  %5419 = vrot.lane.b32.xlu1 %v19022_v4, %s18939_s18 }
  0xf0   : > { %2913 = vmatprep.subr.mxu1 %v2829_v60  ;;  %3048 = vmatprep.mubr.f32.mxu0 %v18922_v0 }
  0xf1   : > { %2914 = vmatpush1.msra.mxu1 %v2828_v61  ;;  %v2822_v62 = vpop.permute.xlu0 %2821  ;;  %v2824_v63 = vpop.permute.xlu1 %2823 }
  0xf2   : > { %v2831_v8 = vsel %vm2825_vm9, %v2822_v62, %v2824_v63  ;;  %v2830_v9 = vsel %vm2825_vm9, %v2820_v59, %v2822_v62  ;;  %18317 = vmatprep.subr.mxu1 %v18922_v0  ;;  %17938 = vmatmul.mubr.msk.f32.vlgmr.msra.gmra.mrb[0].mxu1 %vm298_vm1, %v17936_v57  ;;  %v19559_v59 = vld [vmem:[%s19003_s26 + $0x20] sm:$0xff] }
  0xf3   : > { %5421 = vrot.lane.b32.xlu0 %v19029_v5, %s18939_s18  ;;  %5423 = vrot.lane.b32.xlu1 %v19032_v6, %s18939_s18 }
  0xf4   : > { %2984 = vmatprep.subr.mxu0 %v2831_v8  ;;  %18318 = vmatpush3.msra.mxu1 %v2824_v63  ;;  %v19569_v8 = vld [vmem:[%s19003_s26 + $0x28] sm:$0xff] }
  0xf5   : > { %2985 = vmatpush1.msra.mxu0 %v2830_v9  ;;  %v3137_v10 = vpop.permute.xlu0 %3136  ;;  %v3139_v11 = vpop.permute.xlu1 %3138  ;;  %18319 = vmatprep.mubr.msk.f32.mxu1 %vm18933_vm2, %v18922_v0  ;;  %v19574_v9 = vld [vmem:[%s19003_s26 + $0x30] sm:$0xff]  ;;  %s21527_s26 = smov 46  }
  0xf6   : > { %v3150_v12 = vsel %vm3148_vm10, %v3137_v10, %v3139_v11  ;;  %17939 = vmatmul.mubr.msk.f32.vlgmr.msra.gmra.mrb[2].mxu0 %vm298_vm1, %v17936_v57  ;;  %18320 = vmatmul.mubr.msk.f32.vlgmr.msra.gmra.mrb[18].mxu1 %vm298_vm1, %v17936_v57 }
  0xf7   : > { %5425 = vrot.lane.b32.xlu0 %v19039_v7, %s18939_s18  ;;  %5427 = vrot.lane.b32.xlu1 %v19380_v47, %s18939_s18 }
  0xf8   : > { %3165 = vmatprep.subr.mxu0 %v3150_v12  ;;  %3300 = vmatprep.mubr.f32.mxu1 %v18922_v0 }
  0xf9   : > { %v3135_v13 = vpop.permute.xlu0 %3134  ;;  %v3141_v14 = vpop.permute.xlu1 %3140  ;;  %3229 = vmatprep.mubr.f32.mxu0 %v18922_v0 }
  0xfa   : > { %v3149_v15 = vsel %vm3148_vm10, %v3135_v13, %v3137_v10  ;;  %v3151_v20 = vsel %vm3148_vm10, %v3139_v11, %v3141_v14 }
  0xfb   : > { %5741 = vrot.lane.b32.xlu0 %v19009_v1, %s18940_s13  ;;  %5743 = vrot.lane.b32.xlu1 %v19019_v3, %s18940_s13 }
  0xfc   : > { %3166 = vmatpush1.msra.mxu0 %v3149_v15 }
  0xfd   : > { %v3143_v17 = vpop.permute.xlu0 %3142  ;;  %17942 = vmatmul.mubr.msk.f32.vlgmr.msra.gmra.mrb[0].mxu0 %vm298_vm1, %v17941_v16 }
  0xfe   : > { %v3145_v18 = vpop.permute.xlu1 %3144  ;;  %v3152_v19 = vsel %vm3148_vm10, %v3141_v14, %v3143_v17  ;;  %3371 = vmatprep.mubr.f32.mxu0 %v18922_v0 }
  0xff   : > { %5739 = vrot.lane.b32.xlu0 %v19012_v2, %s18940_s13  ;;  %5745 = vrot.lane.b32.xlu1 %v19022_v4, %s18940_s13  ;;  %v3153_v2 = vsel %vm3148_vm10, %v3143_v17, %v3145_v18 }
 0x100   : > { %3236 = vmatprep.subr.mxu1 %v3152_v19 }
 0x101   : > { %3237 = vmatpush1.msra.mxu1 %v3151_v20  ;;  %v3147_v21 = vpop.permute.xlu0 %3146 }
 0x102   : > { %18322 = vmatprep.subr.mxu1 %v18922_v0  ;;  %v3460_v22 = vpop.permute.xlu1 %3459  ;;  %17943 = vmatmul.mubr.msk.f32.vlgmr.msra.gmra.mrb[0].mxu1 %vm298_vm1, %v17941_v16  ;;  %v3154_v23 = vsel %vm3148_vm10, %v3145_v18, %v3147_v21 }
 0x103   : > { %5747 = vrot.lane.b32.xlu0 %v19029_v5, %s18940_s13  ;;  %5749 = vrot.lane.b32.xlu1 %v19032_v6, %s18940_s13 }
 0x104   : > { %18323 = vmatpush3.msra.mxu1 %v3147_v21  ;;  %3307 = vmatprep.subr.mxu0 %v3154_v23 }
 0x105   : > { %3308 = vmatpush1.msra.mxu0 %v3153_v2  ;;  %v3462_v24 = vpop.permute.xlu0 %3461  ;;  %18324 = vmatprep.mubr.msk.f32.mxu1 %vm18933_vm2, %v18922_v0 }
 0x106   : > { %v3458_v25 = vpop.permute.xlu1 %3457  ;;  %v3473_v26 = vsel %vm21541_vm11, %v3460_v22, %v3462_v24  ;;  %17944 = vmatmul.mubr.msk.f32.vlgmr.msra.gmra.mrb[2].mxu0 %vm298_vm1, %v17941_v16  ;;  %18325 = vmatmul.mubr.msk.f32.vlgmr.msra.gmra.mrb[20].mxu1 %vm298_vm1, %v17941_v16  ;;  %v17961_v16 = vld [vmem:[%s21518_s1 + $0x68] sm:$0xff] }
 0x107   : > { %5751 = vrot.lane.b32.xlu0 %v19039_v7, %s18940_s13  ;;  %5753 = vrot.lane.b32.xlu1 %v19380_v47, %s18940_s13  ;;  %v3472_v27 = vsel %vm21541_vm11, %v3458_v25, %v3460_v22 }
 0x108   : > { %3488 = vmatprep.subr.mxu0 %v3473_v26  ;;  %3552 = vmatprep.mubr.f32.mxu0 %v18922_v0 }
 0x109   : > { %3489 = vmatpush1.msra.mxu0 %v3472_v27  ;;  %v3464_v29 = vpop.permute.xlu0 %3463  ;;  %3623 = vmatprep.mubr.f32.mxu1 %v18922_v0 }
 0x10a   : > { %v3466_v30 = vpop.permute.xlu1 %3465  ;;  %v3474_v31 = vsel %vm21541_vm11, %v3462_v24, %v3464_v29  ;;  %17947 = vmatmul.mubr.msk.f32.vlgmr.msra.gmra.mrb[0].mxu0 %vm298_vm1, %v17946_v28 }
 0x10b   : > { %6067 = vrot.lane.b32.xlu0 %v19019_v3, %s18941_s20  ;;  %6069 = vrot.lane.b32.xlu1 %v19022_v4, %s18941_s20  ;;  %v3475_v32 = vsel %vm21541_vm11, %v3464_v29, %v3466_v30 }
 0x10c   : > { %3559 = vmatprep.subr.mxu1 %v3475_v32  ;;  %3694 = vmatprep.mubr.f32.mxu0 %v18922_v0 }
 0x10d   : > { %3560 = vmatpush1.msra.mxu1 %v3474_v31 }
 0x10e   : > { %18327 = vmatprep.subr.mxu1 %v18922_v0  ;;  %17948 = vmatmul.mubr.msk.f32.vlgmr.msra.gmra.mrb[0].mxu1 %vm298_vm1, %v17946_v28 }
 0x10f   : > { %6065 = vrot.lane.b32.xlu0 %v19009_v1, %s18941_s20  ;;  %6071 = vrot.lane.b32.xlu1 %v19029_v5, %s18941_s20  ;;  %v3468_v33 = vpop.permute.xlu0 %3467 }
 0x110   : > { %v3470_v34 = vpop.permute.xlu1 %3469  ;;  %18329 = vmatprep.mubr.msk.f32.mxu1 %vm18933_vm2, %v18922_v0  ;;  %v3476_v36 = vsel %vm21541_vm11, %v3466_v30, %v3468_v33 }
 0x111   : > { %v3477_v35 = vsel %vm21541_vm11, %v3468_v33, %v3470_v34  ;;  %18328 = vmatpush3.msra.mxu1 %v3470_v34  ;;  %vm21543_vm11 = vcmask 441344  }
 0x112   : > { %3630 = vmatprep.subr.mxu0 %v3477_v35  ;;  %18330 = vmatmul.mubr.msk.f32.vlgmr.msra.gmra.mrb[22].mxu1 %vm298_vm1, %v17946_v28 }
 0x113   : > { %6073 = vrot.lane.b32.xlu0 %v19032_v6, %s18941_s20  ;;  %6075 = vrot.lane.b32.xlu1 %v19039_v7, %s18941_s20 }
 0x114   : > { %3631 = vmatpush1.msra.mxu0 %v3476_v36  ;;  %v3783_v37 = vpop.permute.xlu0 %3782  ;;  %v3785_v38 = vpop.permute.xlu1 %3784  ;;  %3946 = vmatprep.mubr.f32.mxu1 %v18922_v0 }
 0x115   : > { %v3796_v39 = vsel %vm21540_vm12, %v3783_v37, %v3785_v38  ;;  %17949 = vmatmul.mubr.msk.f32.vlgmr.msra.gmra.mrb[2].mxu0 %vm298_vm1, %v17946_v28  ;;  %v17966_v28 = vld [vmem:[%s21518_s1 + $0x70] sm:$0xff] }
 0x116   : > { %3811 = vmatprep.subr.mxu0 %v3796_v39  ;;  %3875 = vmatprep.mubr.f32.mxu0 %v18922_v0 }
 0x117   : > { %6077 = vrot.lane.b32.xlu0 %v19380_v47, %s18941_s20  ;;  %6390 = vrot.lane.b32.xlu1 %v19019_v3, %s21525_s24 }
 0x119   : > { %v3781_v40 = vpop.permute.xlu0 %3780  ;;  %v3787_v41 = vpop.permute.xlu1 %3786 }
 0x11a   : > { %v3795_v42 = vsel %vm21540_vm12, %v3781_v40, %v3783_v37 }
 0x11b   : > { %6392 = vrot.lane.b32.xlu0 %v19022_v4, %s21525_s24  ;;  %6388 = vrot.lane.b32.xlu1 %v19009_v1, %s21525_s24  ;;  %v3797_v1 = vsel %vm21540_vm12, %v3785_v38, %v3787_v41 }
 0x11c   : > { %3812 = vmatpush1.msra.mxu0 %v3795_v42  ;;  %v17971_v42 = vld [vmem:[%s21518_s1 + $0x78] sm:$0xff] }
 0x11d   : > { %v3789_v44 = vpop.permute.xlu0 %3788  ;;  %v3791_v45 = vpop.permute.xlu1 %3790  ;;  %17952 = vmatmul.mubr.msk.f32.vlgmr.msra.gmra.mrb[0].mxu0 %vm298_vm1, %v17951_v43 }
 0x11e   : > { %v3798_v3 = vsel %vm21540_vm12, %v3787_v41, %v3789_v44  ;;  %4017 = vmatprep.mubr.f32.mxu0 %v18922_v0 }
 0x11f   : > { %6394 = vrot.lane.b32.xlu0 %v19029_v5, %s21525_s24  ;;  %6396 = vrot.lane.b32.xlu1 %v19032_v6, %s21525_s24  ;;  %v3799_v5 = vsel %vm21540_vm12, %v3789_v44, %v3791_v45 }
 0x120   : > { %3882 = vmatprep.subr.mxu1 %v3798_v3 }
 0x121   : > { %3883 = vmatpush1.msra.mxu1 %v3797_v1  ;;  %v3793_v4 = vpop.permute.xlu0 %3792  ;;  %v4106_v46 = vpop.permute.xlu1 %4105 }
 0x122   : > { %18332 = vmatprep.subr.mxu1 %v18922_v0  ;;  %17953 = vmatmul.mubr.msk.f32.vlgmr.msra.gmra.mrb[0].mxu1 %vm298_vm1, %v17951_v43  ;;  %v3800_v48 = vsel %vm21540_vm12, %v3791_v45, %v3793_v4  ;;  %vm21542_vm12 = vcmask 449536  }
 0x123   : > { %18333 = vmatpush3.msra.mxu1 %v3793_v4  ;;  %6398 = vrot.lane.b32.xlu0 %v19039_v7, %s21525_s24 }
 0x124   : > { %6400 = vrot.lane.b32.xlu1 %v19380_v47, %s21525_s24  ;;  %3953 = vmatprep.subr.mxu0 %v3800_v48  ;;  %s21532_s24 = smov 44  }
 0x125   : > { %3954 = vmatpush1.msra.mxu0 %v3799_v5  ;;  %v4108_v6 = vpop.permute.xlu0 %4107  ;;  %v4104_v0 = vpop.permute.xlu1 %4103  ;;  %18334 = vmatprep.mubr.msk.f32.mxu1 %vm18933_vm2, %v19527_v49 }
 0x126   : > { %v4118_v50 = vsel %vm21537_vm13, %v4104_v0, %v4106_v46  ;;  %v4119_v7 = vsel %vm21537_vm13, %v4106_v46, %v4108_v6  ;;  %17954 = vmatmul.mubr.msk.f32.vlgmr.msra.gmra.mrb[2].mxu0 %vm298_vm1, %v17951_v43  ;;  %18335 = vmatmul.mubr.msk.f32.vlgmr.msra.gmra.mrb[24].mxu1 %vm298_vm1, %v17951_v43 }
 0x127   : > { %6713 = vrot.lane.b32.xlu0 %v19536_v51, %s21529_s23  ;;  %4134 = vmatprep.subr.mxu0 %v4119_v7 }
 0x128   : > { %6715 = vrot.lane.b32.xlu1 %v19544_v53, %s21529_s23  ;;  %4135 = vmatpush1.msra.mxu0 %v4118_v50 }
 0x129   : > { %v4110_v54 = vpop.permute.xlu0 %4109  ;;  %v4112_v55 = vpop.permute.xlu1 %4111  ;;  %4198 = vmatprep.mubr.f32.mxu0 %v19527_v49  ;;  %4269 = vmatprep.mubr.f32.mxu1 %v19527_v49 }
 0x12a   : > { %v4121_v56 = vsel %vm21537_vm13, %v4110_v54, %v4112_v55  ;;  %v4120_v57 = vsel %vm21537_vm13, %v4108_v6, %v4110_v54  ;;  %17957 = vmatmul.mubr.msk.f32.vlgmr.msra.gmra.mrb[0].mxu0 %vm298_vm1, %v17956_v52 }
 0x12b   : > { %6711 = vrot.lane.b32.xlu0 %v19554_v58, %s21529_s23  ;;  %4205 = vmatprep.subr.mxu1 %v4121_v56  ;;  %v17976_v56 = vld [vmem:[%s21518_s1 + $0x80] sm:$0xff] }
 0x12c   : > { %6717 = vrot.lane.b32.xlu1 %v19559_v59, %s21529_s23  ;;  %4206 = vmatpush1.msra.mxu1 %v4120_v57 }
 0x12d   : > { %v4114_v60 = vpop.permute.xlu0 %4113  ;;  %v4116_v61 = vpop.permute.xlu1 %4115  ;;  %18337 = vmatprep.subr.mxu1 %v19527_v49  ;;  %17958 = vmatmul.mubr.msk.f32.vlgmr.msra.gmra.mrb[0].mxu1 %vm298_vm1, %v17956_v52 }
 0x12e   : > { %v4123_v62 = vsel %vm21537_vm13, %v4114_v60, %v4116_v61  ;;  %v4122_v63 = vsel %vm21537_vm13, %v4112_v55, %v4114_v60  ;;  %18338 = vmatpush3.msra.mxu1 %v4116_v61  ;;  %4340 = vmatprep.mubr.f32.mxu0 %v19527_v49  ;;  %vm6079_vm13 = vcmask 457728  }
 0x12f   : > { %6719 = vrot.lane.b32.xlu0 %v19569_v8, %s21529_s23  ;;  %4276 = vmatprep.subr.mxu0 %v4123_v62 }
 0x130   : > { %6721 = vrot.lane.b32.xlu1 %v19574_v9, %s21529_s23  ;;  %4277 = vmatpush1.msra.mxu0 %v4122_v63 }
 0x131   : > { %v4429_v10 = vpop.permute.xlu0 %4428  ;;  %v4431_v11 = vpop.permute.xlu1 %4430  ;;  %17959 = vmatmul.mubr.msk.f32.vlgmr.msra.gmra.mrb[2].mxu0 %vm298_vm1, %v17956_v52  ;;  %18339 = vmatprep.mubr.msk.f32.mxu1 %vm18933_vm2, %v19527_v49 }
 0x132   : > { %v4442_v12 = vsel %vm21534_vm14, %v4429_v10, %v4431_v11  ;;  %18340 = vmatmul.mubr.msk.f32.vlgmr.msra.gmra.mrb[26].mxu1 %vm298_vm1, %v17956_v52  ;;  %4521 = vmatprep.mubr.f32.mxu0 %v19527_v49 }
 0x133   : > { %6723 = vrot.lane.b32.xlu0 %v19380_v47, %s21529_s23  ;;  %4457 = vmatprep.subr.mxu0 %v4442_v12  ;;  %s21535_s23 = smov 36  }
 0x134   : > { %7036 = vrot.lane.b32.xlu1 %v19536_v51, %s21527_s26  ;;  %4592 = vmatprep.mubr.f32.mxu1 %v19527_v49 }
 0x135   : > { %v4427_v13 = vpop.permute.xlu0 %4426  ;;  %v4433_v14 = vpop.permute.xlu1 %4432 }
 0x136   : > { %v4441_v15 = vsel %vm21534_vm14, %v4427_v13, %v4429_v10  ;;  %v4443_v20 = vsel %vm21534_vm14, %v4431_v11, %v4433_v14 }
 0x137   : > { %7038 = vrot.lane.b32.xlu0 %v19544_v53, %s21527_s26  ;;  %4458 = vmatpush1.msra.mxu0 %v4441_v15 }
 0x138   : > { %7034 = vrot.lane.b32.xlu1 %v19554_v58, %s21527_s26  ;;  %17962 = vmatmul.mubr.msk.f32.vlgmr.msra.gmra.mrb[0].mxu0 %vm298_vm1, %v17961_v16 }
 0x139   : > { %v4435_v17 = vpop.permute.xlu0 %4434  ;;  %v4437_v18 = vpop.permute.xlu1 %4436  ;;  %4663 = vmatprep.mubr.f32.mxu0 %v19527_v49 }
 0x13a   : > { %v4444_v19 = vsel %vm21534_vm14, %v4433_v14, %v4435_v17  ;;  %v4445_v2 = vsel %vm21534_vm14, %v4435_v17, %v4437_v18 }
 0x13b   : > { %7040 = vrot.lane.b32.xlu0 %v19559_v59, %s21527_s26  ;;  %4528 = vmatprep.subr.mxu1 %v4444_v19 }
 0x13c   : > { %7042 = vrot.lane.b32.xlu1 %v19569_v8, %s21527_s26  ;;  %4529 = vmatpush1.msra.mxu1 %v4443_v20  ;;  %v17981_v20 = vld [vmem:[%s21518_s1 + $0x88] sm:$0xff] }
 0x13d   : > { %v4439_v21 = vpop.permute.xlu0 %4438  ;;  %18342 = vmatprep.subr.mxu1 %v19527_v49  ;;  %v4752_v22 = vpop.permute.xlu1 %4751  ;;  %17963 = vmatmul.mubr.msk.f32.vlgmr.msra.gmra.mrb[0].mxu1 %vm298_vm1, %v17961_v16 }
 0x13e   : > { %18343 = vmatpush3.msra.mxu1 %v4439_v21  ;;  %v4446_v23 = vsel %vm21534_vm14, %v4437_v18, %v4439_v21  ;;  %18344 = vmatprep.mubr.msk.f32.mxu1 %vm18933_vm2, %v19527_v49  ;;  %vm5755_vm14 = vcmask 48128  }
 0x13f   : > { %7044 = vrot.lane.b32.xlu0 %v19574_v9, %s21527_s26  ;;  %4599 = vmatprep.subr.mxu0 %v4446_v23 }
 0x140   : > { %7046 = vrot.lane.b32.xlu1 %v19380_v47, %s21527_s26  ;;  %4600 = vmatpush1.msra.mxu0 %v4445_v2  ;;  %s18945_s26 = smov 45  }
 0x141   : > { %v4754_v24 = vpop.permute.xlu0 %4753  ;;  %v4750_v25 = vpop.permute.xlu1 %4749  ;;  %17964 = vmatmul.mubr.msk.f32.vlgmr.msra.gmra.mrb[2].mxu0 %vm298_vm1, %v17961_v16  ;;  %18345 = vmatmul.mubr.msk.f32.vlgmr.msra.gmra.mrb[28].mxu1 %vm298_vm1, %v17961_v16 }
 0x142   : > { %v4764_v26 = vsel %vm21531_vm15, %v4750_v25, %v4752_v22  ;;  %v4765_v27 = vsel %vm21531_vm15, %v4752_v22, %v4754_v24  ;;  %4844 = vmatprep.mubr.f32.mxu0 %v19527_v49  ;;  %4915 = vmatprep.mubr.f32.mxu1 %v19527_v49 }
 0x143   : > { %7359 = vrot.lane.b32.xlu0 %v19536_v51, %s18945_s26  ;;  %4780 = vmatprep.subr.mxu0 %v4765_v27 }
 0x144   : > { %7361 = vrot.lane.b32.xlu1 %v19544_v53, %s18945_s26  ;;  %4781 = vmatpush1.msra.mxu0 %v4764_v26 }
 0x145   : > { %v4756_v29 = vpop.permute.xlu0 %4755  ;;  %v4758_v30 = vpop.permute.xlu1 %4757  ;;  %17967 = vmatmul.mubr.msk.f32.vlgmr.msra.gmra.mrb[0].mxu0 %vm298_vm1, %v17966_v28 }
 0x146   : > { %v4767_v31 = vsel %vm21531_vm15, %v4756_v29, %v4758_v30  ;;  %v4766_v32 = vsel %vm21531_vm15, %v4754_v24, %v4756_v29  ;;  %4986 = vmatprep.mubr.f32.mxu0 %v19527_v49 }
 0x147   : > { %7357 = vrot.lane.b32.xlu0 %v19554_v58, %s18945_s26  ;;  %4851 = vmatprep.subr.mxu1 %v4767_v31 }
 0x148   : > { %7363 = vrot.lane.b32.xlu1 %v19559_v59, %s18945_s26  ;;  %4852 = vmatpush1.msra.mxu1 %v4766_v32 }
 0x149   : > { %v4760_v33 = vpop.permute.xlu0 %4759  ;;  %v4762_v34 = vpop.permute.xlu1 %4761  ;;  %18347 = vmatprep.subr.mxu1 %v19527_v49  ;;  %17968 = vmatmul.mubr.msk.f32.vlgmr.msra.gmra.mrb[0].mxu1 %vm298_vm1, %v17966_v28 }
 0x14a   : > { %v4769_v35 = vsel %vm21531_vm15, %v4760_v33, %v4762_v34  ;;  %v4768_v36 = vsel %vm21531_vm15, %v4758_v30, %v4760_v33  ;;  %18348 = vmatpush3.msra.mxu1 %v4762_v34  ;;  %18349 = vmatprep.mubr.msk.f32.mxu1 %vm18933_vm2, %v19527_v49  ;;  %vm5429_vm15 = vcmask 56320  }
 0x14b   : > { %7365 = vrot.lane.b32.xlu0 %v19569_v8, %s18945_s26  ;;  %4922 = vmatprep.subr.mxu0 %v4769_v35 }
 0x14c   : > { %7367 = vrot.lane.b32.xlu1 %v19574_v9, %s18945_s26  ;;  %4923 = vmatpush1.msra.mxu0 %v4768_v36 }
 0x14d   : > { %v5091_v37 = vpop.permute.xlu0 %5090  ;;  %v5093_v38 = vpop.permute.xlu1 %5092  ;;  %17969 = vmatmul.mubr.msk.f32.vlgmr.msra.gmra.mrb[2].mxu0 %vm298_vm1, %v17966_v28  ;;  %18350 = vmatmul.mubr.msk.f32.vlgmr.msra.gmra.mrb[30].mxu1 %vm298_vm1, %v17966_v28 }
 0x14e   : > { %v5105_v39 = vsel %vm298_vm1, %v5091_v37, %v5093_v38  ;;  %5256 = vmatprep.mubr.f32.mxu1 %v19527_v49  ;;  %5185 = vmatprep.mubr.f32.mxu0 %v19527_v49 }
 0x14f   : > { %7369 = vrot.lane.b32.xlu0 %v19380_v47, %s18945_s26  ;;  %5121 = vmatprep.subr.mxu0 %v5105_v39 }
 0x150   : > { %7682 = vrot.lane.b32.xlu1 %v19536_v51, %s21532_s24 }
 0x151   : > { %v5089_v40 = vpop.permute.xlu0 %5088  ;;  %v5095_v41 = vpop.permute.xlu1 %5094 }
 0x152   : > { %v5104_v43 = vsel %vm298_vm1, %v5089_v40, %v5091_v37  ;;  %v5106_v1 = vsel %vm298_vm1, %v5093_v38, %v5095_v41 }
 0x153   : > { %7684 = vrot.lane.b32.xlu0 %v19544_v53, %s21532_s24  ;;  %5122 = vmatpush1.msra.mxu0 %v5104_v43 }
 0x154   : > { %7680 = vrot.lane.b32.xlu1 %v19554_v58, %s21532_s24  ;;  %17972 = vmatmul.mubr.msk.f32.vlgmr.msra.gmra.mrb[0].mxu0 %vm298_vm1, %v17971_v42 }
 0x155   : > { %v5097_v44 = vpop.permute.xlu0 %5096  ;;  %v5099_v45 = vpop.permute.xlu1 %5098  ;;  %5327 = vmatprep.mubr.f32.mxu0 %v19527_v49 }
 0x156   : > { %v5107_v3 = vsel %vm298_vm1, %v5095_v41, %v5097_v44  ;;  %v5108_v6 = vsel %vm298_vm1, %v5097_v44, %v5099_v45 }
 0x157   : > { %7686 = vrot.lane.b32.xlu0 %v19559_v59, %s21532_s24  ;;  %5192 = vmatprep.subr.mxu1 %v5107_v3 }
 0x158   : > { %7688 = vrot.lane.b32.xlu1 %v19569_v8, %s21532_s24  ;;  %5193 = vmatpush1.msra.mxu1 %v5106_v1 }
 0x159   : > { %v5101_v4 = vpop.permute.xlu0 %5100  ;;  %17973 = vmatmul.mubr.msk.f32.vlgmr.msra.gmra.mrb[0].mxu1 %vm298_vm1, %v17971_v42  ;;  %v5103_v46 = vpop.permute.xlu1 %5102  ;;  %18352 = vmatprep.subr.mxu1 %v19527_v49 }
 0x15a   : > { %v5110_v48 = vsel %vm298_vm1, %v5101_v4, %v5103_v46  ;;  %v5109_v5 = vsel %vm298_vm1, %v5099_v45, %v5101_v4  ;;  %18354 = vmatprep.mubr.msk.f32.mxu1 %vm18933_vm2, %v19527_v49 }
 0x15b   : > { %7690 = vrot.lane.b32.xlu0 %v19574_v9, %s21532_s24  ;;  %5263 = vmatprep.subr.mxu0 %v5109_v5 }
 0x15c   : > { %7692 = vrot.lane.b32.xlu1 %v19380_v47, %s21532_s24  ;;  %18353 = vmatpush3.msra.mxu1 %v5110_v48  ;;  %s21538_s24 = smov 35  }
 0x15d   : > { %5264 = vmatpush1.msra.mxu0 %v5108_v6  ;;  %v5416_v0 = vpop.permute.xlu0 %5415  ;;  %18355 = vmatmul.mubr.msk.f32.vlgmr.msra.gmra.mrb[32].mxu1 %vm298_vm1, %v17971_v42  ;;  %v5418_v50 = vpop.permute.xlu1 %5417  ;;  %v17991_v6 = vld [vmem:[%s21518_s1 + $0x98] sm:$0xff] }
 0x15e   : > { %v5431_v7 = vsel %vm5429_vm15, %v5416_v0, %v5418_v50  ;;  %17974 = vmatmul.mubr.msk.f32.vlgmr.msra.gmra.mrb[2].mxu0 %vm298_vm1, %v17971_v42  ;;  %5582 = vmatprep.mubr.f32.mxu1 %v19527_v49 }
 0x15f   : > { %8005 = vrot.lane.b32.xlu0 %v19536_v51, %s21535_s23  ;;  %5447 = vmatprep.subr.mxu0 %v5431_v7 }
 0x160   : > { %8007 = vrot.lane.b32.xlu1 %v19544_v53, %s21535_s23  ;;  %5511 = vmatprep.mubr.f32.mxu0 %v19527_v49 }
 0x161   : > { %v5414_v52 = vpop.permute.xlu0 %5413  ;;  %v5420_v54 = vpop.permute.xlu1 %5419 }
 0x162   : > { %v5430_v55 = vsel %vm5429_vm15, %v5414_v52, %v5416_v0  ;;  %v5432_v62 = vsel %vm5429_vm15, %v5418_v50, %v5420_v54 }
 0x163   : > { %8003 = vrot.lane.b32.xlu0 %v19554_v58, %s21535_s23  ;;  %5448 = vmatpush1.msra.mxu0 %v5430_v55 }
 0x164   : > { %8009 = vrot.lane.b32.xlu1 %v19559_v59, %s21535_s23  ;;  %17977 = vmatmul.mubr.msk.f32.vlgmr.msra.gmra.mrb[0].mxu0 %vm298_vm1, %v17976_v56 }
 0x165   : > { %v5422_v57 = vpop.permute.xlu0 %5421  ;;  %v5424_v60 = vpop.permute.xlu1 %5423  ;;  %5653 = vmatprep.mubr.f32.mxu0 %v19527_v49 }
 0x166   : > { %v5433_v61 = vsel %vm5429_vm15, %v5420_v54, %v5422_v57  ;;  %v5434_v13 = vsel %vm5429_vm15, %v5422_v57, %v5424_v60 }
 0x167   : > { %8011 = vrot.lane.b32.xlu0 %v19569_v8, %s21535_s23  ;;  %5518 = vmatprep.subr.mxu1 %v5433_v61 }
 0x168   : > { %8013 = vrot.lane.b32.xlu1 %v19574_v9, %s21535_s23  ;;  %5519 = vmatpush1.msra.mxu1 %v5432_v62 }
 0x169   : > { %v5426_v63 = vpop.permute.xlu0 %5425  ;;  %17978 = vmatmul.mubr.msk.f32.vlgmr.msra.gmra.mrb[0].mxu1 %vm298_vm1, %v17976_v56  ;;  %v5428_v10 = vpop.permute.xlu1 %5427  ;;  %18357 = vmatprep.subr.mxu1 %v19527_v49 }
 0x16a   : > { %v5436_v11 = vsel %vm5429_vm15, %v5426_v63, %v5428_v10  ;;  %v5435_v12 = vsel %vm5429_vm15, %v5424_v60, %v5426_v63  ;;  %18359 = vmatprep.mubr.msk.f32.mxu1 %vm18933_vm2, %v19527_v49 }
 0x16b   : > { %8015 = vrot.lane.b32.xlu0 %v19380_v47, %s21535_s23  ;;  %5589 = vmatprep.subr.mxu0 %v5435_v12  ;;  %s21549_s23 = smov 34  }
 0x16c   : > { %8328 = vrot.lane.b32.xlu1 %v19536_v51, %s21538_s24  ;;  %18358 = vmatpush3.msra.mxu1 %v5436_v11 }
 0x16d   : > { %5590 = vmatpush1.msra.mxu0 %v5434_v13  ;;  %v5742_v14 = vpop.permute.xlu0 %5741  ;;  %18360 = vmatmul.mubr.msk.f32.vlgmr.msra.gmra.mrb[34].mxu1 %vm298_vm1, %v17976_v56  ;;  %v5744_v15 = vpop.permute.xlu1 %5743 }
 0x16e   : > { %v5757_v16 = vsel %vm5755_vm14, %v5742_v14, %v5744_v15  ;;  %17979 = vmatmul.mubr.msk.f32.vlgmr.msra.gmra.mrb[2].mxu0 %vm298_vm1, %v17976_v56  ;;  %5908 = vmatprep.mubr.f32.mxu1 %v19527_v49 }
 0x16f   : > { %8330 = vrot.lane.b32.xlu0 %v19544_v53, %s21538_s24  ;;  %5773 = vmatprep.subr.mxu0 %v5757_v16 }
 0x170   : > { %8326 = vrot.lane.b32.xlu1 %v19554_v58, %s21538_s24  ;;  %5837 = vmatprep.mubr.f32.mxu0 %v19527_v49 }
 0x171   : > { %v5740_v17 = vpop.permute.xlu0 %5739  ;;  %v5746_v18 = vpop.permute.xlu1 %5745 }
 0x172   : > { %v5756_v19 = vsel %vm5755_vm14, %v5740_v17, %v5742_v14  ;;  %v5758_v2 = vsel %vm5755_vm14, %v5744_v15, %v5746_v18  ;;  %v17996_v15 = vld [vmem:[%s21518_s1 + $0xa0] sm:$0xff] }
 0x173   : > { %8332 = vrot.lane.b32.xlu0 %v19559_v59, %s21538_s24  ;;  %5774 = vmatpush1.msra.mxu0 %v5756_v19 }
 0x174   : > { %8334 = vrot.lane.b32.xlu1 %v19569_v8, %s21538_s24  ;;  %17982 = vmatmul.mubr.msk.f32.vlgmr.msra.gmra.mrb[0].mxu0 %vm298_vm1, %v17981_v20 }
 0x175   : > { %v5748_v21 = vpop.permute.xlu0 %5747  ;;  %v5750_v22 = vpop.permute.xlu1 %5749  ;;  %5979 = vmatprep.mubr.f32.mxu0 %v19527_v49 }
 0x176   : > { %v5759_v23 = vsel %vm5755_vm14, %v5746_v18, %v5748_v21  ;;  %v5760_v28 = vsel %vm5755_vm14, %v5748_v21, %v5750_v22 }
 0x177   : > { %8336 = vrot.lane.b32.xlu0 %v19574_v9, %s21538_s24  ;;  %5844 = vmatprep.subr.mxu1 %v5759_v23 }
 0x178   : > { %8338 = vrot.lane.b32.xlu1 %v19380_v47, %s21538_s24  ;;  %5845 = vmatpush1.msra.mxu1 %v5758_v2  ;;  %s21723_s24 = sshll.u32 %s21726_s22, 6 }
 0x179   : > { %v5752_v24 = vpop.permute.xlu0 %5751  ;;  %17983 = vmatmul.mubr.msk.f32.vlgmr.msra.gmra.mrb[0].mxu1 %vm298_vm1, %v17981_v20  ;;  %v5754_v25 = vpop.permute.xlu1 %5753  ;;  %18362 = vmatprep.subr.mxu1 %v19527_v49 }
 0x17a   : > { %v5762_v26 = vsel %vm5755_vm14, %v5752_v24, %v5754_v25  ;;  %v5761_v27 = vsel %vm5755_vm14, %v5750_v22, %v5752_v24  ;;  %18364 = vmatprep.mubr.msk.f32.mxu1 %vm18933_vm2, %v19527_v49 }
 0x17b   : > { %8651 = vrot.lane.b32.xlu0 %v19536_v51, %s21549_s23  ;;  %5915 = vmatprep.subr.mxu0 %v5761_v27  ;;  %v581_v51 = vpop.f32.mrb[2].mxu1 }
 0x17c   : > { %8653 = vrot.lane.b32.xlu1 %v19544_v53, %s21549_s23  ;;  %18363 = vmatpush3.msra.mxu1 %v5762_v26  ;;  %v18281_v53 = vpop.f32.mrb[3].mxu1 }
 0x17d   : > { %5916 = vmatpush1.msra.mxu0 %v5760_v28  ;;  %v6068_v29 = vpop.permute.xlu0 %6067  ;;  %18365 = vmatmul.mubr.msk.f32.vlgmr.msra.gmra.mrb[36].mxu1 %vm298_vm1, %v17981_v20  ;;  %v6070_v30 = vpop.permute.xlu1 %6069 }
 0x17e   : > { %v6081_v31 = vsel %vm6079_vm13, %v6068_v29, %v6070_v30  ;;  %17984 = vmatmul.mubr.msk.f32.vlgmr.msra.gmra.mrb[2].mxu0 %vm298_vm1, %v17981_v20  ;;  %6231 = vmatprep.mubr.f32.mxu1 %v19527_v49  ;;  %v867_v32 = vpop.f32.mrb[4].mxu1 }
 0x17f   : > { %8649 = vrot.lane.b32.xlu0 %v19554_v58, %s21549_s23  ;;  %6096 = vmatprep.subr.mxu0 %v6081_v31  ;;  %v868_v35 = vadd.f32 %v867_v32, %v581_v51  ;;  %v18286_v37 = vpop.f32.mrb[5].mxu1  ;;  %v17986_v58 = vld [vmem:[%s21518_s1 + $0x90] sm:$0xff] }
 0x180   : > { %8655 = vrot.lane.b32.xlu1 %v19559_v59, %s21549_s23  ;;  %6160 = vmatprep.mubr.f32.mxu0 %v19527_v49  ;;  %v1183_v38 = vpop.f32.mrb[6].mxu1 }
 0x181   : > { %v6066_v33 = vpop.permute.xlu0 %6065  ;;  %v6072_v34 = vpop.permute.xlu1 %6071  ;;  %v1193_v59 = vadd.f32 %v1183_v38, %v868_v35 }
 0x182   : > { %v6080_v36 = vsel %vm6079_vm13, %v6066_v33, %v6068_v29  ;;  %v18291_v39 = vpop.f32.mrb[7].mxu1 }
 0x183   : > { %8657 = vrot.lane.b32.xlu0 %v19569_v8, %s21549_s23  ;;  %6097 = vmatpush1.msra.mxu0 %v6080_v36  ;;  %v6082_v8 = vsel %vm6079_vm13, %v6070_v30, %v6072_v34  ;;  %v18001_v30 = vld [vmem:[%s21518_s1 + $0xa8] sm:$0xff] }
 0x184   : > { %8659 = vrot.lane.b32.xlu1 %v19574_v9, %s21549_s23  ;;  %17987 = vmatmul.mubr.msk.f32.vlgmr.msra.gmra.mrb[0].mxu0 %vm298_vm1, %v17986_v58 }
 0x185   : > { %v6074_v40 = vpop.permute.xlu0 %6073  ;;  %v6076_v41 = vpop.permute.xlu1 %6075  ;;  %6302 = vmatprep.mubr.f32.mxu0 %v19527_v49 }
 0x186   : > { %v6083_v42 = vsel %vm6079_vm13, %v6072_v34, %v6074_v40 }
 0x187   : > { %8661 = vrot.lane.b32.xlu0 %v19380_v47, %s21549_s23  ;;  %6167 = vmatprep.subr.mxu1 %v6083_v42  ;;  %v1506_v43 = vpop.f32.mrb[8].mxu1  ;;  %v6084_v47 = vsel %vm6079_vm13, %v6074_v40, %v6076_v41  ;;  %s18951_s23 = smov 111  }
 0x188   : > { %6168 = vmatpush1.msra.mxu1 %v6082_v8  ;;  %v1516_v44 = vadd.f32 %v1506_v43, %v1193_v59  ;;  %v18296_v9 = vpop.f32.mrb[9].mxu1  ;;  %v18006_v43 = vld [vmem:[%s21518_s1 + $0xb0] sm:$0xff] }
 0x189   : > { %v6078_v45 = vpop.permute.xlu0 %6077  ;;  %17988 = vmatmul.mubr.msk.f32.vlgmr.msra.gmra.mrb[0].mxu1 %vm298_vm1, %v17986_v58  ;;  %18367 = vmatprep.subr.mxu1 %v19527_v49  ;;  %v6391_v3 = vpop.permute.xlu1 %6390 }
 0x18a   : > { %18368 = vmatpush3.msra.mxu1 %v6078_v45  ;;  %v6085_v1 = vsel %vm6079_vm13, %v6076_v41, %v6078_v45  ;;  %18369 = vmatprep.mubr.msk.f32.mxu1 %vm18933_vm2, %v19527_v49 }
 0x18b   : > { %6238 = vmatprep.subr.mxu0 %v6085_v1 }
 0x18c   : > { %6239 = vmatpush1.msra.mxu0 %v6084_v47 }
 0x18d   : > { %v6393_v4 = vpop.permute.xlu0 %6392  ;;  %18370 = vmatmul.mubr.msk.f32.vlgmr.msra.gmra.mrb[38].mxu1 %vm298_vm1, %v17986_v58  ;;  %v6389_v46 = vpop.permute.xlu1 %6388  ;;  %17989 = vmatmul.mubr.msk.f32.vlgmr.msra.gmra.mrb[2].mxu0 %vm298_vm1, %v17986_v58 }
 0x18e   : > { %v6403_v48 = vsel %vm21542_vm12, %v6389_v46, %v6391_v3  ;;  %v6404_v5 = vsel %vm21542_vm12, %v6391_v3, %v6393_v4  ;;  %6554 = vmatprep.mubr.f32.mxu1 %v19527_v49  ;;  %6483 = vmatprep.mubr.f32.mxu0 %v19527_v49 }
 0x18f   : > { %6419 = vmatprep.subr.mxu0 %v6404_v5 }
 0x190   : > { %6420 = vmatpush1.msra.mxu0 %v6403_v48  ;;  %v8970_v48 = vld [vmem:[%s21519_s2] sm:$0xff] }
 0x191   : > { %v6395_v0 = vpop.permute.xlu0 %6394  ;;  %v6397_v50 = vpop.permute.xlu1 %6396  ;;  %17992 = vmatmul.mubr.msk.f32.vlgmr.msra.gmra.mrb[0].mxu0 %vm298_vm1, %v17991_v6 }
 0x192   : > { %v6406_v7 = vsel %vm21542_vm12, %v6395_v0, %v6397_v50  ;;  %v6405_v52 = vsel %vm21542_vm12, %v6393_v4, %v6395_v0  ;;  %6625 = vmatprep.mubr.f32.mxu0 %v19527_v49 }
 0x193   : > { %6490 = vmatprep.subr.mxu1 %v6406_v7  ;;  %v1829_v54 = vpop.f32.mrb[10].mxu1 }
 0x194   : > { %6491 = vmatpush1.msra.mxu1 %v6405_v52  ;;  %v1839_v55 = vadd.f32 %v1829_v54, %v1516_v44  ;;  %v18301_v56 = vpop.f32.mrb[11].mxu1 }
 0x195   : > { %v6399_v57 = vpop.permute.xlu0 %6398  ;;  %17993 = vmatmul.mubr.msk.f32.vlgmr.msra.gmra.mrb[0].mxu1 %vm298_vm1, %v17991_v6  ;;  %18372 = vmatprep.subr.mxu1 %v19527_v49  ;;  %v18011_v56 = vld [vmem:[%s21518_s1 + $0xb8] sm:$0xff] }
 0x196   : > { %v6401_v60 = vpop.permute.xlu1 %6400  ;;  %v6407_v61 = vsel %vm21542_vm12, %v6397_v50, %v6399_v57  ;;  %18374 = vmatprep.mubr.msk.f32.mxu1 %vm18933_vm2, %v19527_v49  ;;  %v18950_v50 = vmov 0  }
 0x197   : > { %v6408_v62 = vsel %vm21542_vm12, %v6399_v57, %v6401_v60  ;;  %18373 = vmatpush3.msra.mxu1 %v6401_v60  ;;  %vm21544_vm12 = vcmask 375808   ;;  %18897 = vset.pattern.permute.xlu1 %v18950_v50 }
 0x198   : > { %6561 = vmatprep.subr.mxu0 %v6408_v62  ;;  %8973 = vperm.xlu1 %18897, %v8970_v48  }
 0x199   : > { %6562 = vmatpush1.msra.mxu0 %v6407_v61  ;;  %v6714_v63 = vpop.permute.xlu0 %6713  ;;  %18375 = vmatmul.mubr.msk.f32.vlgmr.msra.gmra.mrb[40].mxu1 %vm298_vm1, %v17991_v6 }
 0x19a   : > { %v6716_v10 = vpop.permute.xlu1 %6715  ;;  %17994 = vmatmul.mubr.msk.f32.vlgmr.msra.gmra.mrb[2].mxu0 %vm298_vm1, %v17991_v6  ;;  %6877 = vmatprep.mubr.f32.mxu1 %v19527_v49 }
 0x19b   : > { %v6727_v11 = vsel %vm21543_vm11, %v6714_v63, %v6716_v10  ;;  %6806 = vmatprep.mubr.f32.mxu0 %v19527_v49  ;;  %18898 = vset.pattern.permute.xlu0 %v18950_v50 }
 0x19c   : > { %6742 = vmatprep.subr.mxu0 %v6727_v11 }
 0x19d   : > { %v6712_v12 = vpop.permute.xlu0 %6711 }
 0x19e   : > { %v6726_v13 = vsel %vm21543_vm11, %v6712_v12, %v6714_v63  ;;  %v6718_v14 = vpop.permute.xlu1 %6717 }
 0x19f   : > { %6743 = vmatpush1.msra.mxu0 %v6726_v13  ;;  %v6728_v22 = vsel %vm21543_vm11, %v6716_v10, %v6718_v14 }
 0x1a0   : > { %17997 = vmatmul.mubr.msk.f32.vlgmr.msra.gmra.mrb[0].mxu0 %vm298_vm1, %v17996_v15 }
 0x1a1   : > { %v6720_v16 = vpop.permute.xlu0 %6719  ;;  %6948 = vmatprep.mubr.f32.mxu0 %v19527_v49  ;;  %v2152_v17 = vpop.f32.mrb[12].mxu1 }
 0x1a2   : > { %v6722_v18 = vpop.permute.xlu1 %6721  ;;  %v6729_v19 = vsel %vm21543_vm11, %v6718_v14, %v6720_v16  ;;  %v2162_v20 = vadd.f32 %v2152_v17, %v1839_v55  ;;  %v18306_v21 = vpop.f32.mrb[13].mxu1 }
 0x1a3   : > { %6813 = vmatprep.subr.mxu1 %v6729_v19  ;;  %v6730_v25 = vsel %vm21543_vm11, %v6720_v16, %v6722_v18 }
 0x1a4   : > { %6814 = vmatpush1.msra.mxu1 %v6728_v22  ;;  %v18016_v22 = vld [vmem:[%s21518_s1 + $0xc0] sm:$0xff] }
 0x1a5   : > { %v6724_v23 = vpop.permute.xlu0 %6723  ;;  %17998 = vmatmul.mubr.msk.f32.vlgmr.msra.gmra.mrb[0].mxu1 %vm298_vm1, %v17996_v15  ;;  %18377 = vmatprep.subr.mxu1 %v19527_v49 }
 0x1a6   : > { %v7037_v2 = vpop.permute.xlu1 %7036  ;;  %18378 = vmatpush3.msra.mxu1 %v6724_v23  ;;  %v6731_v24 = vsel %vm21543_vm11, %v6722_v18, %v6724_v23  ;;  %18379 = vmatprep.mubr.msk.f32.mxu1 %vm18933_vm2, %v19527_v49  ;;  %vm21545_vm11 = vcmask 367616  }
 0x1a7   : > { %6884 = vmatprep.subr.mxu0 %v6731_v24 }
 0x1a8   : > { %6885 = vmatpush1.msra.mxu0 %v6730_v25 }
 0x1a9   : > { %v7039_v26 = vpop.permute.xlu0 %7038  ;;  %18380 = vmatmul.mubr.msk.f32.vlgmr.msra.gmra.mrb[42].mxu1 %vm298_vm1, %v17996_v15  ;;  %17999 = vmatmul.mubr.msk.f32.vlgmr.msra.gmra.mrb[2].mxu0 %vm298_vm1, %v17996_v15 }
 0x1aa   : > { %v7035_v27 = vpop.permute.xlu1 %7034  ;;  %v7050_v28 = vsel %vm21544_vm12, %v7037_v2, %v7039_v26  ;;  %7200 = vmatprep.mubr.f32.mxu1 %v19527_v49  ;;  %7129 = vmatprep.mubr.f32.mxu0 %v19527_v49 }
 0x1ab   : > { %v7049_v29 = vsel %vm21544_vm12, %v7035_v27, %v7037_v2  ;;  %7065 = vmatprep.subr.mxu0 %v7050_v28 }
 0x1ac   : > { %7066 = vmatpush1.msra.mxu0 %v7049_v29 }
 0x1ad   : > { %v7041_v31 = vpop.permute.xlu0 %7040  ;;  %18002 = vmatmul.mubr.msk.f32.vlgmr.msra.gmra.mrb[0].mxu0 %vm298_vm1, %v18001_v30  ;;  %v2475_v51 = vpop.f32.mrb[14].mxu1 }
 0x1ae   : > { %v7043_v53 = vpop.permute.xlu1 %7042  ;;  %v7051_v32 = vsel %vm21544_vm12, %v7039_v26, %v7041_v31  ;;  %7271 = vmatprep.mubr.f32.mxu0 %v19527_v49  ;;  %v2485_v33 = vadd.f32 %v2475_v51, %v2162_v20  ;;  %v18311_v34 = vpop.f32.mrb[15].mxu1 }
 0x1af   : > { %v7052_v35 = vsel %vm21544_vm12, %v7041_v31, %v7043_v53 }
 0x1b0   : > { %7136 = vmatprep.subr.mxu1 %v7052_v35  ;;  %v18021_v35 = vld [vmem:[%s21518_s1 + $0xc8] sm:$0xff] }
 0x1b1   : > { %7137 = vmatpush1.msra.mxu1 %v7051_v32  ;;  %v7045_v36 = vpop.permute.xlu0 %7044 }
 0x1b2   : > { %18003 = vmatmul.mubr.msk.f32.vlgmr.msra.gmra.mrb[0].mxu1 %vm298_vm1, %v18001_v30  ;;  %v7047_v37 = vpop.permute.xlu1 %7046  ;;  %18382 = vmatprep.subr.mxu1 %v19527_v49  ;;  %v7053_v58 = vsel %vm21544_vm12, %v7043_v53, %v7045_v36 }
 0x1b3   : > { %v7054_v38 = vsel %vm21544_vm12, %v7045_v36, %v7047_v37  ;;  %18383 = vmatpush3.msra.mxu1 %v7047_v37  ;;  %18384 = vmatprep.mubr.msk.f32.mxu1 %vm18933_vm2, %v19527_v49  ;;  %vm21546_vm12 = vcmask 359424  }
 0x1b4   : > { %7207 = vmatprep.subr.mxu0 %v7054_v38 }
 0x1b5   : > { %7208 = vmatpush1.msra.mxu0 %v7053_v58  ;;  %v7360_v59 = vpop.permute.xlu0 %7359 }
 0x1b6   : > { %18385 = vmatmul.mubr.msk.f32.vlgmr.msra.gmra.mrb[44].mxu1 %vm298_vm1, %v18001_v30  ;;  %v7362_v39 = vpop.permute.xlu1 %7361  ;;  %18004 = vmatmul.mubr.msk.f32.vlgmr.msra.gmra.mrb[2].mxu0 %vm298_vm1, %v18001_v30 }
 0x1b7   : > { %v7373_v40 = vsel %vm21545_vm11, %v7360_v59, %v7362_v39  ;;  %7523 = vmatprep.mubr.f32.mxu1 %v19527_v49  ;;  %7452 = vmatprep.mubr.f32.mxu0 %v19527_v49 }
 0x1b8   : > { %7388 = vmatprep.subr.mxu0 %v7373_v40 }
 0x1b9   : > { %v7358_v41 = vpop.permute.xlu0 %7357 }
 0x1ba   : > { %v7372_v42 = vsel %vm21545_vm11, %v7358_v41, %v7360_v59  ;;  %v7364_v8 = vpop.permute.xlu1 %7363  ;;  %v19911_v59 = vld [vmem:[#allocation2 + $0x38] sm:$0xff] }
 0x1bb   : > { %7389 = vmatpush1.msra.mxu0 %v7372_v42  ;;  %v7374_v4 = vsel %vm21545_vm11, %v7362_v39, %v7364_v8 }
 0x1bc   : > { %18007 = vmatmul.mubr.msk.f32.vlgmr.msra.gmra.mrb[0].mxu0 %vm298_vm1, %v18006_v43 }
 0x1bd   : > { %v7366_v44 = vpop.permute.xlu0 %7365  ;;  %7594 = vmatprep.mubr.f32.mxu0 %v19527_v49  ;;  %v2798_v9 = vpop.f32.mrb[16].mxu1 }
 0x1be   : > { %v7368_v45 = vpop.permute.xlu1 %7367  ;;  %v7375_v3 = vsel %vm21545_vm11, %v7364_v8, %v7366_v44  ;;  %v2808_v1 = vadd.f32 %v2798_v9, %v2485_v33  ;;  %v18316_v47 = vpop.f32.mrb[17].mxu1 }
 0x1bf   : > { %7459 = vmatprep.subr.mxu1 %v7375_v3  ;;  %v7376_v0 = vsel %vm21545_vm11, %v7366_v44, %v7368_v45 }
 0x1c0   : > { %7460 = vmatpush1.msra.mxu1 %v7374_v4 }
 0x1c1   : > { %v7370_v46 = vpop.permute.xlu0 %7369  ;;  %18008 = vmatmul.mubr.msk.f32.vlgmr.msra.gmra.mrb[0].mxu1 %vm298_vm1, %v18006_v43  ;;  %18387 = vmatprep.subr.mxu1 %v19527_v49 }
 0x1c2   : > { %v7683_v5 = vpop.permute.xlu1 %7682  ;;  %18388 = vmatpush3.msra.mxu1 %v7370_v46  ;;  %v7377_v6 = vsel %vm21545_vm11, %v7368_v45, %v7370_v46  ;;  %18389 = vmatprep.mubr.msk.f32.mxu1 %vm18933_vm2, %v19527_v49  ;;  %vm21547_vm11 = vcmask 293888  }
 0x1c3   : > { %7530 = vmatprep.subr.mxu0 %v7377_v6 }
 0x1c4   : > { %7531 = vmatpush1.msra.mxu0 %v7376_v0 }
 0x1c5   : > { %v7685_v7 = vpop.permute.xlu0 %7684  ;;  %18390 = vmatmul.mubr.msk.f32.vlgmr.msra.gmra.mrb[46].mxu1 %vm298_vm1, %v18006_v43  ;;  %18009 = vmatmul.mubr.msk.f32.vlgmr.msra.gmra.mrb[2].mxu0 %vm298_vm1, %v18006_v43 }
 0x1c6   : > { %v7681_v52 = vpop.permute.xlu1 %7680  ;;  %v7696_v54 = vsel %vm21546_vm12, %v7683_v5, %v7685_v7  ;;  %7846 = vmatprep.mubr.f32.mxu1 %v19527_v49  ;;  %7775 = vmatprep.mubr.f32.mxu0 %v19527_v49 }
 0x1c7   : > { %v7695_v55 = vsel %vm21546_vm12, %v7681_v52, %v7683_v5  ;;  %7711 = vmatprep.subr.mxu0 %v7696_v54 }
 0x1c8   : > { %7712 = vmatpush1.msra.mxu0 %v7695_v55 }
 0x1c9   : > { %v7687_v57 = vpop.permute.xlu0 %7686  ;;  %18012 = vmatmul.mubr.msk.f32.vlgmr.msra.gmra.mrb[0].mxu0 %vm298_vm1, %v18011_v56  ;;  %v3121_v60 = vpop.f32.mrb[18].mxu1 }
 0x1ca   : > { %v7689_v61 = vpop.permute.xlu1 %7688  ;;  %v7697_v62 = vsel %vm21546_vm12, %v7685_v7, %v7687_v57  ;;  %7917 = vmatprep.mubr.f32.mxu0 %v19527_v49  ;;  %v3131_v63 = vadd.f32 %v3121_v60, %v2808_v1  ;;  %v18321_v10 = vpop.f32.mrb[19].mxu1  ;;  %v18026_v1 = vld [vmem:[%s21518_s1 + $0xd0] sm:$0xff] }
 0x1cb   : > { %v7698_v11 = vsel %vm21546_vm12, %v7687_v57, %v7689_v61 }
 0x1cc   : > { %7782 = vmatprep.subr.mxu1 %v7698_v11 }
 0x1cd   : > { %7783 = vmatpush1.msra.mxu1 %v7697_v62  ;;  %v7691_v12 = vpop.permute.xlu0 %7690 }
 0x1ce   : > { %18013 = vmatmul.mubr.msk.f32.vlgmr.msra.gmra.mrb[0].mxu1 %vm298_vm1, %v18011_v56  ;;  %v7693_v13 = vpop.permute.xlu1 %7692  ;;  %18392 = vmatprep.subr.mxu1 %v19527_v49  ;;  %v7699_v14 = vsel %vm21546_vm12, %v7689_v61, %v7691_v12 }
 0x1cf   : > { %v7700_v15 = vsel %vm21546_vm12, %v7691_v12, %v7693_v13  ;;  %18393 = vmatpush3.msra.mxu1 %v7693_v13  ;;  %18394 = vmatprep.mubr.msk.f32.mxu1 %vm18933_vm2, %v19527_v49  ;;  %vm21551_vm12 = vcmask 285696  }
 0x1d0   : > { %7853 = vmatprep.subr.mxu0 %v7700_v15 }
 0x1d1   : > { %7854 = vmatpush1.msra.mxu0 %v7699_v14  ;;  %v8006_v16 = vpop.permute.xlu0 %8005 }
 0x1d2   : > { %18395 = vmatmul.mubr.msk.f32.vlgmr.msra.gmra.mrb[48].mxu1 %vm298_vm1, %v18011_v56  ;;  %v8008_v17 = vpop.permute.xlu1 %8007  ;;  %18014 = vmatmul.mubr.msk.f32.vlgmr.msra.gmra.mrb[2].mxu0 %vm298_vm1, %v18011_v56 }
 0x1d3   : > { %v8019_v18 = vsel %vm21547_vm11, %v8006_v16, %v8008_v17  ;;  %8169 = vmatprep.mubr.f32.mxu1 %v19527_v49  ;;  %8098 = vmatprep.mubr.f32.mxu0 %v19527_v49 }
 0x1d4   : > { %8034 = vmatprep.subr.mxu0 %v8019_v18 }
 0x1d5   : > { %v8004_v19 = vpop.permute.xlu0 %8003 }
 0x1d6   : > { %v8018_v20 = vsel %vm21547_vm11, %v8004_v19, %v8006_v16  ;;  %v8010_v21 = vpop.permute.xlu1 %8009 }
 0x1d7   : > { %8035 = vmatpush1.msra.mxu0 %v8018_v20  ;;  %v8020_v28 = vsel %vm21547_vm11, %v8008_v17, %v8010_v21 }
 0x1d8   : > { %18017 = vmatmul.mubr.msk.f32.vlgmr.msra.gmra.mrb[0].mxu0 %vm298_vm1, %v18016_v22 }
 0x1d9   : > { %v8012_v23 = vpop.permute.xlu0 %8011  ;;  %8240 = vmatprep.mubr.f32.mxu0 %v19527_v49  ;;  %v3444_v2 = vpop.f32.mrb[20].mxu1 }
 0x1da   : > { %v8014_v24 = vpop.permute.xlu1 %8013  ;;  %v8021_v25 = vsel %vm21547_vm11, %v8010_v21, %v8012_v23  ;;  %v3454_v26 = vadd.f32 %v3444_v2, %v3131_v63  ;;  %v18326_v27 = vpop.f32.mrb[21].mxu1 }
 0x1db   : > { %8105 = vmatprep.subr.mxu1 %v8021_v25  ;;  %v8022_v51 = vsel %vm21547_vm11, %v8012_v23, %v8014_v24 }
 0x1dc   : > { %8106 = vmatpush1.msra.mxu1 %v8020_v28 }
 0x1dd   : > { %v8016_v29 = vpop.permute.xlu0 %8015  ;;  %18018 = vmatmul.mubr.msk.f32.vlgmr.msra.gmra.mrb[0].mxu1 %vm298_vm1, %v18016_v22  ;;  %18397 = vmatprep.subr.mxu1 %v19527_v49 }
 0x1de   : > { %v8329_v30 = vpop.permute.xlu1 %8328  ;;  %18398 = vmatpush3.msra.mxu1 %v8016_v29  ;;  %v8023_v31 = vsel %vm21547_vm11, %v8014_v24, %v8016_v29  ;;  %18399 = vmatprep.mubr.msk.f32.mxu1 %vm18933_vm2, %v19527_v49  ;;  %vm21548_vm11 = vcmask 277504  }
 0x1df   : > { %8176 = vmatprep.subr.mxu0 %v8023_v31 }
 0x1e0   : > { %8177 = vmatpush1.msra.mxu0 %v8022_v51 }
 0x1e1   : > { %v8331_v53 = vpop.permute.xlu0 %8330  ;;  %18400 = vmatmul.mubr.msk.f32.vlgmr.msra.gmra.mrb[50].mxu1 %vm298_vm1, %v18016_v22  ;;  %18019 = vmatmul.mubr.msk.f32.vlgmr.msra.gmra.mrb[2].mxu0 %vm298_vm1, %v18016_v22 }
 0x1e2   : > { %v8327_v32 = vpop.permute.xlu1 %8326  ;;  %v8342_v33 = vsel %vm21551_vm12, %v8329_v30, %v8331_v53  ;;  %8492 = vmatprep.mubr.f32.mxu1 %v19527_v49  ;;  %8421 = vmatprep.mubr.f32.mxu0 %v19527_v49 }
 0x1e3   : > { %v8341_v34 = vsel %vm21551_vm12, %v8327_v32, %v8329_v30  ;;  %8357 = vmatprep.subr.mxu0 %v8342_v33 }
 0x1e4   : > { %8358 = vmatpush1.msra.mxu0 %v8341_v34 }
 0x1e5   : > { %v8333_v36 = vpop.permute.xlu0 %8332  ;;  %18022 = vmatmul.mubr.msk.f32.vlgmr.msra.gmra.mrb[0].mxu0 %vm298_vm1, %v18021_v35  ;;  %v3767_v37 = vpop.f32.mrb[22].mxu1 }
 0x1e6   : > { %v8335_v58 = vpop.permute.xlu1 %8334  ;;  %v8343_v38 = vsel %vm21551_vm12, %v8331_v53, %v8333_v36  ;;  %8563 = vmatprep.mubr.f32.mxu0 %v19911_v59  ;;  %v3777_v49 = vadd.f32 %v3767_v37, %v3454_v26  ;;  %v18331_v39 = vpop.f32.mrb[23].mxu1 }
 0x1e7   : > { %v8344_v40 = vsel %vm21551_vm12, %v8333_v36, %v8335_v58 }
 0x1e8   : > { %8428 = vmatprep.subr.mxu1 %v8344_v40 }
 0x1e9   : > { %8429 = vmatpush1.msra.mxu1 %v8343_v38  ;;  %v8337_v41 = vpop.permute.xlu0 %8336 }
 0x1ea   : > { %18023 = vmatmul.mubr.msk.f32.vlgmr.msra.gmra.mrb[0].mxu1 %vm298_vm1, %v18021_v35  ;;  %v8339_v42 = vpop.permute.xlu1 %8338  ;;  %18402 = vmatprep.subr.mxu1 %v19911_v59  ;;  %v8345_v8 = vsel %vm21551_vm12, %v8335_v58, %v8337_v41 }
 0x1eb   : > { %v8346_v43 = vsel %vm21551_vm12, %v8337_v41, %v8339_v42  ;;  %18403 = vmatpush3.msra.mxu1 %v8339_v42  ;;  %18404 = vmatprep.mubr.msk.f32.mxu1 %vm18933_vm2, %v19911_v59  ;;  %vm9035_vm12 = vcmask 1048520  }
 0x1ec   : > { %8499 = vmatprep.subr.mxu0 %v8346_v43  ;;  %9036 = vst.msk [vmem:[#allocation2 + $0x30] sm:$0xff] %vm9035_vm12, %v19911_v59  ;;  %vm21552_vm12 = vcmask 1048440  }
 0x1ed   : > { %8500 = vmatpush1.msra.mxu0 %v8345_v8  ;;  %v8652_v44 = vpop.permute.xlu0 %8651 }
 0x1ee   : > { %18405 = vmatmul.mubr.msk.f32.vlgmr.msra.gmra.mrb[52].mxu1 %vm298_vm1, %v18021_v35  ;;  %v8654_v9 = vpop.permute.xlu1 %8653  ;;  %18024 = vmatmul.mubr.msk.f32.vlgmr.msra.gmra.mrb[2].mxu0 %vm298_vm1, %v18021_v35 }
 0x1ef   : > { %v8665_v45 = vsel %vm21548_vm11, %v8652_v44, %v8654_v9  ;;  %8744 = vmatprep.mubr.f32.mxu0 %v19911_v59  ;;  %8815 = vmatprep.mubr.f32.mxu1 %v19911_v59 }
 0x1f0   : > { %8680 = vmatprep.subr.mxu0 %v8665_v45 }
 0x1f1   : > { %v8650_v3 = vpop.permute.xlu0 %8649 }
 0x1f2   : > { %v8664_v47 = vsel %vm21548_vm11, %v8650_v3, %v8652_v44  ;;  %v8656_v4 = vpop.permute.xlu1 %8655  ;;  %v252_v44 = vld [vmem:[%s21522_s5] sm:$0x7f] }
 0x1f3   : > { %8681 = vmatpush1.msra.mxu0 %v8664_v47  ;;  %v8666_v6 = vsel %vm21548_vm11, %v8654_v9, %v8656_v4 }
 0x1f4   : > { %18027 = vmatmul.mubr.msk.f32.vlgmr.msra.gmra.mrb[0].mxu0 %vm298_vm1, %v18026_v1 }
 0x1f5   : > { %v8658_v46 = vpop.permute.xlu0 %8657  ;;  %8886 = vmatprep.mubr.f32.mxu0 %v19911_v59 }
 0x1f6   : > { %v8667_v48 = vsel %vm21548_vm11, %v8656_v4, %v8658_v46  ;;  %v8660_v5 = vpop.permute.xlu1 %8659 }
 0x1f7   : > { %8751 = vmatprep.subr.mxu1 %v8667_v48  ;;  %v8668_v50 = vsel %vm21548_vm11, %v8658_v46, %v8660_v5 }
 0x1f8   : > { %8752 = vmatpush1.msra.mxu1 %v8666_v6 }
 0x1f9   : > { %v8662_v0 = vpop.permute.xlu0 %8661  ;;  %18028 = vmatmul.mubr.msk.f32.vlgmr.msra.gmra.mrb[0].mxu1 %vm298_vm1, %v18026_v1  ;;  %18407 = vmatprep.subr.mxu1 %v19911_v59  ;;  %v4090_v7 = vpop.f32.mrb[24].mxu1 }
 0x1fa   : > { %v8669_v52 = vsel %vm21548_vm11, %v8660_v5, %v8662_v0  ;;  %18408 = vmatpush3.msra.mxu1 %v8662_v0  ;;  %18409 = vmatprep.mubr.msk.f32.mxu1 %vm18933_vm2, %v19911_v59  ;;  %v4100_v54 = vadd.f32 %v4090_v7, %v3777_v49  ;;  %v18336_v55 = vpop.f32.mrb[25].mxu1  ;;  %vm9033_vm11 = vcmask 908288   ;;  %v8991_v49 = vlaneseq }
 0x1fb   : > { %8822 = vmatprep.subr.mxu0 %v8669_v52  ;;  %9034 = vst.msk [vmem:[#allocation2] sm:$0xff] %vm9033_vm11, %v19911_v59 }
 0x1fc   : > { %8823 = vmatpush1.msra.mxu0 %v8668_v50  ;;  %v8992_v39 = vshrl.u32 %v8991_v49, 7 }
 0x1fd   : > { %18029 = vmatmul.mubr.msk.f32.vlgmr.msra.gmra.mrb[2].mxu0 %vm298_vm1, %v18026_v1  ;;  %18410 = vmatmul.mubr.msk.f32.vlgmr.msra.gmra.mrb[54].mxu1 %vm298_vm1, %v18026_v1 }
 0x1fe   : > { %9263 = vmatprep.mubr.f32.mxu1 %v19911_v59  ;;  %9192 = vmatprep.mubr.f32.mxu0 %v19911_v59  ;;  %v8993_v8 = vsub.s32 0, %v8992_v39  ;;  %v9001_v47 = vsub.s32 2, %v8992_v39  ;;  %v9005_v4 = vsub.s32 3, %v8992_v39  ;;  %v8997_v48 = vsub.s32 1, %v8992_v39 }
 0x200   : > { %v8994_v1 = vrot.slane %v252_v44, %v8993_v8  ;;  %v9002_v7 = vrot.slane %v252_v44, %v9001_v47  ;;  %v9006_v55 = vrot.slane %v252_v44, %v9005_v4 }
 0x205   : > { %v4413_v56 = vpop.f32.mrb[26].mxu1 }
 0x206   : > { %v4423_v57 = vadd.f32 %v4413_v56, %v4100_v54  ;;  %v18341_v60 = vpop.f32.mrb[27].mxu1  ;;  %v9013_v56 = vsub.s32 5, %v8992_v39 }
 0x207   : > { %v8998_v60 = vrot.slane %v252_v44, %v8997_v48 }
 0x214   : > { %v4736_v61 = vpop.f32.mrb[28].mxu1 }
 0x215   : > { %v4746_v62 = vadd.f32 %v4736_v61, %v4423_v57  ;;  %v18346_v63 = vpop.f32.mrb[29].mxu1 }
 0x216   : > { %v9009_v63 = vsub.s32 4, %v8992_v39 }
 0x217   : > { %v8974_v43 = vpop.permute.xlu1 %8973 }
 0x220   : > { %v5059_v10 = vpop.f32.mrb[30].mxu1 }
 0x221   : > { %v5069_v11 = vadd.f32 %v5059_v10, %v4746_v62  ;;  %v18351_v12 = vpop.f32.mrb[31].mxu1 }
 0x230   : > { %v5400_v13 = vpop.f32.mrb[32].mxu1 }
 0x231   : > { %v5410_v14 = vadd.f32 %v5400_v13, %v5069_v11  ;;  %v18356_v15 = vpop.f32.mrb[33].mxu1 }
 0x240   : > { %v5726_v16 = vpop.f32.mrb[34].mxu1 }
 0x241   : > { %v5736_v17 = vadd.f32 %v5726_v16, %v5410_v14  ;;  %v18361_v18 = vpop.f32.mrb[35].mxu1 }
 0x250   : > { %v6052_v19 = vpop.f32.mrb[36].mxu1 }
 0x251   : > { %v6062_v20 = vadd.f32 %v6052_v19, %v5736_v17  ;;  %v18366_v21 = vpop.f32.mrb[37].mxu1  ;;  %v9014_v19 = vrot.slane %v252_v44, %v9013_v56  ;;  %v20176_v56 = vld [vmem:[%s21520_s3 + $0x8] sm:$0xff] }
 0x260   : > { %v6375_v22 = vpop.f32.mrb[38].mxu1 }
 0x261   : > { %v6385_v23 = vadd.f32 %v6375_v22, %v6062_v20  ;;  %v18371_v2 = vpop.f32.mrb[39].mxu1  ;;  %v9010_v20 = vrot.slane %v252_v44, %v9009_v63 }
 0x26c   : > { %v6698_v24 = vpop.f32.mrb[40].mxu1 }
 0x26d   : > { %v6708_v25 = vadd.f32 %v6698_v24, %v6385_v23  ;;  %v18376_v26 = vpop.f32.mrb[41].mxu1  ;;  %v9017_v24 = vsub.s32 6, %v8992_v39 }
 0x27c   : > { %v7021_v27 = vpop.f32.mrb[42].mxu1 }
 0x27d   : > { %v7031_v28 = vadd.f32 %v7021_v27, %v6708_v25  ;;  %v18381_v29 = vpop.f32.mrb[43].mxu1 }
 0x289   : > { %v7344_v30 = vpop.f32.mrb[44].mxu1 }
 0x28a   : > { %v7354_v31 = vadd.f32 %v7344_v30, %v7031_v28  ;;  %v18386_v51 = vpop.f32.mrb[45].mxu1  ;;  %v9018_v28 = vrot.slane %v252_v44, %v9017_v24 }
 0x298   : > { %v7667_v53 = vpop.f32.mrb[46].mxu1 }
 0x299   : > { %v7677_v32 = vadd.f32 %v7667_v53, %v7354_v31  ;;  %v18391_v33 = vpop.f32.mrb[47].mxu1 }
 0x2a5   : > { %v7990_v34 = vpop.f32.mrb[48].mxu1 }
 0x2a6   : > { %v8000_v35 = vadd.f32 %v7990_v34, %v7677_v32  ;;  %v18396_v36 = vpop.f32.mrb[49].mxu1 }
 0x2b4   : > { %v8313_v37 = vpop.f32.mrb[50].mxu1 }
 0x2b5   : > { %v8323_v58 = vadd.f32 %v8313_v37, %v8000_v35  ;;  %v18401_v38 = vpop.f32.mrb[51].mxu1 }
 0x2c1   : > { %v8636_v40 = vpop.f32.mrb[52].mxu1 }
 0x2c2   : > { %v8646_v41 = vadd.f32 %v8636_v40, %v8323_v58  ;;  %v18406_v42 = vpop.f32.mrb[53].mxu1 }
 0x2c7   : > { %v8746_v9 = vpop.f32.mrb[0].mxu0 }
 0x2c8   : > { %v8748_v45 = vpop.f32.mrb[1].mxu0  ;;  %v8976_v3 = vadd.f32 %v8974_v43, %v8746_v9 }
 0x2c9   : > { %v8977_v0 = vadd.f32 %v8974_v43, %v8748_v45 }
 0x2ca   : > { %v8983_v46 = vmax.f32 %v8976_v3, 0.0 }
 0x2cb   : > { %v8984_v11 = vmax.f32 %v8977_v0, 0.0 }
 0x2cc   : > { %v8817_v5 = vpop.f32.mrb[0].mxu1  ;;  %v9026_v6 = vmul.f32 %v8994_v1, %v8983_v46 }
 0x2cd   : > { %v8978_v50 = vadd.f32 %v8974_v43, %v8817_v5  ;;  %v8819_v52 = vpop.f32.mrb[1].mxu1  ;;  %v9027_v22 = vmul.f32 %v8998_v60, %v8984_v11 }
 0x2ce   : > { %v8979_v54 = vadd.f32 %v8974_v43, %v8819_v52  ;;  %9045 = vrot.lane.b32.xlu1 %v9026_v6, %s18951_s23 }
 0x2cf   : > { %v8985_v57 = vmax.f32 %v8978_v50, 0.0 }
 0x2d0   : > { %v8986_v61 = vmax.f32 %v8979_v54, 0.0  ;;  %v8888_v62 = vpop.f32.mrb[2].mxu0  ;;  %v8959_v10 = vpop.f32.mrb[54].mxu1 }
 0x2d1   : > { %v9028_v12 = vmul.f32 %v9002_v7, %v8985_v57  ;;  %v8980_v13 = vadd.f32 %v8974_v43, %v8888_v62  ;;  %v8969_v14 = vadd.f32 %v8959_v10, %v8646_v41  ;;  %v8890_v15 = vpop.f32.mrb[3].mxu0  ;;  %v18411_v16 = vpop.f32.mrb[55].mxu1 }
 0x2d2   : > { %v9029_v17 = vmul.f32 %v9006_v55, %v8986_v61  ;;  %v8981_v18 = vadd.f32 %v8974_v43, %v8890_v15 }
 0x2d3   : > { %9049 = vrot.lane.b32.xlu0 %v9028_v12, %s18951_s23  ;;  %v8987_v23 = vmax.f32 %v8980_v13, 0.0  ;;  %v8982_v2 = vadd.f32 %v8974_v43, %v8969_v14 }
 0x2d4   : > { %v8988_v21 = vmax.f32 %v8981_v18, 0.0  ;;  %9051 = vrot.lane.b32.xlu1 %v9029_v17, %s18951_s23 }
 0x2d5   : > { %v9030_v26 = vmul.f32 %v9010_v20, %v8987_v23  ;;  %v8989_v27 = vmax.f32 %v8982_v2, 0.0 }
 0x2d6   : > { %v9031_v25 = vmul.f32 %v9014_v19, %v8988_v21 }
 0x2d7   : > { %9047 = vrot.lane.b32.xlu0 %v9027_v22, %s18951_s23  ;;  %v9032_v29 = vmul.f32 %v9018_v28, %v8989_v27 }
 0x2d8   : > { %9055 = vrot.lane.b32.xlu1 %v9031_v25, %s18951_s23 }
 0x2db   : > { %9053 = vrot.lane.b32.xlu0 %v9030_v26, %s18951_s23 }
 0x2df   : > { %9057 = vrot.lane.b32.xlu0 %v9032_v29, %s18951_s23 }
 0x340   : > { %v9046_v30 = vpop.permute.xlu1 %9045 }
 0x341   : > { %9073 = vst.msk [vmem:[#allocation2] sm:$0xff] %vm21552_vm12, %v9046_v30  ;;  %vm9079_vm12 = vcmask 990208  }
 0x345   : > { %v9050_v31 = vpop.permute.xlu0 %9049 }
 0x346   : > { %v9052_v51 = vpop.permute.xlu1 %9051 }
 0x347   : > { %v19959_v53 = vsel %vm9033_vm11, %v9050_v31, %v9052_v51 }
 0x348   : > { %v19961_v32 = vld [vmem:[#allocation2] sm:$0xff]  ;;  %9076 = vst [vmem:[#allocation2 + $0x18] sm:$0xff] %v19959_v53 }
 0x349   : > { %v9048_v33 = vpop.permute.xlu0 %9047  ;;  %9699 = vrot.lane.b32.xlu0 %v19961_v32, %s18924_s28  ;;  %9098 = vrot.lane.b32.xlu1 %v19961_v32, %s18923_s27 }
 0x34a   : > { %v19969_v34 = vsel %vm9033_vm11, %v9046_v30, %v9048_v33  ;;  %v19972_v35 = vsel %vm9033_vm11, %v9048_v33, %v9050_v31  ;;  %v9056_v36 = vpop.permute.xlu1 %9055 }
 0x34b   : > { %9074 = vst [vmem:[#allocation2 + $0x8] sm:$0xff] %v19969_v34  ;;  %9075 = vst [vmem:[#allocation2 + $0x10] sm:$0xff] %v19972_v35 }
 0x34d   : > { %v9054_v37 = vpop.permute.xlu0 %9053  ;;  %10343 = vrot.lane.b32.xlu0 %v19961_v32, %s18926_s30  ;;  %10021 = vrot.lane.b32.xlu1 %v19961_v32, %s18925_s29 }
 0x34e   : > { %v19981_v58 = vsel %vm9033_vm11, %v9052_v51, %v9054_v37  ;;  %v19984_v38 = vsel %vm9033_vm11, %v9054_v37, %v9056_v36 }
 0x34f   : > { %9077 = vst [vmem:[#allocation2 + $0x20] sm:$0xff] %v19981_v58  ;;  %9078 = vst [vmem:[#allocation2 + $0x28] sm:$0xff] %v19984_v38 }
 0x351   : > { %v9058_v49 = vpop.permute.xlu0 %9057  ;;  %10987 = vrot.lane.b32.xlu0 %v19961_v32, %s18928_s8  ;;  %10665 = vrot.lane.b32.xlu1 %v19961_v32, %s18927_s7 }
 0x352   : > { %v9064_v39 = vsel %vm9033_vm11, %v9056_v36, %v9058_v49 }
 0x353   : > { %9080 = vst.msk [vmem:[#allocation2 + $0x30] sm:$0xff] %vm9079_vm12, %v9064_v39 }
 0x355   : > { %11631 = vrot.lane.b32.xlu0 %v19961_v32, %s18930_s10  ;;  %11309 = vrot.lane.b32.xlu1 %v19961_v32, %s18929_s9 }
 0x359   : > { %12275 = vrot.lane.b32.xlu0 %v19961_v32, %s18932_s14  ;;  %11953 = vrot.lane.b32.xlu1 %v19961_v32, %s18931_s11 }
 0x35a   : > { %v20197_v63 = vld [vmem:[#allocation2 + $0x30] sm:$0xff] }
 0x35d   : > { %12919 = vrot.lane.b32.xlu0 %v19961_v32, %s18935_s25  ;;  %12597 = vrot.lane.b32.xlu1 %v19961_v32, %s18934_s17 }
 0x361   : > { %9102 = vrot.lane.b32.xlu0 %v19972_v35, %s18923_s27  ;;  %13241 = vrot.lane.b32.xlu1 %v19961_v32, %s18936_s15 }
 0x365   : > { %9705 = vrot.lane.b32.xlu0 %v19959_v53, %s18924_s28  ;;  %9104 = vrot.lane.b32.xlu1 %v19959_v53, %s18923_s27 }
 0x369   : > { %9701 = vrot.lane.b32.xlu0 %v19969_v34, %s18924_s28  ;;  %9100 = vrot.lane.b32.xlu1 %v19969_v34, %s18923_s27 }
 0x36d   : > { %10025 = vrot.lane.b32.xlu0 %v19972_v35, %s18925_s29  ;;  %9703 = vrot.lane.b32.xlu1 %v19972_v35, %s18924_s28 }
 0x371   : > { %10349 = vrot.lane.b32.xlu0 %v19959_v53, %s18926_s30  ;;  %10027 = vrot.lane.b32.xlu1 %v19959_v53, %s18925_s29 }
 0x375   : > { %10345 = vrot.lane.b32.xlu0 %v19969_v34, %s18926_s30  ;;  %10023 = vrot.lane.b32.xlu1 %v19969_v34, %s18925_s29 }
 0x379   : > { %10669 = vrot.lane.b32.xlu0 %v19972_v35, %s18927_s7  ;;  %10347 = vrot.lane.b32.xlu1 %v19972_v35, %s18926_s30 }
 0x37d   : > { %10993 = vrot.lane.b32.xlu0 %v19959_v53, %s18928_s8  ;;  %10671 = vrot.lane.b32.xlu1 %v19959_v53, %s18927_s7 }
 0x381   : > { %10989 = vrot.lane.b32.xlu0 %v19969_v34, %s18928_s8  ;;  %10667 = vrot.lane.b32.xlu1 %v19969_v34, %s18927_s7 }
 0x385   : > { %11313 = vrot.lane.b32.xlu0 %v19972_v35, %s18929_s9  ;;  %10991 = vrot.lane.b32.xlu1 %v19972_v35, %s18928_s8 }
 0x389   : > { %11637 = vrot.lane.b32.xlu0 %v19959_v53, %s18930_s10  ;;  %11315 = vrot.lane.b32.xlu1 %v19959_v53, %s18929_s9 }
 0x38d   : > { %11633 = vrot.lane.b32.xlu0 %v19969_v34, %s18930_s10  ;;  %11311 = vrot.lane.b32.xlu1 %v19969_v34, %s18929_s9 }
 0x391   : > { %11957 = vrot.lane.b32.xlu0 %v19972_v35, %s18931_s11  ;;  %11635 = vrot.lane.b32.xlu1 %v19972_v35, %s18930_s10 }
 0x395   : > { %12281 = vrot.lane.b32.xlu0 %v19959_v53, %s18932_s14  ;;  %11959 = vrot.lane.b32.xlu1 %v19959_v53, %s18931_s11 }
 0x399   : > { %12277 = vrot.lane.b32.xlu0 %v19969_v34, %s18932_s14  ;;  %11955 = vrot.lane.b32.xlu1 %v19969_v34, %s18931_s11 }
 0x39d   : > { %12601 = vrot.lane.b32.xlu0 %v19972_v35, %s18934_s17  ;;  %12279 = vrot.lane.b32.xlu1 %v19972_v35, %s18932_s14 }
 0x3a1   : > { %12925 = vrot.lane.b32.xlu0 %v19959_v53, %s18935_s25  ;;  %12603 = vrot.lane.b32.xlu1 %v19959_v53, %s18934_s17 }
 0x3a5   : > { %12921 = vrot.lane.b32.xlu0 %v19969_v34, %s18935_s25  ;;  %12599 = vrot.lane.b32.xlu1 %v19969_v34, %s18934_s17 }
 0x3a9   : > { %13245 = vrot.lane.b32.xlu0 %v19972_v35, %s18936_s15  ;;  %12923 = vrot.lane.b32.xlu1 %v19972_v35, %s18935_s25 }
 0x3ad   : > { %13569 = vrot.lane.b32.xlu0 %v19959_v53, %s18937_s19  ;;  %13247 = vrot.lane.b32.xlu1 %v19959_v53, %s18936_s15 }
 0x3b1   : > { %13565 = vrot.lane.b32.xlu0 %v19969_v34, %s18937_s19  ;;  %13243 = vrot.lane.b32.xlu1 %v19969_v34, %s18936_s15 }
 0x3b5   : > { %9106 = vrot.lane.b32.xlu0 %v19981_v58, %s18923_s27  ;;  %9707 = vrot.lane.b32.xlu1 %v19981_v58, %s18924_s28 }
 0x3b9   : > { %10029 = vrot.lane.b32.xlu0 %v19981_v58, %s18925_s29  ;;  %10351 = vrot.lane.b32.xlu1 %v19981_v58, %s18926_s30 }
 0x3bb   : > { %v20098_v40 = vpop.permute.xlu0 %9699  ;;  %v9099_v41 = vpop.permute.xlu1 %9098 }
 0x3bd   : > { %10673 = vrot.lane.b32.xlu0 %v19981_v58, %s18927_s7  ;;  %10995 = vrot.lane.b32.xlu1 %v19981_v58, %s18928_s8 }
 0x3bf   : > { %v20104_v42 = vpop.permute.xlu0 %10343  ;;  %v20106_v8 = vpop.permute.xlu1 %10021 }
 0x3c1   : > { %11317 = vrot.lane.b32.xlu0 %v19981_v58, %s18929_s9  ;;  %11639 = vrot.lane.b32.xlu1 %v19981_v58, %s18930_s10 }
 0x3c3   : > { %v20112_v43 = vpop.permute.xlu0 %10987  ;;  %v20114_v44 = vpop.permute.xlu1 %10665 }
 0x3c5   : > { %11961 = vrot.lane.b32.xlu0 %v19981_v58, %s18931_s11  ;;  %12283 = vrot.lane.b32.xlu1 %v19981_v58, %s18932_s14 }
 0x3c7   : > { %v20120_v9 = vpop.permute.xlu0 %11631  ;;  %v20122_v45 = vpop.permute.xlu1 %11309 }
 0x3c9   : > { %12605 = vrot.lane.b32.xlu0 %v19981_v58, %s18934_s17  ;;  %12927 = vrot.lane.b32.xlu1 %v19981_v58, %s18935_s25 }
 0x3cb   : > { %v20128_v3 = vpop.permute.xlu0 %12275  ;;  %v20130_v1 = vpop.permute.xlu1 %11953 }
 0x3cc   : > { %21578 = vst [vmem:[#allocation3_spill] sm:$0xff] %v20128_v3 }
 0x3cd   : > { %13249 = vrot.lane.b32.xlu0 %v19981_v58, %s18936_s15  ;;  %13571 = vrot.lane.b32.xlu1 %v19981_v58, %s18937_s19 }
 0x3cf   : > { %v20136_v47 = vpop.permute.xlu0 %12919  ;;  %v20138_v4 = vpop.permute.xlu1 %12597 }
 0x3d0   : > { %21579 = vst [vmem:[#allocation4_spill] sm:$0xff] %v20136_v47  ;;  %21580 = vst [vmem:[#allocation5_spill] sm:$0xff] %v20138_v4 }
 0x3d1   : > { %9709 = vrot.lane.b32.xlu1 %v19984_v38, %s18924_s28  ;;  %9108 = vrot.lane.b32.xlu0 %v19984_v38, %s18923_s27 }
 0x3d3   : > { %v20144_v46 = vpop.permute.xlu0 %9102  ;;  %v20146_v48 = vpop.permute.xlu1 %13241 }
 0x3d4   : > { %21581 = vst [vmem:[#allocation6_spill] sm:$0xff] %v20146_v48 }
 0x3d5   : > { %10353 = vrot.lane.b32.xlu1 %v19984_v38, %s18926_s30  ;;  %10031 = vrot.lane.b32.xlu0 %v19984_v38, %s18925_s29 }
 0x3d7   : > { %v20152_v5 = vpop.permute.xlu0 %9705  ;;  %v20154_v6 = vpop.permute.xlu1 %9104 }
 0x3d9   : > { %10997 = vrot.lane.b32.xlu1 %v19984_v38, %s18928_s8  ;;  %10675 = vrot.lane.b32.xlu0 %v19984_v38, %s18927_s7 }
 0x3db   : > { %v20160_v0 = vpop.permute.xlu0 %9701  ;;  %v9101_v50 = vpop.permute.xlu1 %9100 }
 0x3dc   : > { %v9113_v7 = vsel %vm284_vm0, %v9101_v50, %v20144_v46  ;;  %v9112_v52 = vsel %vm284_vm0, %v9099_v41, %v9101_v50 }
 0x3dd   : > { %11641 = vrot.lane.b32.xlu1 %v19984_v38, %s18930_s10  ;;  %11319 = vrot.lane.b32.xlu0 %v19984_v38, %s18929_s9 }
 0x3de   : > { %9128 = vmatprep.subr.mxu0 %v9113_v7 }
 0x3df   : > { %9129 = vmatpush1.msra.mxu0 %v9112_v52  ;;  %v20169_v54 = vpop.permute.xlu0 %10025  ;;  %v20171_v55 = vpop.permute.xlu1 %9703 }
 0x3e0   : > { %18032 = vmatmul.mubr.msk.f32.vlgmr.msra.gmra.mrb[4].mxu0 %vm298_vm1, %v20176_v56 }
 0x3e1   : > { %12285 = vrot.lane.b32.xlu1 %v19984_v38, %s18932_s14  ;;  %11963 = vrot.lane.b32.xlu0 %v19984_v38, %s18931_s11 }
 0x3e2   : > { %9334 = vmatprep.mubr.f32.mxu0 %v19911_v59 }
 0x3e3   : > { %v20185_v57 = vpop.permute.xlu0 %10349  ;;  %v20187_v60 = vpop.permute.xlu1 %10027 }
 0x3e5   : > { %12929 = vrot.lane.b32.xlu1 %v19984_v38, %s18935_s25  ;;  %12607 = vrot.lane.b32.xlu0 %v19984_v38, %s18934_s17 }
 0x3e7   : > { %v20193_v61 = vpop.permute.xlu0 %10345  ;;  %v20195_v62 = vpop.permute.xlu1 %10023 }
 0x3e9   : > { %9110 = vrot.lane.b32.xlu1 %v20197_v63, %s18923_s27  ;;  %13251 = vrot.lane.b32.xlu0 %v19984_v38, %s18936_s15  ;;  %s21597_s27 = smov 55  }
 0x3eb   : > { %v20203_v10 = vpop.permute.xlu0 %10669  ;;  %v20205_v11 = vpop.permute.xlu1 %10347 }
 0x3ed   : > { %13567 = vrot.lane.b32.xlu1 %v19972_v35, %s18937_s19  ;;  %13563 = vrot.lane.b32.xlu0 %v19961_v32, %s18937_s19 }
 0x3ef   : > { %v20211_v12 = vpop.permute.xlu0 %10993  ;;  %v20213_v13 = vpop.permute.xlu1 %10671 }
 0x3f1   : > { %13573 = vrot.lane.b32.xlu1 %v19984_v38, %s18937_s19  ;;  %13909 = vrot.lane.b32.xlu0 %v19981_v58, %s18938_s12 }
 0x3f3   : > { %v20219_v14 = vpop.permute.xlu0 %10989  ;;  %v20221_v15 = vpop.permute.xlu1 %10667 }
 0x3f5   : > { %13907 = vrot.lane.b32.xlu1 %v19959_v53, %s18938_s12  ;;  %9711 = vrot.lane.b32.xlu0 %v20197_v63, %s18924_s28  ;;  %s21602_s28 = smov 54  }
 0x3f7   : > { %v20227_v16 = vpop.permute.xlu0 %11313  ;;  %v20229_v17 = vpop.permute.xlu1 %10991 }
 0x3f9   : > { %13903 = vrot.lane.b32.xlu1 %v19969_v34, %s18938_s12  ;;  %13905 = vrot.lane.b32.xlu0 %v19972_v35, %s18938_s12 }
 0x3fb   : > { %v20235_v18 = vpop.permute.xlu0 %11637  ;;  %v20237_v19 = vpop.permute.xlu1 %11315 }
 0x3fd   : > { %13901 = vrot.lane.b32.xlu1 %v19961_v32, %s18938_s12  ;;  %13911 = vrot.lane.b32.xlu0 %v19984_v38, %s18938_s12 }
 0x3ff   : > { %v20243_v20 = vpop.permute.xlu0 %11633  ;;  %v20245_v21 = vpop.permute.xlu1 %11311 }
 0x401   : > { %10033 = vrot.lane.b32.xlu1 %v20197_v63, %s18925_s29  ;;  %13915 = vrot.lane.b32.xlu0 %v19911_v59, %s18938_s12  ;;  %s21606_s29 = smov 46  }
 0x403   : > { %v20251_v22 = vpop.permute.xlu0 %11957  ;;  %v20253_v23 = vpop.permute.xlu1 %11635 }
 0x405   : > { %14232 = vrot.lane.b32.xlu1 %v19959_v53, %s18939_s18  ;;  %10355 = vrot.lane.b32.xlu0 %v20197_v63, %s18926_s30 }
 0x407   : > { %v20259_v2 = vpop.permute.xlu0 %12281  ;;  %v20261_v24 = vpop.permute.xlu1 %11959 }
 0x408   : > { %21582 = vst [vmem:[#allocation7_spill] sm:$0xff] %v20259_v2 }
 0x409   : > { %14228 = vrot.lane.b32.xlu1 %v19969_v34, %s18939_s18  ;;  %14234 = vrot.lane.b32.xlu0 %v19981_v58, %s18939_s18 }
 0x40b   : > { %v20267_v25 = vpop.permute.xlu0 %12277  ;;  %v20269_v26 = vpop.permute.xlu1 %11955 }
 0x40c   : > { %21583 = vst [vmem:[#allocation8_spill] sm:$0xff] %v20267_v25 }
 0x40d   : > { %14230 = vrot.lane.b32.xlu0 %v19972_v35, %s18939_s18  ;;  %14226 = vrot.lane.b32.xlu1 %v19961_v32, %s18939_s18 }
 0x40f   : > { %v20275_v27 = vpop.permute.xlu0 %12601  ;;  %v20277_v28 = vpop.permute.xlu1 %12279 }
 0x410   : > { %21584 = vst [vmem:[#allocation9_spill] sm:$0xff] %v20275_v27  ;;  %21585 = vst [vmem:[#allocation10_spill] sm:$0xff] %v20277_v28 }
 0x411   : > { %14236 = vrot.lane.b32.xlu0 %v19984_v38, %s18939_s18  ;;  %10677 = vrot.lane.b32.xlu1 %v20197_v63, %s18927_s7 }
 0x413   : > { %v20283_v29 = vpop.permute.xlu0 %12925  ;;  %v20285_v30 = vpop.permute.xlu1 %12603 }
 0x414   : > { %21586 = vst [vmem:[#allocation11_spill] sm:$0xff] %v20283_v29  ;;  %21587 = vst [vmem:[#allocation12_spill] sm:$0xff] %v20285_v30 }
 0x415   : > { %10999 = vrot.lane.b32.xlu0 %v20197_v63, %s18928_s8  ;;  %14557 = vrot.lane.b32.xlu1 %v19959_v53, %s18940_s13  ;;  %s21632_s8 = smov 34  }
 0x417   : > { %v20291_v31 = vpop.permute.xlu0 %12921  ;;  %v20293_v51 = vpop.permute.xlu1 %12599 }
 0x418   : > { %21588 = vst [vmem:[#allocation13_spill] sm:$0xff] %v20291_v31  ;;  %21589 = vst [vmem:[#allocation14_spill] sm:$0xff] %v20293_v51 }
 0x419   : > { %14240 = vrot.lane.b32.xlu0 %v19911_v59, %s18939_s18  ;;  %14553 = vrot.lane.b32.xlu1 %v19969_v34, %s18940_s13 }
 0x41b   : > { %v20299_v33 = vpop.permute.xlu0 %13245  ;;  %v20301_v36 = vpop.permute.xlu1 %12923 }
 0x41c   : > { %21590 = vst [vmem:[#allocation15_spill] sm:$0xff] %v20299_v33  ;;  %21591 = vst [vmem:[#allocation16_spill] sm:$0xff] %v20301_v36 }
 0x41d   : > { %14559 = vrot.lane.b32.xlu0 %v19981_v58, %s18940_s13  ;;  %14551 = vrot.lane.b32.xlu1 %v19961_v32, %s18940_s13 }
 0x41f   : > { %v20307_v37 = vpop.permute.xlu0 %13569  ;;  %v20309_v49 = vpop.permute.xlu1 %13247 }
 0x420   : > { %21592 = vst [vmem:[#allocation17_spill] sm:$0xff] %v20307_v37  ;;  %21593 = vst [vmem:[#allocation18_spill] sm:$0xff] %v20309_v49 }
 0x421   : > { %14555 = vrot.lane.b32.xlu0 %v19972_v35, %s18940_s13  ;;  %11321 = vrot.lane.b32.xlu1 %v20197_v63, %s18929_s9 }
 0x423   : > { %v20315_v39 = vpop.permute.xlu0 %13565  ;;  %v20317_v41 = vpop.permute.xlu1 %13243 }
 0x424   : > { %21594 = vst [vmem:[#allocation19_spill] sm:$0xff] %v20315_v39  ;;  %21595 = vst [vmem:[#allocation20_spill] sm:$0xff] %v20317_v41  ;;  %v9114_v39 = vsel %vm284_vm0, %v20144_v46, %v20154_v6 }
 0x425   : > { %11643 = vrot.lane.b32.xlu0 %v20197_v63, %s18930_s10  ;;  %14882 = vrot.lane.b32.xlu1 %v19981_v58, %s18941_s20 }
 0x427   : > { %v20323_v50 = vpop.permute.xlu0 %9106  ;;  %v20325_v7 = vpop.permute.xlu1 %9707 }
 0x428   : > { %v9115_v52 = vsel %vm284_vm0, %v20154_v6, %v20323_v50 }
 0x429   : > { %14561 = vrot.lane.b32.xlu0 %v19984_v38, %s18940_s13  ;;  %9199 = vmatprep.subr.mxu1 %v9115_v52 }
 0x42a   : > { %14878 = vrot.lane.b32.xlu1 %v19972_v35, %s18941_s20  ;;  %9200 = vmatpush1.msra.mxu1 %v9114_v39 }
 0x42b   : > { %v20337_v37 = vpop.permute.xlu0 %10029  ;;  %v20339_v48 = vpop.permute.xlu1 %10351  ;;  %18033 = vmatmul.mubr.msk.f32.vlgmr.msra.gmra.mrb[56].mxu1 %vm298_vm1, %v20176_v56  ;;  %18412 = vmatprep.subr.mxu1 %v19911_v59 }
 0x42c   : > { %18414 = vmatprep.mubr.msk.f32.mxu1 %vm18933_vm2, %v19911_v59 }
 0x42d   : > { %14565 = vrot.lane.b32.xlu0 %v19911_v59, %s18940_s13 }
 0x42e   : > { %11965 = vrot.lane.b32.xlu1 %v20197_v63, %s18931_s11 }
 0x42f   : > { %v20350_v46 = vpop.permute.xlu0 %10673  ;;  %v20352_v6 = vpop.permute.xlu1 %10995 }
 0x431   : > { %14884 = vrot.lane.b32.xlu0 %v19984_v38, %s18941_s20 }
 0x432   : > { %14876 = vrot.lane.b32.xlu1 %v19969_v34, %s18941_s20 }
 0x433   : > { %v20358_v39 = vpop.permute.xlu0 %11317  ;;  %v20360_v52 = vpop.permute.xlu1 %11639 }
 0x435   : > { %12287 = vrot.lane.b32.xlu0 %v20197_v63, %s18932_s14 }
 0x436   : > { %14888 = vrot.lane.b32.xlu1 %v19911_v59, %s18941_s20 }
 0x437   : > { %v20366_v41 = vpop.permute.xlu0 %11961  ;;  %v20368_v33 = vpop.permute.xlu1 %12283 }
 0x438   : > { %21596 = vst [vmem:[#allocation21_spill] sm:$0xff] %v20368_v33 }
 0x439   : > { %14880 = vrot.lane.b32.xlu0 %v19959_v53, %s18941_s20 }
 0x43a   : > { %15206 = vrot.lane.b32.xlu1 %v19984_v38, %s21597_s27 }
 0x43b   : > { %v20374_v49 = vpop.permute.xlu0 %12605  ;;  %v20376_v47 = vpop.permute.xlu1 %12927 }
 0x43c   : > { %21598 = vst [vmem:[#allocation22_spill] sm:$0xff] %v20374_v49  ;;  %21599 = vst [vmem:[#allocation23_spill] sm:$0xff] %v20376_v47 }
 0x43d   : > { %15204 = vrot.lane.b32.xlu0 %v19981_v58, %s21597_s27 }
 0x43e   : > { %15202 = vrot.lane.b32.xlu1 %v19959_v53, %s21597_s27 }
 0x43f   : > { %v20382_v31 = vpop.permute.xlu0 %13249  ;;  %v20384_v36 = vpop.permute.xlu1 %13571 }
 0x440   : > { %21600 = vst [vmem:[#allocation24_spill] sm:$0xff] %v20382_v31  ;;  %21601 = vst [vmem:[#allocation25_spill] sm:$0xff] %v20384_v36 }
 0x441   : > { %15200 = vrot.lane.b32.xlu0 %v19972_v35, %s21597_s27 }
 0x442   : > { %12609 = vrot.lane.b32.xlu1 %v20197_v63, %s18934_s17 }
 0x443   : > { %v9109_v29 = vpop.permute.xlu0 %9108  ;;  %v20390_v4 = vpop.permute.xlu1 %9709 }
 0x445   : > { %12931 = vrot.lane.b32.xlu0 %v20197_v63, %s18935_s25 }
 0x446   : > { %15526 = vrot.lane.b32.xlu1 %v19981_v58, %s21602_s28 }
 0x447   : > { %v20396_v47 = vpop.permute.xlu0 %10031  ;;  %v20398_v31 = vpop.permute.xlu1 %10353 }
 0x449   : > { %15198 = vrot.lane.b32.xlu0 %v19969_v34, %s21597_s27 }
 0x44a   : > { %15522 = vrot.lane.b32.xlu1 %v19972_v35, %s21602_s28 }
 0x44b   : > { %v20404_v36 = vpop.permute.xlu0 %10675  ;;  %v20406_v51 = vpop.permute.xlu1 %10997 }
 0x44d   : > { %15210 = vrot.lane.b32.xlu0 %v19911_v59, %s21597_s27 }
 0x44e   : > { %13253 = vrot.lane.b32.xlu1 %v20197_v63, %s18936_s15 }
 0x44f   : > { %v20412_v27 = vpop.permute.xlu0 %11319  ;;  %v20414_v30 = vpop.permute.xlu1 %11641 }
 0x451   : > { %15528 = vrot.lane.b32.xlu0 %v19984_v38, %s21602_s28 }
 0x452   : > { %15520 = vrot.lane.b32.xlu1 %v19969_v34, %s21602_s28 }
 0x453   : > { %v20420_v49 = vpop.permute.xlu0 %11963  ;;  %v20422_v3 = vpop.permute.xlu1 %12285 }
 0x454   : > { %21603 = vst [vmem:[#allocation26_spill] sm:$0xff] %v20422_v3 }
 0x455   : > { %13575 = vrot.lane.b32.xlu0 %v20197_v63, %s18937_s19  ;;  %s21611_s19 = smov 44  }
 0x456   : > { %15532 = vrot.lane.b32.xlu1 %v19911_v59, %s21602_s28 }
 0x457   : > { %v20428_v25 = vpop.permute.xlu0 %12607  ;;  %v20430_v28 = vpop.permute.xlu1 %12929 }
 0x458   : > { %21604 = vst [vmem:[#allocation27_spill] sm:$0xff] %v20428_v25  ;;  %21605 = vst [vmem:[#allocation28_spill] sm:$0xff] %v20430_v28  ;;  %v9116_v28 = vsel %vm284_vm0, %v20323_v50, %v9109_v29 }
 0x459   : > { %15524 = vrot.lane.b32.xlu0 %v19959_v53, %s21602_s28 }
 0x45a   : > { %15850 = vrot.lane.b32.xlu1 %v19984_v38, %s21606_s29 }
 0x45b   : > { %v20436_v2 = vpop.permute.xlu0 %13251  ;;  %v9111_v33 = vpop.permute.xlu1 %9110 }
 0x45c   : > { %21607 = vst [vmem:[#allocation29_spill] sm:$0xff] %v20436_v2  ;;  %18413 = vmatpush3.msra.mxu1 %v9111_v33  ;;  %v9117_v3 = vsel %vm284_vm0, %v9109_v29, %v9111_v33  ;;  %v9714_v29 = vsel %vm887_vm3, %v20160_v0, %v20171_v55  ;;  %vm21616_vm0 = vcmask 220160  }
 0x45d   : > { %15848 = vrot.lane.b32.xlu0 %v19981_v58, %s21606_s29  ;;  %9270 = vmatprep.subr.mxu0 %v9117_v3  ;;  %v9081_v3 = vld [vmem:[%s21520_s3] sm:$0xff] }
 0x45e   : > { %15846 = vrot.lane.b32.xlu1 %v19959_v53, %s21606_s29  ;;  %18415 = vmatmul.mubr.msk.f32.vlgmr.msra.gmra.mrb[58].mxu1 %vm298_vm1, %v20176_v56 }
 0x45f   : > { %9485 = vmatprep.subr.mxu1 %v19959_v53  ;;  %9271 = vmatpush1.msra.mxu0 %v9116_v28  ;;  %v20448_v2 = vpop.permute.xlu0 %13563  ;;  %v20450_v25 = vpop.permute.xlu1 %13567 }
 0x460   : > { %21608 = vst [vmem:[#allocation30_spill] sm:$0xff] %v20448_v2  ;;  %9486 = vmatpush1.msra.mxu1 %v19972_v35  ;;  %18034 = vmatmul.mubr.msk.f32.vlgmr.msra.gmra.mrb[6].mxu0 %vm298_vm1, %v20176_v56 }
 0x461   : > { %9414 = vmatprep.subr.mxu0 %v19969_v34  ;;  %9549 = vmatprep.mubr.f32.mxu1 %v19911_v59 }
 0x462   : > { %9415 = vmatpush1.msra.mxu0 %v19961_v32  ;;  %18417 = vmatprep.subr.mxu1 %v19911_v59  ;;  %v9716_v32 = vsel %vm887_vm3, %v20152_v5, %v20325_v7 }
 0x463   : > { %15844 = vrot.lane.b32.xlu0 %v19972_v35, %s21606_s29  ;;  %13913 = vrot.lane.b32.xlu1 %v20197_v63, %s18938_s12  ;;  %v20466_v28 = vpop.permute.xlu0 %13909  ;;  %v20468_v56 = vpop.permute.xlu1 %13573 }
 0x464   : > { %21609 = vst [vmem:[#allocation31_spill] sm:$0xff] %v20466_v28  ;;  %18037 = vmatmul.mubr.msk.f32.vlgmr.msra.gmra.mrb[56].mxu1 %vm298_vm1, %v9081_v3  ;;  %9556 = vmatprep.subr.mxu0 %v19984_v38 }
 0x465   : > { %18418 = vmatpush3.msra.mxu1 %v20197_v63  ;;  %9478 = vmatprep.mubr.f32.mxu0 %v19911_v59 }
 0x466   : > { %9800 = vmatprep.subr.mxu1 %v9716_v32  ;;  %18036 = vmatmul.mubr.msk.f32.vlgmr.msra.gmra.mrb[4].mxu0 %vm298_vm1, %v9081_v3  ;;  %v9715_v32 = vsel %vm887_vm3, %v20171_v55, %v20152_v5 }
 0x467   : > { %9557 = vmatpush1.msra.mxu0 %v19981_v58  ;;  %18419 = vmatprep.mubr.msk.f32.mxu1 %vm18933_vm2, %v19911_v59  ;;  %v9712_v33 = vpop.permute.xlu0 %9711  ;;  %v20484_v50 = vpop.permute.xlu1 %13907 }
 0x468   : > { %21610 = vst [vmem:[#allocation32_spill] sm:$0xff] %v20484_v50  ;;  %9729 = vmatprep.subr.mxu0 %v9714_v29  ;;  %15842 = vrot.lane.b32.xlu0 %v19969_v34, %s21606_s29  ;;  %v9713_v29 = vsel %vm887_vm3, %v20098_v40, %v20160_v0  ;;  %v18040_v50 = vld [vmem:[%s21520_s3 + $0x10] sm:$0xff]  ;;  %v9718_v28 = vsel %vm887_vm3, %v20390_v4, %v9712_v33 }
 0x469   : > { %14238 = vrot.lane.b32.xlu1 %v20197_v63, %s18939_s18  ;;  %18420 = vmatmul.mubr.msk.f32.vlgmr.msra.gmra.mrb[60].mxu1 %vm298_vm1, %v9081_v3  ;;  %v10038_v40 = vsel %vm1210_vm4, %v20187_v60, %v20337_v37 }
 0x46a   : > { %9801 = vmatpush1.msra.mxu1 %v9715_v32  ;;  %9620 = vmatprep.mubr.f32.mxu0 %v19911_v59  ;;  %v18045_v32 = vld [vmem:[%s21520_s3 + $0x18] sm:$0xff] }
 0x46b   : > { %18038 = vmatmul.mubr.msk.f32.vlgmr.msra.gmra.mrb[6].mxu0 %vm298_vm1, %v9081_v3  ;;  %9864 = vmatprep.mubr.f32.mxu1 %v19911_v59  ;;  %v20505_v2 = vpop.permute.xlu0 %13905  ;;  %v20507_v5 = vpop.permute.xlu1 %13903  ;;  %v9717_v3 = vsel %vm887_vm3, %v20325_v7, %v20390_v4  ;;  %v10037_v4 = vsel %vm1210_vm4, %v20169_v54, %v20187_v60  ;;  %vm21619_vm3 = vmmov %vm21616_vm0 }
 0x46c   : > { %9730 = vmatpush1.msra.mxu0 %v9713_v29  ;;  %18422 = vmatprep.subr.mxu1 %v19911_v59  ;;  %v10035_v29 = vsel %vm1210_vm4, %v20106_v8, %v20195_v62 }
 0x46d   : > { %14886 = vrot.lane.b32.xlu0 %v20197_v63, %s18941_s20  ;;  %14563 = vrot.lane.b32.xlu1 %v20197_v63, %s18940_s13 }
 0x46e   : > { %18042 = vmatmul.mubr.msk.f32.vlgmr.msra.gmra.mrb[56].mxu1 %vm298_vm1, %v18040_v50  ;;  %9871 = vmatprep.subr.mxu0 %v9718_v28  ;;  %v10036_v28 = vsel %vm1210_vm4, %v20195_v62, %v20169_v54  ;;  %v10360_v62 = vsel %vm1533_vm5, %v20185_v57, %v20339_v48 }
 0x46f   : > { %18423 = vmatpush3.msra.mxu1 %v9712_v33  ;;  %9793 = vmatprep.mubr.f32.mxu0 %v19911_v59  ;;  %v20519_v0 = vpop.permute.xlu0 %13911  ;;  %v20521_v55 = vpop.permute.xlu1 %13901 }
 0x470   : > { %10122 = vmatprep.subr.mxu1 %v10038_v40  ;;  %18041 = vmatmul.mubr.msk.f32.vlgmr.msra.gmra.mrb[4].mxu0 %vm298_vm1, %v18040_v50 }
 0x471   : > { %9872 = vmatpush1.msra.mxu0 %v9717_v3  ;;  %18424 = vmatprep.mubr.msk.f32.mxu1 %vm18933_vm2, %v19911_v59  ;;  %v20578_v3 = vld [vmem:[#allocation2 + $0x38] sm:$0xff] }
 0x472   : > { %10051 = vmatprep.subr.mxu0 %v10036_v28  ;;  %15530 = vrot.lane.b32.xlu0 %v20197_v63, %s21602_s28  ;;  %v10359_v28 = vsel %vm1533_vm5, %v20205_v11, %v20185_v57  ;;  %s251_s28 = scalar_lea.vmem %s21523_s6, %s21723_s24 }
 0x473   : > { %15208 = vrot.lane.b32.xlu1 %v20197_v63, %s21597_s27  ;;  %18425 = vmatmul.mubr.msk.f32.vlgmr.msra.gmra.mrb[62].mxu1 %vm298_vm1, %v18040_v50  ;;  %v20540_v7 = vpop.permute.xlu0 %13915  ;;  %v10034_v33 = vpop.permute.xlu1 %10033  ;;  %s21613_s27 = smov 35  }
 0x474   : > { %10123 = vmatpush1.msra.mxu1 %v10037_v4  ;;  %9935 = vmatprep.mubr.f32.mxu0 %v19911_v59  ;;  %v10040_v8 = vsel %vm1210_vm4, %v20396_v47, %v10034_v33  ;;  %v10358_v4 = vsel %vm1533_vm5, %v20193_v61, %v20205_v11 }
 0x475   : > { %18043 = vmatmul.mubr.msk.f32.vlgmr.msra.gmra.mrb[6].mxu0 %vm298_vm1, %v18040_v50  ;;  %10186 = vmatprep.mubr.f32.mxu1 %v19911_v59 }
 0x476   : > { %10052 = vmatpush1.msra.mxu0 %v10035_v29  ;;  %15854 = vrot.lane.b32.xlu0 %v19911_v59, %s21606_s29 }
 0x477   : > { %15852 = vrot.lane.b32.xlu1 %v20197_v63, %s21606_s29  ;;  %18047 = vmatmul.mubr.msk.f32.vlgmr.msra.gmra.mrb[56].mxu1 %vm298_vm1, %v18045_v32  ;;  %v10356_v54 = vpop.permute.xlu0 %10355  ;;  %v20556_v60 = vpop.permute.xlu1 %14232 }
 0x478   : > { %10115 = vmatprep.mubr.f32.mxu0 %v19911_v59  ;;  %18427 = vmatprep.subr.mxu1 %v19911_v59  ;;  %v10362_v57 = vsel %vm1533_vm5, %v20398_v31, %v10356_v54 }
 0x479   : > { %18046 = vmatmul.mubr.msk.f32.vlgmr.msra.gmra.mrb[4].mxu0 %vm298_vm1, %v18045_v32  ;;  %18428 = vmatpush3.msra.mxu1 %v10034_v33 }
 0x47a   : > { %18429 = vmatprep.mubr.msk.f32.mxu1 %vm18933_vm2, %v19911_v59  ;;  %16172 = vrot.lane.b32.xlu0 %v19984_v38, %s18945_s26  ;;  %v10039_v59 = vsel %vm1210_vm4, %v20337_v37, %v20396_v47  ;;  %v10357_v47 = vsel %vm1533_vm5, %v20104_v42, %v20193_v61  ;;  %v18050_v37 = vld [vmem:[%s21520_s3 + $0x20] sm:$0xff]  ;;  %v10682_v61 = vsel %vm1856_vm6, %v20213_v13, %v20350_v46  ;;  %vm21620_vm4 = vmmov %vm21616_vm0 }
 0x47b   : > { %16170 = vrot.lane.b32.xlu1 %v19981_v58, %s18945_s26  ;;  %10193 = vmatprep.subr.mxu0 %v10040_v8  ;;  %v20572_v50 = vpop.permute.xlu0 %14234  ;;  %v14229_v40 = vpop.permute.xlu1 %14228 }
 0x47c   : > { %18430 = vmatmul.mubr.msk.f32.vlgmr.msra.gmra.mrb[64].mxu1 %vm298_vm1, %v18045_v32  ;;  %10444 = vmatprep.subr.mxu1 %v10360_v62  ;;  %v10361_v62 = vsel %vm1533_vm5, %v20339_v48, %v20398_v31  ;;  %v10681_v48 = vsel %vm1856_vm6, %v20203_v10, %v20213_v13  ;;  %vm21622_vm5 = vmmov %vm21616_vm0 }
 0x47d   : > { %10194 = vmatpush1.msra.mxu0 %v10039_v59  ;;  %10257 = vmatprep.mubr.f32.mxu0 %v20578_v3  ;;  %v18055_v59 = vld [vmem:[%s21520_s3 + $0x28] sm:$0xff] }
 0x47e   : > { %10445 = vmatpush1.msra.mxu1 %v10359_v28  ;;  %18048 = vmatmul.mubr.msk.f32.vlgmr.msra.gmra.mrb[6].mxu0 %vm298_vm1, %v18045_v32  ;;  %v10679_v28 = vsel %vm1856_vm6, %v20114_v44, %v20221_v15 }
 0x47f   : > { %10373 = vmatprep.subr.mxu0 %v10358_v4  ;;  %10508 = vmatprep.mubr.f32.mxu1 %v20578_v3  ;;  %v20597_v33 = vpop.permute.xlu0 %14230  ;;  %v14227_v32 = vpop.permute.xlu1 %14226 }
 0x480   : > { %10374 = vmatpush1.msra.mxu0 %v10357_v47  ;;  %18432 = vmatprep.subr.mxu1 %v20578_v3  ;;  %v20601_v11 = vsel %vm5429_vm15, %v14227_v32, %v14229_v40  ;;  %v20605_v42 = vsel %vm5429_vm15, %v14229_v40, %v20597_v33 }
 0x481   : > { %16168 = vrot.lane.b32.xlu0 %v19959_v53, %s18945_s26  ;;  %16166 = vrot.lane.b32.xlu1 %v19972_v35, %s18945_s26 }
 0x482   : > { %18052 = vmatmul.mubr.msk.f32.vlgmr.msra.gmra.mrb[56].mxu1 %vm298_vm1, %v18050_v37  ;;  %10515 = vmatprep.subr.mxu0 %v10362_v57 }
 0x483   : > { %18433 = vmatpush3.msra.mxu1 %v10356_v54  ;;  %10437 = vmatprep.mubr.f32.mxu0 %v20578_v3  ;;  %v20616_v29 = vpop.permute.xlu0 %14236  ;;  %v10678_v8 = vpop.permute.xlu1 %10677  ;;  %v10680_v54 = vsel %vm1856_vm6, %v20221_v15, %v20203_v10  ;;  %v11004_v15 = vsel %vm2179_vm7, %v20211_v12, %v20352_v6 }
 0x484   : > { %10766 = vmatprep.subr.mxu1 %v10682_v61  ;;  %18051 = vmatmul.mubr.msk.f32.vlgmr.msra.gmra.mrb[4].mxu0 %vm298_vm1, %v18050_v37  ;;  %v10684_v44 = vsel %vm1856_vm6, %v20404_v36, %v10678_v8  ;;  %v11003_v61 = vsel %vm2179_vm7, %v20229_v17, %v20211_v12 }
 0x485   : > { %10516 = vmatpush1.msra.mxu0 %v10361_v62  ;;  %18434 = vmatprep.mubr.msk.f32.mxu1 %vm18933_vm2, %v20578_v3 }
 0x486   : > { %10695 = vmatprep.subr.mxu0 %v10680_v54  ;;  %16174 = vrot.lane.b32.xlu0 %v20197_v63, %s18945_s26 }
 0x487   : > { %16164 = vrot.lane.b32.xlu1 %v19969_v34, %s18945_s26  ;;  %18435 = vmatmul.mubr.msk.f32.vlgmr.msra.gmra.mrb[66].mxu1 %vm298_vm1, %v18050_v37  ;;  %v11000_v31 = vpop.permute.xlu0 %10999  ;;  %v14558_v40 = vpop.permute.xlu1 %14557 }
 0x488   : > { %10767 = vmatpush1.msra.mxu1 %v10681_v48  ;;  %10579 = vmatprep.mubr.f32.mxu0 %v20578_v3  ;;  %v11006_v12 = vsel %vm2179_vm7, %v20406_v51, %v11000_v31 }
 0x489   : > { %18053 = vmatmul.mubr.msk.f32.vlgmr.msra.gmra.mrb[6].mxu0 %vm298_vm1, %v18050_v37  ;;  %10830 = vmatprep.mubr.f32.mxu1 %v20578_v3  ;;  %v10683_v37 = vsel %vm1856_vm6, %v20350_v46, %v20404_v36  ;;  %v11002_v36 = vsel %vm2179_vm7, %v20219_v14, %v20229_v17  ;;  %v11001_v46 = vsel %vm2179_vm7, %v20112_v43, %v20219_v14  ;;  %vm21624_vm6 = vmmov %vm21616_vm0 }
 0x48a   : > { %10696 = vmatpush1.msra.mxu0 %v10679_v28  ;;  %16492 = vrot.lane.b32.xlu0 %v19981_v58, %s21611_s19  ;;  %v11326_v43 = vsel %vm2502_vm8, %v20237_v19, %v20358_v39  ;;  %v18065_v28 = vld [vmem:[%s21520_s3 + $0x38] sm:$0xff] }
 0x48b   : > { %16176 = vrot.lane.b32.xlu1 %v20578_v3, %s18945_s26  ;;  %18057 = vmatmul.mubr.msk.f32.vlgmr.msra.gmra.mrb[56].mxu1 %vm298_vm1, %v18055_v59  ;;  %v20649_v10 = vpop.permute.xlu0 %14240  ;;  %v14554_v13 = vpop.permute.xlu1 %14553  ;;  %s21612_s26 = smov 36  }
 0x48c   : > { %10759 = vmatprep.mubr.f32.mxu0 %v20578_v3  ;;  %18437 = vmatprep.subr.mxu1 %v20578_v3 }
 0x48d   : > { %18056 = vmatmul.mubr.msk.f32.vlgmr.msra.gmra.mrb[4].mxu0 %vm298_vm1, %v18055_v59  ;;  %18438 = vmatpush3.msra.mxu1 %v10678_v8  ;;  %v18060_v8 = vld [vmem:[%s21520_s3 + $0x30] sm:$0xff] }
 0x48e   : > { %18439 = vmatprep.mubr.msk.f32.mxu1 %vm18933_vm2, %v20578_v3  ;;  %16488 = vrot.lane.b32.xlu0 %v19972_v35, %s21611_s19 }
 0x48f   : > { %16494 = vrot.lane.b32.xlu1 %v19984_v38, %s21611_s19  ;;  %10837 = vmatprep.subr.mxu0 %v10684_v44  ;;  %v20665_v4 = vpop.permute.xlu0 %14559  ;;  %v14552_v47 = vpop.permute.xlu1 %14551  ;;  %v11323_v44 = vsel %vm2502_vm8, %v20122_v45, %v20245_v21 }
 0x490   : > { %18440 = vmatmul.mubr.msk.f32.vlgmr.msra.gmra.mrb[68].mxu1 %vm298_vm1, %v18055_v59  ;;  %11088 = vmatprep.subr.mxu1 %v11004_v15  ;;  %v20672_v57 = vsel %vm5755_vm14, %v14552_v47, %v14554_v13  ;;  %v20676_v32 = vsel %vm5755_vm14, %v14558_v40, %v20665_v4  ;;  %v11327_v15 = vsel %vm2502_vm8, %v20358_v39, %v20412_v27 }
 0x491   : > { %10838 = vmatpush1.msra.mxu0 %v10683_v37  ;;  %10901 = vmatprep.mubr.f32.mxu0 %v20578_v3  ;;  %v11645_v39 = vsel %vm2825_vm9, %v20120_v9, %v20243_v20  ;;  %v11970_v9 = vsel %vm3148_vm10, %v20261_v24, %v20366_v41 }
 0x492   : > { %11089 = vmatpush1.msra.mxu1 %v11003_v61  ;;  %18058 = vmatmul.mubr.msk.f32.vlgmr.msra.gmra.mrb[6].mxu0 %vm298_vm1, %v18055_v59  ;;  %v11005_v59 = vsel %vm2179_vm7, %v20352_v6, %v20406_v51  ;;  %v11325_v51 = vsel %vm2502_vm8, %v20227_v16, %v20237_v19  ;;  %vm21627_vm7 = vcmask 211968  }
 0x493   : > { %11017 = vmatprep.subr.mxu0 %v11002_v36  ;;  %11152 = vmatprep.mubr.f32.mxu1 %v20578_v3  ;;  %v14556_v62 = vpop.permute.xlu0 %14555  ;;  %v11322_v54 = vpop.permute.xlu1 %11321 }
 0x494   : > { %11018 = vmatpush1.msra.mxu0 %v11001_v46  ;;  %18442 = vmatprep.subr.mxu1 %v20578_v3  ;;  %v20697_v17 = vsel %vm5755_vm14, %v14556_v62, %v14558_v40  ;;  %v20700_v48 = vsel %vm5755_vm14, %v14554_v13, %v14556_v62  ;;  %v11328_v45 = vsel %vm2502_vm8, %v20412_v27, %v11322_v54  ;;  %v18075_v62 = vld [vmem:[%s21520_s3 + $0x48] sm:$0xff] }
 0x495   : > { %16486 = vrot.lane.b32.xlu0 %v19969_v34, %s21611_s19  ;;  %16490 = vrot.lane.b32.xlu1 %v19959_v53, %s21611_s19  ;;  %v11646_v27 = vsel %vm2825_vm9, %v20243_v20, %v20253_v23  ;;  %v11649_v46 = vsel %vm2825_vm9, %v20360_v52, %v20414_v30 }
 0x496   : > { %18062 = vmatmul.mubr.msk.f32.vlgmr.msra.gmra.mrb[56].mxu1 %vm298_vm1, %v18060_v8  ;;  %11159 = vmatprep.subr.mxu0 %v11006_v12 }
 0x497   : > { %18443 = vmatpush3.msra.mxu1 %v11000_v31  ;;  %11081 = vmatprep.mubr.f32.mxu0 %v20578_v3  ;;  %v11644_v14 = vpop.permute.xlu0 %11643  ;;  %v20711_v40 = vpop.permute.xlu1 %14882  ;;  %v11324_v31 = vsel %vm2502_vm8, %v20245_v21, %v20227_v16  ;;  %vm21628_vm8 = vmmov %vm21616_vm0 }
 0x498   : > { %11410 = vmatprep.subr.mxu1 %v11326_v43  ;;  %18061 = vmatmul.mubr.msk.f32.vlgmr.msra.gmra.mrb[4].mxu0 %vm298_vm1, %v18060_v8  ;;  %v11650_v61 = vsel %vm2825_vm9, %v20414_v30, %v11644_v14  ;;  %v11969_v30 = vsel %vm3148_vm10, %v20251_v22, %v20261_v24  ;;  %v20850_v24 = vld [vmem:[#allocation2 + $0x10] sm:$0xff] }
 0x499   : > { %11160 = vmatpush1.msra.mxu0 %v11005_v59  ;;  %18444 = vmatprep.mubr.msk.f32.mxu1 %vm18933_vm2, %v20578_v3  ;;  %v21614_v43 = vld [vmem:[#allocation21_spill] sm:$0xff] }
 0x49a   : > { %11339 = vmatprep.subr.mxu0 %v11324_v31  ;;  %16498 = vrot.lane.b32.xlu0 %v20578_v3, %s21611_s19  ;;  %v11971_v31 = vsel %vm3148_vm10, %v20366_v41, %v20420_v49  ;;  %v21621_v41 = vld [vmem:[#allocation3_spill] sm:$0xff] }
 0x49b   : > { %16496 = vrot.lane.b32.xlu1 %v20197_v63, %s21611_s19  ;;  %18445 = vmatmul.mubr.msk.f32.vlgmr.msra.gmra.mrb[70].mxu1 %vm298_vm1, %v18060_v8  ;;  %v20730_v6 = vpop.permute.xlu0 %14561 }
 0x49c   : > { %11411 = vmatpush1.msra.mxu1 %v11325_v51  ;;  %11223 = vmatprep.mubr.f32.mxu0 %v20578_v3  ;;  %v20736_v13 = vpop.permute.xlu1 %14878  ;;  %v21617_v51 = vld [vmem:[#allocation10_spill] sm:$0xff] }
 0x49d   : > { %18063 = vmatmul.mubr.msk.f32.vlgmr.msra.gmra.mrb[6].mxu0 %vm298_vm1, %v18060_v8  ;;  %11474 = vmatprep.mubr.f32.mxu1 %v20578_v3  ;;  %v11968_v8 = vsel %vm3148_vm10, %v20269_v26, %v20251_v22 }
 0x49e   : > { %11340 = vmatpush1.msra.mxu0 %v11323_v44  ;;  %16816 = vrot.lane.b32.xlu0 %v19984_v38, %s21612_s26  ;;  %v11648_v38 = vsel %vm2825_vm9, %v20235_v18, %v20360_v52 }
 0x49f   : > { %16814 = vrot.lane.b32.xlu1 %v19981_v58, %s21612_s26  ;;  %18067 = vmatmul.mubr.msk.f32.vlgmr.msra.gmra.mrb[56].mxu1 %vm298_vm1, %v18065_v28  ;;  %v20748_v16 = vpop.permute.xlu0 %14565 }
 0x4a0   : > { %11403 = vmatprep.mubr.f32.mxu0 %v20578_v3  ;;  %18447 = vmatprep.subr.mxu1 %v20578_v3  ;;  %v20754_v19 = vpop.permute.xlu1 %11965 }
 0x4a1   : > { %18066 = vmatmul.mubr.msk.f32.vlgmr.msra.gmra.mrb[4].mxu0 %vm298_vm1, %v18065_v28  ;;  %18448 = vmatpush3.msra.mxu1 %v11322_v54  ;;  %v11972_v22 = vsel %vm3148_vm10, %v20420_v49, %v20754_v19  ;;  %v18909_v54 = vld [vmem:[#allocation2 + $0x28] sm:$0xff] }
 0x4a2   : > { %18449 = vmatprep.mubr.msk.f32.mxu1 %vm18933_vm2, %v20578_v3  ;;  %16812 = vrot.lane.b32.xlu0 %v19959_v53, %s21612_s26 }
 0x4a3   : > { %16810 = vrot.lane.b32.xlu1 %v19972_v35, %s21612_s26  ;;  %11481 = vmatprep.subr.mxu0 %v11328_v45  ;;  %v20766_v21 = vpop.permute.xlu0 %14884  ;;  %v11647_v35 = vsel %vm2825_vm9, %v20253_v23, %v20235_v18  ;;  %v18070_v18 = vld [vmem:[%s21520_s3 + $0x40] sm:$0xff]  ;;  %vm21631_vm9 = vmmov %vm21627_vm7 }
 0x4a4   : > { %18450 = vmatmul.mubr.msk.f32.vlgmr.msra.gmra.mrb[72].mxu1 %vm298_vm1, %v18065_v28  ;;  %11732 = vmatprep.subr.mxu1 %v11648_v38  ;;  %v14877_v47 = vpop.permute.xlu1 %14876  ;;  %v20775_v53 = vsel %vm6079_vm13, %v20711_v40, %v20766_v21 }
 0x4a5   : > { %11482 = vmatpush1.msra.mxu0 %v11327_v15  ;;  %11545 = vmatprep.mubr.f32.mxu0 %v20578_v3  ;;  %v20783_v37 = vsel %vm6079_vm13, %v14877_v47, %v20736_v13  ;;  %v18911_v15 = vld [vmem:[#allocation2 + $0x18] sm:$0xff] }
 0x4a6   : > { %11733 = vmatpush1.msra.mxu1 %v11647_v35  ;;  %18068 = vmatmul.mubr.msk.f32.vlgmr.msra.gmra.mrb[6].mxu0 %vm298_vm1, %v18065_v28  ;;  %v21618_v28 = vld [vmem:[#allocation8_spill] sm:$0xff]  ;;  %v18080_v35 = vld [vmem:[%s21520_s3 + $0x50] sm:$0xff] }
 0x4a7   : > { %11661 = vmatprep.subr.mxu0 %v11646_v27  ;;  %11796 = vmatprep.mubr.f32.mxu1 %v20578_v3  ;;  %v20798_v36 = vpop.permute.xlu0 %12287  ;;  %v12290_v44 = vsel %vm21619_vm3, %v21618_v28, %v21617_v51  ;;  %v12289_v47 = vsel %vm21622_vm5, %v21621_v41, %v21618_v28  ;;  %v21623_v27 = vld [vmem:[#allocation26_spill] sm:$0xff]  ;;  %v21636_v41 = vld [vmem:[#allocation27_spill] sm:$0xff] }
 0x4a8   : > { %11662 = vmatpush1.msra.mxu0 %v11645_v39  ;;  %18452 = vmatprep.subr.mxu1 %v20578_v3  ;;  %v20801_v23 = vpop.permute.xlu1 %14888  ;;  %v12294_v39 = vsel %vm21624_vm6, %v21623_v27, %v20798_v36 }
 0x4a9   : > { %16818 = vrot.lane.b32.xlu0 %v20197_v63, %s21612_s26  ;;  %16808 = vrot.lane.b32.xlu1 %v19969_v34, %s21612_s26 }
 0x4aa   : > { %18072 = vmatmul.mubr.msk.f32.vlgmr.msra.gmra.mrb[56].mxu1 %vm298_vm1, %v18070_v18  ;;  %11803 = vmatprep.subr.mxu0 %v11650_v61 }
 0x4ab   : > { %18453 = vmatpush3.msra.mxu1 %v11644_v14  ;;  %11725 = vmatprep.mubr.f32.mxu0 %v20578_v3  ;;  %v20812_v20 = vpop.permute.xlu0 %14880  ;;  %v21615_v14 = vld [vmem:[#allocation7_spill] sm:$0xff] }
 0x4ac   : > { %12054 = vmatprep.subr.mxu1 %v11970_v9  ;;  %18071 = vmatmul.mubr.msk.f32.vlgmr.msra.gmra.mrb[4].mxu0 %vm298_vm1, %v18070_v18  ;;  %v20818_v34 = vpop.permute.xlu1 %15206  ;;  %v12292_v59 = vsel %vm21616_vm0, %v21615_v14, %v21614_v43  ;;  %v12291_v49 = vsel %vm21620_vm4, %v21617_v51, %v21615_v14  ;;  %v21625_v9 = vld [vmem:[#allocation22_spill] sm:$0xff]  ;;  %vm21635_vm0 = vmmov %vm21627_vm7  ;;  %vm21640_vm4 = vcmask 146432  }
 0x4ad   : > { %11804 = vmatpush1.msra.mxu0 %v11649_v46  ;;  %18454 = vmatprep.mubr.msk.f32.mxu1 %vm18933_vm2, %v20578_v3  ;;  %v21626_v46 = vld [vmem:[#allocation12_spill] sm:$0xff]  ;;  %v18085_v51 = vld [vmem:[%s21520_s3 + $0x58] sm:$0xff]  ;;  %vm21637_vm3 = vmmov %vm21635_vm0 }
 0x4ae   : > { %11983 = vmatprep.subr.mxu0 %v11968_v8  ;;  %17136 = vrot.lane.b32.xlu0 %v19981_v58, %s21613_s27  ;;  %v11967_v58 = vsel %vm3148_vm10, %v20130_v1, %v20269_v26  ;;  %v12614_v8 = vsel %vm21627_vm7, %v21626_v46, %v21625_v9  ;;  %vm21633_vm10 = vmmov %vm21627_vm7 }
 0x4af   : > { %16820 = vrot.lane.b32.xlu1 %v20578_v3, %s21612_s26  ;;  %18455 = vmatmul.mubr.msk.f32.vlgmr.msra.gmra.mrb[74].mxu1 %vm298_vm1, %v18070_v18  ;;  %v20833_v52 = vpop.permute.xlu0 %15204  ;;  %vm21641_vm5 = vmmov %vm21635_vm0 }
 0x4b0   : > { %12055 = vmatpush1.msra.mxu1 %v11969_v30  ;;  %11867 = vmatprep.mubr.f32.mxu0 %v20578_v3  ;;  %v20836_v12 = vpop.permute.xlu1 %15202  ;;  %vm21643_vm6 = vmmov %vm21640_vm4 }
 0x4b1   : > { %18073 = vmatmul.mubr.msk.f32.vlgmr.msra.gmra.mrb[6].mxu0 %vm298_vm1, %v18070_v18  ;;  %12118 = vmatprep.mubr.f32.mxu1 %v20578_v3  ;;  %vm21645_vm7 = vmmov %vm21640_vm4 }
 0x4b2   : > { %11984 = vmatpush1.msra.mxu0 %v11967_v58  ;;  %18457 = vmatprep.subr.mxu1 %v20578_v3  ;;  %v12293_v58 = vsel %vm21628_vm8, %v21614_v43, %v21623_v27  ;;  %vm21647_vm8 = vmmov %vm21640_vm4 }
 0x4b3   : > { %17132 = vrot.lane.b32.xlu0 %v20850_v24, %s21613_s27  ;;  %17138 = vrot.lane.b32.xlu1 %v18909_v54, %s21613_s27  ;;  %v20855_v1 = vpop.permute.xlu0 %15200 }
 0x4b4   : > { %18077 = vmatmul.mubr.msk.f32.vlgmr.msra.gmra.mrb[56].mxu1 %vm298_vm1, %v18075_v62  ;;  %12125 = vmatprep.subr.mxu0 %v11972_v22  ;;  %v20858_v26 = vpop.permute.xlu1 %12609  ;;  %v21630_v22 = vld [vmem:[#allocation14_spill] sm:$0xff] }
 0x4b5   : > { %18458 = vmatpush3.msra.mxu1 %v20754_v19  ;;  %12047 = vmatprep.mubr.f32.mxu0 %v20578_v3  ;;  %v18910_v19 = vld [vmem:[#allocation2 + $0x8] sm:$0xff] }
 0x4b6   : > { %12376 = vmatprep.subr.mxu1 %v12292_v59  ;;  %18076 = vmatmul.mubr.msk.f32.vlgmr.msra.gmra.mrb[4].mxu0 %vm298_vm1, %v18075_v62  ;;  %v18912_v59 = vld [vmem:[#allocation2 + $0x20] sm:$0xff] }
 0x4b7   : > { %12126 = vmatpush1.msra.mxu0 %v11971_v31  ;;  %18459 = vmatprep.mubr.msk.f32.mxu1 %vm18933_vm2, %v20578_v3  ;;  %v20874_v45 = vpop.permute.xlu0 %12931 }
 0x4b8   : > { %12305 = vmatprep.subr.mxu0 %v12290_v44  ;;  %17130 = vrot.lane.b32.xlu0 %v18910_v19, %s21613_s27  ;;  %v20877_v38 = vpop.permute.xlu1 %15526 }
 0x4b9   : > { %17134 = vrot.lane.b32.xlu1 %v18911_v15, %s21613_s27  ;;  %18460 = vmatmul.mubr.msk.f32.vlgmr.msra.gmra.mrb[76].mxu1 %vm298_vm1, %v18075_v62 }
 0x4ba   : > { %12377 = vmatpush1.msra.mxu1 %v12291_v49  ;;  %12189 = vmatprep.mubr.f32.mxu0 %v20578_v3 }
 0x4bb   : > { %18078 = vmatmul.mubr.msk.f32.vlgmr.msra.gmra.mrb[6].mxu0 %vm298_vm1, %v18075_v62  ;;  %12440 = vmatprep.mubr.f32.mxu1 %v20578_v3  ;;  %v20896_v18 = vpop.permute.xlu0 %15198 }
 0x4bc   : > { %12306 = vmatpush1.msra.mxu0 %v12289_v47  ;;  %18462 = vmatprep.subr.mxu1 %v20578_v3  ;;  %v20899_v61 = vpop.permute.xlu1 %15522  ;;  %v12616_v47 = vsel %vm21637_vm3, %v21636_v41, %v20858_v26 }
 0x4bd   : > { %17142 = vrot.lane.b32.xlu0 %v20578_v3, %s21613_s27  ;;  %17140 = vrot.lane.b32.xlu1 %v20197_v63, %s21613_s27 }
 0x4be   : > { %18082 = vmatmul.mubr.msk.f32.vlgmr.msra.gmra.mrb[56].mxu1 %vm298_vm1, %v18080_v35  ;;  %12447 = vmatprep.subr.mxu0 %v12294_v39 }
 0x4bf   : > { %18463 = vmatpush3.msra.mxu1 %v20798_v36  ;;  %12369 = vmatprep.mubr.f32.mxu0 %v20578_v3  ;;  %v20911_v30 = vpop.permute.xlu0 %15210  ;;  %v21629_v36 = vld [vmem:[#allocation9_spill] sm:$0xff] }
 0x4c0   : > { %12698 = vmatprep.subr.mxu1 %v12614_v8  ;;  %18081 = vmatmul.mubr.msk.f32.vlgmr.msra.gmra.mrb[4].mxu0 %vm298_vm1, %v18080_v35  ;;  %v20917_v62 = vpop.permute.xlu1 %13253  ;;  %v12612_v14 = vsel %vm21631_vm9, %v21630_v22, %v21629_v36  ;;  %v12613_v43 = vsel %vm21633_vm10, %v21629_v36, %v21626_v46  ;;  %v21644_v8 = vld [vmem:[#allocation13_spill] sm:$0xff]  ;;  %v21646_v36 = vld [vmem:[#allocation4_spill] sm:$0xff]  ;;  %vm21649_vm9 = vmmov %vm21640_vm4  ;;  %vm21652_vm10 = vcmask 138240  }
 0x4c1   : > { %12448 = vmatpush1.msra.mxu0 %v12293_v58  ;;  %18464 = vmatprep.mubr.msk.f32.mxu1 %vm18933_vm2, %v20578_v3  ;;  %vm21656_vm3 = vmmov %vm21652_vm10 }
 0x4c2   : > { %12627 = vmatprep.subr.mxu0 %v12612_v14  ;;  %17460 = vrot.lane.b32.xlu0 %v18909_v54, %s21632_s8  ;;  %v21634_v54 = vld [vmem:[#allocation5_spill] sm:$0xff]  ;;  %v21648_v14 = vld [vmem:[#allocation28_spill] sm:$0xff] }
 0x4c3   : > { %17458 = vrot.lane.b32.xlu1 %v18912_v59, %s21632_s8  ;;  %18465 = vmatmul.mubr.msk.f32.vlgmr.msra.gmra.mrb[78].mxu1 %vm298_vm1, %v18080_v35  ;;  %v20930_v31 = vpop.permute.xlu0 %15528  ;;  %v12611_v44 = vsel %vm21635_vm0, %v21634_v54, %v21630_v22  ;;  %v12933_v22 = vsel %vm21647_vm8, %v21646_v36, %v21644_v8  ;;  %v12938_v59 = vsel %vm21649_vm9, %v21648_v14, %v20874_v45  ;;  %v21650_v54 = vld [vmem:[#allocation24_spill] sm:$0xff]  ;;  %vm21653_vm0 = vmmov %vm21640_vm4  ;;  %v21660_v36 = vld [vmem:[#allocation6_spill] sm:$0xff] }
 0x4c4   : > { %12699 = vmatpush1.msra.mxu1 %v12613_v43  ;;  %12511 = vmatprep.mubr.f32.mxu0 %v20578_v3  ;;  %v20936_v28 = vpop.permute.xlu1 %15520  ;;  %vm21665_vm8 = vmmov %vm21656_vm3 }
 0x4c5   : > { %18083 = vmatmul.mubr.msk.f32.vlgmr.msra.gmra.mrb[6].mxu0 %vm298_vm1, %v18080_v35  ;;  %12762 = vmatprep.mubr.f32.mxu1 %v20578_v3 }
 0x4c6   : > { %12628 = vmatpush1.msra.mxu0 %v12611_v44  ;;  %17456 = vrot.lane.b32.xlu0 %v18911_v15, %s21632_s8  ;;  %v21639_v15 = vld [vmem:[#allocation11_spill] sm:$0xff]  ;;  %v21651_v44 = vld [vmem:[#allocation18_spill] sm:$0xff] }
 0x4c7   : > { %17454 = vrot.lane.b32.xlu1 %v20850_v24, %s21632_s8  ;;  %18087 = vmatmul.mubr.msk.f32.vlgmr.msra.gmra.mrb[56].mxu1 %vm298_vm1, %v18085_v51  ;;  %v20947_v49 = vpop.permute.xlu0 %13575  ;;  %v21638_v24 = vld [vmem:[#allocation23_spill] sm:$0xff] }
 0x4c8   : > { %12691 = vmatprep.mubr.f32.mxu0 %v20578_v3  ;;  %18467 = vmatprep.subr.mxu1 %v20578_v3  ;;  %v20954_v35 = vpop.permute.xlu1 %15532  ;;  %v12936_v27 = vsel %vm21640_vm4, %v21639_v15, %v21638_v24  ;;  %vm21657_vm4 = vmmov %vm21656_vm3 }
 0x4c9   : > { %18086 = vmatmul.mubr.msk.f32.vlgmr.msra.gmra.mrb[4].mxu0 %vm298_vm1, %v18085_v51  ;;  %18468 = vmatpush3.msra.mxu1 %v20858_v26  ;;  %v12615_v26 = vsel %vm21641_vm5, %v21625_v9, %v21636_v41  ;;  %v18090_v9 = vld [vmem:[%s21520_s3 + $0x60] sm:$0xff]  ;;  %v13258_v41 = vsel %vm21652_vm10, %v21651_v44, %v21650_v54  ;;  %vm21659_vm5 = vmmov %vm21656_vm3 }
 0x4ca   : > { %18469 = vmatprep.mubr.msk.f32.mxu1 %vm18933_vm2, %v20578_v3  ;;  %17462 = vrot.lane.b32.xlu0 %v20197_v63, %s21632_s8  ;;  %v21642_v63 = vld [vmem:[#allocation16_spill] sm:$0xff] }
 0x4cb   : > { %17452 = vrot.lane.b32.xlu1 %v18910_v19, %s21632_s8  ;;  %12769 = vmatprep.subr.mxu0 %v12616_v47  ;;  %v20966_v39 = vpop.permute.xlu0 %15524  ;;  %v12935_v19 = vsel %vm21643_vm6, %v21642_v63, %v21639_v15  ;;  %v12934_v58 = vsel %vm21645_vm7, %v21644_v8, %v21642_v63  ;;  %v12937_v47 = vsel %vm21653_vm0, %v21638_v24, %v21648_v14  ;;  %v21654_v15 = vld [vmem:[#allocation15_spill] sm:$0xff]  ;;  %v18095_v24 = vld [vmem:[%s21520_s3 + $0x68] sm:$0xff]  ;;  %v21658_v8 = vld [vmem:[#allocation29_spill] sm:$0xff]  ;;  %vm21664_vm7 = vcmask 130048  }
 0x4cc   : > { %18470 = vmatmul.mubr.msk.f32.vlgmr.msra.gmra.mrb[80].mxu1 %vm298_vm1, %v18085_v51  ;;  %13020 = vmatprep.subr.mxu1 %v12936_v27  ;;  %v20972_v46 = vpop.permute.xlu1 %15850  ;;  %v21655_v27 = vld [vmem:[#allocation20_spill] sm:$0xff]  ;;  %vm21661_vm6 = vmmov %vm21656_vm3  ;;  %v21662_v14 = vld [vmem:[#allocation25_spill] sm:$0xff] }
 0x4cd   : > { %12770 = vmatpush1.msra.mxu0 %v12615_v26  ;;  %12833 = vmatprep.mubr.f32.mxu0 %v20578_v3  ;;  %v13257_v26 = vsel %vm21657_vm4, %v21654_v15, %v21651_v44  ;;  %vm21667_vm9 = vmmov %vm21664_vm7 }
 0x4ce   : > { %13021 = vmatpush1.msra.mxu1 %v12935_v19  ;;  %18088 = vmatmul.mubr.msk.f32.vlgmr.msra.gmra.mrb[6].mxu0 %vm298_vm1, %v18085_v51  ;;  %vm21668_vm10 = vmmov %vm21664_vm7 }
 0x4cf   : > { %12949 = vmatprep.subr.mxu0 %v12934_v58  ;;  %13084 = vmatprep.mubr.f32.mxu1 %v20578_v3  ;;  %v20992_v43 = vpop.permute.xlu0 %15848  ;;  %v13260_v58 = vsel %vm21659_vm5, %v21658_v8, %v20917_v62  ;;  %vm21669_vm0 = vmmov %vm21664_vm7 }
 0x4d0   : > { %12950 = vmatpush1.msra.mxu0 %v12933_v22  ;;  %18472 = vmatprep.subr.mxu1 %v20578_v3  ;;  %v20995_v51 = vpop.permute.xlu1 %15846  ;;  %v13255_v22 = vsel %vm21661_vm6, %v21660_v36, %v21655_v27  ;;  %v21672_v36 = vld [vmem:[#allocation31_spill] sm:$0xff]  ;;  %vm21674_vm4 = vmmov %vm21669_vm0 }
 0x4d1   : > { %17464 = vrot.lane.b32.xlu1 %v20578_v3, %s21632_s8  ;;  %18092 = vmatmul.mubr.msk.f32.vlgmr.msra.gmra.mrb[56].mxu1 %vm298_vm1, %v18090_v9 }
 0x4d2   : > { %13091 = vmatprep.subr.mxu0 %v12938_v59  ;;  %18473 = vmatpush3.msra.mxu1 %v20874_v45  ;;  %v13256_v45 = vsel %vm21656_vm3, %v21655_v27, %v21654_v15  ;;  %v21663_v59 = vld [vmem:[#allocation17_spill] sm:$0xff]  ;;  %vm21671_vm3 = vmmov %vm21669_vm0 }
 0x4d3   : > { %13013 = vmatprep.mubr.f32.mxu0 %v20578_v3  ;;  %13342 = vmatprep.subr.mxu1 %v13258_v41  ;;  %v13580_v44 = vsel %vm21664_vm7, %v21663_v59, %v21662_v14  ;;  %v13579_v27 = vsel %vm21668_vm10, %v20450_v25, %v21663_v59  ;;  %vm21680_vm7 = vcmask 441344  }
 0x4d4   : > { %18091 = vmatmul.mubr.msk.f32.vlgmr.msra.gmra.mrb[4].mxu0 %vm298_vm1, %v18090_v9  ;;  %18474 = vmatprep.mubr.msk.f32.mxu1 %vm18933_vm2, %v20578_v3  ;;  %vm21683_vm10 = vmmov %vm21680_vm7 }
 0x4d5   : > { %13092 = vmatpush1.msra.mxu0 %v12937_v47  ;;  %18475 = vmatmul.mubr.msk.f32.vlgmr.msra.gmra.mrb[82].mxu1 %vm298_vm1, %v18090_v9  ;;  %v21018_v63 = vpop.permute.xlu0 %15844  ;;  %v13914_v19 = vpop.permute.xlu1 %13913  ;;  %v13259_v47 = vsel %vm21665_vm8, %v21650_v54, %v21658_v8  ;;  %v18100_v54 = vld [vmem:[%s21520_s3 + $0x70] sm:$0xff] }
 0x4d6   : > { %13271 = vmatprep.subr.mxu0 %v13256_v45  ;;  %13343 = vmatpush1.msra.mxu1 %v13257_v26  ;;  %v13582_v45 = vsel %vm21669_vm0, %v20468_v56, %v20947_v49  ;;  %vm21684_vm0 = vmmov %vm21680_vm7 }
 0x4d7   : > { %13155 = vmatprep.mubr.f32.mxu0 %v20578_v3  ;;  %13406 = vmatprep.mubr.f32.mxu1 %v20578_v3 }
 0x4d8   : > { %18093 = vmatmul.mubr.msk.f32.vlgmr.msra.gmra.mrb[6].mxu0 %vm298_vm1, %v18090_v9  ;;  %18477 = vmatprep.subr.mxu1 %v20578_v3 }
 0x4d9   : > { %13272 = vmatpush1.msra.mxu0 %v13255_v22  ;;  %18097 = vmatmul.mubr.msk.f32.vlgmr.msra.gmra.mrb[56].mxu1 %vm298_vm1, %v18095_v24  ;;  %v21673_v22 = vld [vmem:[#allocation32_spill] sm:$0xff] }
 0x4da   : > { %13413 = vmatprep.subr.mxu0 %v13260_v58  ;;  %18478 = vmatpush3.msra.mxu1 %v20917_v62  ;;  %v21038_v41 = vpop.permute.xlu0 %15842  ;;  %v21666_v62 = vld [vmem:[#allocation19_spill] sm:$0xff]  ;;  %v13920_v59 = vsel %vm298_vm1, %v21673_v22, %v21672_v36 }
 0x4db   : > { %13335 = vmatprep.mubr.f32.mxu0 %v20578_v3  ;;  %13664 = vmatprep.subr.mxu1 %v13580_v44  ;;  %v21041_v9 = vpop.permute.xlu1 %14238  ;;  %v13578_v15 = vsel %vm21667_vm9, %v21666_v62, %v20450_v25  ;;  %v21670_v25 = vld [vmem:[#allocation30_spill] sm:$0xff]  ;;  %vm21682_vm9 = vmmov %vm21680_vm7 }
 0x4dc   : > { %18096 = vmatmul.mubr.msk.f32.vlgmr.msra.gmra.mrb[4].mxu0 %vm298_vm1, %v18095_v24  ;;  %18479 = vmatprep.mubr.msk.f32.mxu1 %vm18933_vm2, %v20578_v3  ;;  %v13577_v58 = vsel %vm21671_vm3, %v21670_v25, %v21666_v62  ;;  %v18110_v25 = vld [vmem:[%s21520_s3 + $0x80] sm:$0xff]  ;;  %vm21685_vm3 = vmmov %vm21684_vm0 }
 0x4dd   : > { %13414 = vmatpush1.msra.mxu0 %v13259_v47  ;;  %18480 = vmatmul.mubr.msk.f32.vlgmr.msra.gmra.mrb[84].mxu1 %vm298_vm1, %v18095_v24  ;;  %v13919_v47 = vsel %vm298_vm1, %v20505_v2, %v21673_v22 }
 0x4de   : > { %13593 = vmatprep.subr.mxu0 %v13578_v15  ;;  %13665 = vmatpush1.msra.mxu1 %v13579_v27  ;;  %v13917_v15 = vsel %vm298_vm1, %v20521_v55, %v20507_v5  ;;  %v13921_v55 = vsel %vm298_vm1, %v21672_v36, %v20519_v0 }
 0x4df   : > { %13477 = vmatprep.mubr.f32.mxu0 %v20578_v3  ;;  %13728 = vmatprep.mubr.f32.mxu1 %v20578_v3  ;;  %v21064_v26 = vpop.permute.xlu0 %14886  ;;  %v21066_v8 = vpop.permute.xlu1 %14563 }
 0x4e0   : > { %18098 = vmatmul.mubr.msk.f32.vlgmr.msra.gmra.mrb[6].mxu0 %vm298_vm1, %v18095_v24  ;;  %18482 = vmatprep.subr.mxu1 %v20578_v3  ;;  %v13581_v24 = vsel %vm21674_vm4, %v21662_v14, %v20468_v56  ;;  %v18105_v56 = vld [vmem:[%s21520_s3 + $0x78] sm:$0xff]  ;;  %v13922_v14 = vsel %vm298_vm1, %v20519_v0, %v13914_v19  ;;  %v14247_v0 = vsel %vm5429_vm15, %v20616_v29, %v21041_v9  ;;  %vm21686_vm4 = vcmask 375808  }
 0x4e1   : > { %13594 = vmatpush1.msra.mxu0 %v13577_v58  ;;  %18102 = vmatmul.mubr.msk.f32.vlgmr.msra.gmra.mrb[56].mxu1 %vm298_vm1, %v18100_v54 }
 0x4e2   : > { %13735 = vmatprep.subr.mxu0 %v13582_v45  ;;  %18483 = vmatpush3.msra.mxu1 %v20947_v49  ;;  %v13918_v49 = vsel %vm298_vm1, %v20507_v5, %v20505_v2  ;;  %v13923_v2 = vsel %vm298_vm1, %v13914_v19, %v20540_v7  ;;  %v14245_v5 = vsel %vm5429_vm15, %v20556_v60, %v20572_v50 }
 0x4e3   : > { %13657 = vmatprep.mubr.f32.mxu0 %v20578_v3  ;;  %14005 = vmatprep.subr.mxu1 %v13920_v59  ;;  %v15536_v59 = vsel %vm21683_vm10, %v20966_v39, %v20877_v38 }
 0x4e4   : > { %18101 = vmatmul.mubr.msk.f32.vlgmr.msra.gmra.mrb[4].mxu0 %vm298_vm1, %v18100_v54  ;;  %18484 = vmatprep.mubr.msk.f32.mxu1 %vm18933_vm2, %v20578_v3  ;;  %v21085_v44 = vpop.permute.xlu0 %15530 }
 0x4e5   : > { %13736 = vmatpush1.msra.mxu0 %v13581_v24  ;;  %18485 = vmatmul.mubr.msk.f32.vlgmr.msra.gmra.mrb[86].mxu1 %vm298_vm1, %v18100_v54  ;;  %v21094_v62 = vpop.permute.xlu1 %15208  ;;  %v15534_v24 = vsel %vm21684_vm0, %v20936_v28, %v20899_v61 }
 0x4e6   : > { %13934 = vmatprep.subr.mxu0 %v13918_v49  ;;  %14006 = vmatpush1.msra.mxu1 %v13919_v47 }
 0x4e7   : > { %13799 = vmatprep.mubr.f32.mxu0 %v20578_v3  ;;  %14069 = vmatprep.mubr.f32.mxu1 %v20578_v3 }
 0x4e8   : > { %18103 = vmatmul.mubr.msk.f32.vlgmr.msra.gmra.mrb[6].mxu0 %vm298_vm1, %v18100_v54  ;;  %18487 = vmatprep.subr.mxu1 %v20578_v3  ;;  %v21110_v27 = vpop.permute.xlu0 %15854  ;;  %v14244_v54 = vsel %vm5429_vm15, %v20597_v33, %v20556_v60  ;;  %v14248_v60 = vsel %vm5429_vm15, %v21041_v9, %v20649_v10  ;;  %v14246_v10 = vsel %vm5429_vm15, %v20572_v50, %v20616_v29 }
 0x4e9   : > { %13935 = vmatpush1.msra.mxu0 %v13917_v15  ;;  %13998 = vmatprep.mubr.f32.mxu0 %v20578_v3  ;;  %v21113_v45 = vpop.permute.xlu1 %15852  ;;  %v14572_v29 = vsel %vm5755_vm14, %v20730_v6, %v21066_v8 }
 0x4ea   : > { %18107 = vmatmul.mubr.msk.f32.vlgmr.msra.gmra.mrb[56].mxu1 %vm298_vm1, %v18105_v56  ;;  %14076 = vmatprep.subr.mxu0 %v13922_v14 }
 0x4eb   : > { %18488 = vmatpush3.msra.mxu1 %v13923_v2  ;;  %18489 = vmatprep.mubr.msk.f32.mxu1 %vm18933_vm2, %v20578_v3 }
 0x4ec   : > { %18106 = vmatmul.mubr.msk.f32.vlgmr.msra.gmra.mrb[4].mxu0 %vm298_vm1, %v18105_v56  ;;  %14330 = vmatprep.subr.mxu1 %v14245_v5  ;;  %v21126_v7 = vpop.permute.xlu0 %16172 }
 0x4ed   : > { %14077 = vmatpush1.msra.mxu0 %v13921_v55  ;;  %14140 = vmatprep.mubr.f32.mxu0 %v20578_v3  ;;  %v21128_v19 = vpop.permute.xlu1 %16170 }
 0x4ee   : > { %18490 = vmatmul.mubr.msk.f32.vlgmr.msra.gmra.mrb[88].mxu1 %vm298_vm1, %v18105_v56  ;;  %14259 = vmatprep.subr.mxu0 %v20605_v42 }
 0x4ef   : > { %14331 = vmatpush1.msra.mxu1 %v14244_v54  ;;  %14394 = vmatprep.mubr.f32.mxu1 %v20578_v3 }
 0x4f0   : > { %18108 = vmatmul.mubr.msk.f32.vlgmr.msra.gmra.mrb[6].mxu0 %vm298_vm1, %v18105_v56  ;;  %18492 = vmatprep.subr.mxu1 %v20578_v3 }
 0x4f1   : > { %14260 = vmatpush1.msra.mxu0 %v20601_v11  ;;  %14323 = vmatprep.mubr.f32.mxu0 %v20578_v3  ;;  %v18115_v11 = vld [vmem:[%s21520_s3 + $0x88] sm:$0xff] }
 0x4f2   : > { %14401 = vmatprep.subr.mxu0 %v14247_v0  ;;  %18112 = vmatmul.mubr.msk.f32.vlgmr.msra.gmra.mrb[56].mxu1 %vm298_vm1, %v18110_v25 }
 0x4f3   : > { %18493 = vmatpush3.msra.mxu1 %v14248_v60  ;;  %18494 = vmatprep.mubr.msk.f32.mxu1 %vm18933_vm2, %v20578_v3  ;;  %v21152_v33 = vpop.permute.xlu0 %16168  ;;  %v21154_v42 = vpop.permute.xlu1 %16166 }
 0x4f4   : > { %18111 = vmatmul.mubr.msk.f32.vlgmr.msra.gmra.mrb[4].mxu0 %vm298_vm1, %v18110_v25  ;;  %14655 = vmatprep.subr.mxu1 %v20676_v32 }
 0x4f5   : > { %14402 = vmatpush1.msra.mxu0 %v14246_v10  ;;  %14465 = vmatprep.mubr.f32.mxu0 %v20578_v3 }
 0x4f6   : > { %14584 = vmatprep.subr.mxu0 %v20700_v48  ;;  %18495 = vmatmul.mubr.msk.f32.vlgmr.msra.gmra.mrb[90].mxu1 %vm298_vm1, %v18110_v25 }
 0x4f7   : > { %14656 = vmatpush1.msra.mxu1 %v20697_v17  ;;  %14719 = vmatprep.mubr.f32.mxu1 %v20578_v3  ;;  %v14573_v17 = vsel %vm5755_vm14, %v21066_v8, %v20748_v16  ;;  %v14891_v16 = vsel %vm6079_vm13, %v20736_v13, %v20812_v20  ;;  %v14892_v8 = vsel %vm6079_vm13, %v20812_v20, %v20711_v40 }
 0x4f8   : > { %18113 = vmatmul.mubr.msk.f32.vlgmr.msra.gmra.mrb[6].mxu0 %vm298_vm1, %v18110_v25  ;;  %18497 = vmatprep.subr.mxu1 %v20578_v3  ;;  %v21171_v50 = vpop.permute.xlu0 %16174  ;;  %v14895_v40 = vsel %vm6079_vm13, %v21064_v26, %v20801_v23 }
 0x4f9   : > { %14585 = vmatpush1.msra.mxu0 %v20672_v57  ;;  %14648 = vmatprep.mubr.f32.mxu0 %v20578_v3  ;;  %v21178_v32 = vpop.permute.xlu1 %16164  ;;  %v14571_v57 = vsel %vm5755_vm14, %v20665_v4, %v20730_v6  ;;  %v18120_v4 = vld [vmem:[%s21520_s3 + $0x90] sm:$0xff]  ;;  %vm21675_vm14 = vcmask 449536  }
 0x4fa   : > { %14726 = vmatprep.subr.mxu0 %v14572_v29  ;;  %18117 = vmatmul.mubr.msk.f32.vlgmr.msra.gmra.mrb[56].mxu1 %vm298_vm1, %v18115_v11  ;;  %vm21676_vm15 = vmmov %vm21675_vm14 }
 0x4fb   : > { %18498 = vmatpush3.msra.mxu1 %v14573_v17  ;;  %18499 = vmatprep.mubr.msk.f32.mxu1 %vm18933_vm2, %v20578_v3  ;;  %v15213_v20 = vsel %vm21676_vm15, %v20855_v1, %v20836_v12  ;;  %vm21677_vm5 = vmmov %vm21675_vm14 }
 0x4fc   : > { %18116 = vmatmul.mubr.msk.f32.vlgmr.msra.gmra.mrb[4].mxu0 %vm298_vm1, %v18115_v11  ;;  %14977 = vmatprep.subr.mxu1 %v20775_v53  ;;  %v21191_v48 = vpop.permute.xlu0 %16492  ;;  %v15215_v53 = vsel %vm21675_vm14, %v20833_v52, %v20818_v34  ;;  %vm21679_vm6 = vmmov %vm21677_vm5 }
 0x4fd   : > { %14727 = vmatpush1.msra.mxu0 %v14571_v57  ;;  %14790 = vmatprep.mubr.f32.mxu0 %v20578_v3  ;;  %v21197_v9 = vpop.permute.xlu1 %16176  ;;  %vm21681_vm8 = vmmov %vm21677_vm5 }
 0x4fe   : > { %14906 = vmatprep.subr.mxu0 %v14891_v16  ;;  %18500 = vmatmul.mubr.msk.f32.vlgmr.msra.gmra.mrb[92].mxu1 %vm298_vm1, %v18115_v11  ;;  %vm21687_vm14 = vmmov %vm21684_vm0 }
 0x4ff   : > { %14978 = vmatpush1.msra.mxu1 %v14892_v8  ;;  %15041 = vmatprep.mubr.f32.mxu1 %v20578_v3  ;;  %v15538_v28 = vsel %vm21687_vm14, %v20930_v31, %v21085_v44  ;;  %vm21688_vm15 = vmmov %vm21686_vm4 }
 0x500   : > { %18118 = vmatmul.mubr.msk.f32.vlgmr.msra.gmra.mrb[6].mxu0 %vm298_vm1, %v18115_v11  ;;  %18502 = vmatprep.subr.mxu1 %v20578_v3  ;;  %v21214_v6 = vpop.permute.xlu0 %16488  ;;  %v15857_v47 = vsel %vm21688_vm15, %v21018_v63, %v20995_v51 }
 0x501   : > { %14907 = vmatpush1.msra.mxu0 %v20783_v37  ;;  %14970 = vmatprep.mubr.f32.mxu0 %v20578_v3  ;;  %v21216_v13 = vpop.permute.xlu1 %16494  ;;  %v14894_v37 = vsel %vm6079_vm13, %v20766_v21, %v21064_v26  ;;  %v18125_v21 = vld [vmem:[%s21520_s3 + $0x98] sm:$0xff]  ;;  %vm21678_vm13 = vmmov %vm21677_vm5 }
 0x502   : > { %15048 = vmatprep.subr.mxu0 %v14895_v40  ;;  %18122 = vmatmul.mubr.msk.f32.vlgmr.msra.gmra.mrb[56].mxu1 %vm298_vm1, %v18120_v4  ;;  %v15212_v36 = vsel %vm21678_vm13, %v20896_v18, %v20855_v1  ;;  %v15216_v1 = vsel %vm21681_vm8, %v20818_v34, %v21094_v62  ;;  %v18130_v34 = vld [vmem:[%s21520_s3 + $0xa0] sm:$0xff]  ;;  %vm21690_vm13 = vmmov %vm21686_vm4 }
 0x503   : > { %18503 = vmatpush3.msra.mxu1 %v20801_v23  ;;  %18504 = vmatprep.mubr.msk.f32.mxu1 %vm18933_vm2, %v20578_v3  ;;  %v15214_v23 = vsel %vm21677_vm5, %v20836_v12, %v20833_v52  ;;  %v15217_v52 = vsel %vm21679_vm6, %v21094_v62, %v20911_v30  ;;  %v15537_v12 = vsel %vm21680_vm7, %v20877_v38, %v20930_v31  ;;  %vm21689_vm5 = vmmov %vm21686_vm4  ;;  %v18135_v31 = vld [vmem:[%s21520_s3 + $0xa8] sm:$0xff]  ;;  %vm21692_vm7 = vcmask 367616  }
 0x504   : > { %18121 = vmatmul.mubr.msk.f32.vlgmr.msra.gmra.mrb[4].mxu0 %vm298_vm1, %v18120_v4  ;;  %15299 = vmatprep.subr.mxu1 %v15215_v53  ;;  %v15539_v38 = vsel %vm21685_vm3, %v21085_v44, %v20954_v35  ;;  %v15858_v56 = vsel %vm21689_vm5, %v20995_v51, %v20992_v43  ;;  %v15856_v44 = vsel %vm21690_vm13, %v21038_v41, %v21018_v63  ;;  %vm21691_vm6 = vmmov %vm21686_vm4  ;;  %v21335_v63 = vld [vmem:[#allocation2 + $0x38] sm:$0xff] }
 0x505   : > { %15049 = vmatpush1.msra.mxu0 %v14894_v37  ;;  %15112 = vmatprep.mubr.f32.mxu0 %v20578_v3  ;;  %v16181_v51 = vsel %vm21692_vm7, %v21128_v19, %v21126_v7  ;;  %vm21693_vm8 = vmmov %vm21686_vm4 }
 0x506   : > { %15228 = vmatprep.subr.mxu0 %v15213_v20  ;;  %18505 = vmatmul.mubr.msk.f32.vlgmr.msra.gmra.mrb[94].mxu1 %vm298_vm1, %v18120_v4  ;;  %vm21695_vm10 = vmmov %vm21692_vm7 }
 0x507   : > { %15300 = vmatpush1.msra.mxu1 %v15214_v23  ;;  %15363 = vmatprep.mubr.f32.mxu1 %v20578_v3  ;;  %v21241_v26 = vpop.permute.xlu0 %16486  ;;  %v21243_v58 = vpop.permute.xlu1 %16490  ;;  %v16180_v2 = vsel %vm21695_vm10, %v21152_v33, %v21128_v19  ;;  %vm21696_vm0 = vmmov %vm21692_vm7 }
 0x508   : > { %18123 = vmatmul.mubr.msk.f32.vlgmr.msra.gmra.mrb[6].mxu0 %vm298_vm1, %v18120_v4  ;;  %18507 = vmatprep.subr.mxu1 %v20578_v3  ;;  %vm21697_vm3 = vmmov %vm21696_vm0 }
 0x509   : > { %15229 = vmatpush1.msra.mxu0 %v15212_v36  ;;  %15292 = vmatprep.mubr.f32.mxu0 %v20578_v3  ;;  %v16183_v5 = vsel %vm21697_vm3, %v21171_v50, %v21197_v9  ;;  %vm21699_vm14 = vmmov %vm21696_vm0 }
 0x50a   : > { %15370 = vmatprep.subr.mxu0 %v15217_v52  ;;  %18127 = vmatmul.mubr.msk.f32.vlgmr.msra.gmra.mrb[56].mxu1 %vm298_vm1, %v18125_v21  ;;  %v16182_v54 = vsel %vm21699_vm14, %v21126_v7, %v21171_v50  ;;  %v18145_v7 = vld [vmem:[%s21520_s3 + $0xb8] sm:$0xff] }
 0x50b   : > { %18508 = vmatpush3.msra.mxu1 %v20911_v30  ;;  %18509 = vmatprep.mubr.msk.f32.mxu1 %vm18933_vm2, %v20578_v3  ;;  %v15535_v30 = vsel %vm21682_vm9, %v20899_v61, %v20966_v39  ;;  %v15859_v61 = vsel %vm21686_vm4, %v20992_v43, %v20972_v46  ;;  %v15861_v43 = vsel %vm21691_vm6, %v21113_v45, %v21110_v27  ;;  %vm21694_vm9 = vmmov %vm21692_vm7  ;;  %vm21698_vm4 = vcmask 359424  }
 0x50c   : > { %18126 = vmatmul.mubr.msk.f32.vlgmr.msra.gmra.mrb[4].mxu0 %vm298_vm1, %v18125_v21  ;;  %15621 = vmatprep.subr.mxu1 %v15537_v12  ;;  %v21265_v18 = vpop.permute.xlu0 %16498  ;;  %v16179_v15 = vsel %vm21694_vm9, %v21154_v42, %v21152_v33  ;;  %v16503_v19 = vsel %vm21698_vm4, %v21191_v48, %v21216_v13  ;;  %vm21700_vm15 = vmmov %vm21698_vm4  ;;  %vm21704_vm7 = vcmask 293888  }
 0x50d   : > { %15371 = vmatpush1.msra.mxu0 %v15216_v1  ;;  %15434 = vmatprep.mubr.f32.mxu0 %v20578_v3  ;;  %v21271_v22 = vpop.permute.xlu1 %16496  ;;  %v16501_v0 = vsel %vm21700_vm15, %v21214_v6, %v21243_v58  ;;  %vm21701_vm5 = vmmov %vm21698_vm4 }
 0x50e   : > { %15550 = vmatprep.subr.mxu0 %v15535_v30  ;;  %18510 = vmatmul.mubr.msk.f32.vlgmr.msra.gmra.mrb[96].mxu1 %vm298_vm1, %v18125_v21  ;;  %v16502_v33 = vsel %vm21701_vm5, %v21243_v58, %v21191_v48  ;;  %vm21702_vm13 = vmmov %vm21698_vm4  ;;  %v18150_v48 = vld [vmem:[%s21520_s3 + $0xc0] sm:$0xff] }
 0x50f   : > { %15622 = vmatpush1.msra.mxu1 %v15536_v59  ;;  %15685 = vmatprep.mubr.f32.mxu1 %v20578_v3  ;;  %vm21703_vm6 = vmmov %vm21698_vm4 }
 0x510   : > { %18128 = vmatmul.mubr.msk.f32.vlgmr.msra.gmra.mrb[6].mxu0 %vm298_vm1, %v18125_v21  ;;  %18512 = vmatprep.subr.mxu1 %v20578_v3  ;;  %v21286_v49 = vpop.permute.xlu0 %16816  ;;  %v16505_v10 = vsel %vm21703_vm6, %v21271_v22, %v21265_v18  ;;  %vm21706_vm9 = vmmov %vm21704_vm7 }
 0x511   : > { %15551 = vmatpush1.msra.mxu0 %v15534_v24  ;;  %15614 = vmatprep.mubr.f32.mxu0 %v20578_v3  ;;  %v21292_v39 = vpop.permute.xlu1 %16814  ;;  %vm21707_vm10 = vmmov %vm21704_vm7 }
 0x512   : > { %15692 = vmatprep.subr.mxu0 %v15539_v38  ;;  %18132 = vmatmul.mubr.msk.f32.vlgmr.msra.gmra.mrb[56].mxu1 %vm298_vm1, %v18130_v34  ;;  %v16825_v50 = vsel %vm21704_vm7, %v21292_v39, %v21286_v49 }
 0x513   : > { %18513 = vmatpush3.msra.mxu1 %v20954_v35  ;;  %18514 = vmatprep.mubr.msk.f32.mxu1 %vm18933_vm2, %v20578_v3 }
 0x514   : > { %18131 = vmatmul.mubr.msk.f32.vlgmr.msra.gmra.mrb[4].mxu0 %vm298_vm1, %v18130_v34  ;;  %15943 = vmatprep.subr.mxu1 %v15859_v61  ;;  %v21309_v35 = vpop.permute.xlu0 %16812  ;;  %v17772_v61 = vld [vmem:[%s21521_s4] sm:$0xff] }
 0x515   : > { %15693 = vmatpush1.msra.mxu0 %v15538_v28  ;;  %15756 = vmatprep.mubr.f32.mxu0 %v20578_v3  ;;  %v21311_v62 = vpop.permute.xlu1 %16810  ;;  %v16824_v57 = vsel %vm21707_vm10, %v21309_v35, %v21292_v39  ;;  %v18160_v39 = vld [vmem:[%s21520_s3 + $0xd0] sm:$0xff] }
 0x516   : > { %15872 = vmatprep.subr.mxu0 %v15857_v47  ;;  %18515 = vmatmul.mubr.msk.f32.vlgmr.msra.gmra.mrb[98].mxu1 %vm298_vm1, %v18130_v34  ;;  %v16823_v17 = vsel %vm21706_vm9, %v21311_v62, %v21309_v35 }
 0x517   : > { %15944 = vmatpush1.msra.mxu1 %v15858_v56  ;;  %16007 = vmatprep.mubr.f32.mxu1 %v20578_v3 }
 0x518   : > { %18133 = vmatmul.mubr.msk.f32.vlgmr.msra.gmra.mrb[6].mxu0 %vm298_vm1, %v18130_v34  ;;  %18517 = vmatprep.subr.mxu1 %v20578_v3 }
 0x519   : > { %15873 = vmatpush1.msra.mxu0 %v15856_v44  ;;  %15936 = vmatprep.mubr.f32.mxu0 %v20578_v3  ;;  %v15860_v3 = vsel %vm21693_vm8, %v20972_v46, %v21113_v45  ;;  %v18140_v46 = vld [vmem:[%s21520_s3 + $0xb0] sm:$0xff]  ;;  %vm21705_vm8 = vmmov %vm21698_vm4  ;;  %vm21710_vm4 = vcmask 285696  }
 0x51a   : > { %16014 = vmatprep.subr.mxu0 %v15861_v43  ;;  %18137 = vmatmul.mubr.msk.f32.vlgmr.msra.gmra.mrb[56].mxu1 %vm298_vm1, %v18135_v31  ;;  %vm21712_vm15 = vmmov %vm21710_vm4 }
 0x51b   : > { %18518 = vmatpush3.msra.mxu1 %v21110_v27  ;;  %18519 = vmatprep.mubr.msk.f32.mxu1 %vm18933_vm2, %v21335_v63  ;;  %v21339_v41 = vpop.permute.xlu0 %16818  ;;  %v21341_v14 = vpop.permute.xlu1 %16808  ;;  %v16178_v27 = vsel %vm21696_vm0, %v21178_v32, %v21154_v42  ;;  %v16500_v42 = vsel %vm21702_vm13, %v21241_v26, %v21214_v6  ;;  %v16504_v32 = vsel %vm21705_vm8, %v21216_v13, %v21271_v22  ;;  %vm21708_vm0 = vmmov %vm21704_vm7  ;;  %v18155_v26 = vld [vmem:[%s21520_s3 + $0xc8] sm:$0xff]  ;;  %vm21716_vm7 = vcmask 277504  }
 0x51c   : > { %18136 = vmatmul.mubr.msk.f32.vlgmr.msra.gmra.mrb[4].mxu0 %vm298_vm1, %v18135_v31  ;;  %16265 = vmatprep.subr.mxu1 %v16181_v51  ;;  %v16822_v8 = vsel %vm21708_vm0, %v21341_v14, %v21311_v62  ;;  %vm21709_vm3 = vmmov %vm21708_vm0 }
 0x51d   : > { %16015 = vmatpush1.msra.mxu0 %v15860_v3  ;;  %16078 = vmatprep.mubr.f32.mxu0 %v21335_v63  ;;  %vm21711_vm14 = vmmov %vm21708_vm0 }
 0x51e   : > { %16194 = vmatprep.subr.mxu0 %v16179_v15  ;;  %18520 = vmatmul.mubr.msk.f32.vlgmr.msra.gmra.mrb[100].mxu1 %vm298_vm1, %v18135_v31  ;;  %v16826_v53 = vsel %vm21711_vm14, %v21286_v49, %v21339_v41  ;;  %vm21713_vm5 = vmmov %vm21710_vm4 }
 0x51f   : > { %16266 = vmatpush1.msra.mxu1 %v16180_v2  ;;  %16329 = vmatprep.mubr.f32.mxu1 %v21335_v63  ;;  %vm21714_vm13 = vmmov %vm21710_vm4 }
 0x520   : > { %18138 = vmatmul.mubr.msk.f32.vlgmr.msra.gmra.mrb[6].mxu0 %vm298_vm1, %v18135_v31  ;;  %18522 = vmatprep.subr.mxu1 %v21335_v63  ;;  %v21364_v45 = vpop.permute.xlu0 %17136  ;;  %vm21715_vm6 = vmmov %vm21710_vm4 }
 0x521   : > { %16195 = vmatpush1.msra.mxu0 %v16178_v27  ;;  %16258 = vmatprep.mubr.f32.mxu0 %v21335_v63  ;;  %v16821_v55 = vpop.permute.xlu1 %16820  ;;  %vm21717_vm8 = vmmov %vm21716_vm7 }
 0x522   : > { %16336 = vmatprep.subr.mxu0 %v16183_v5  ;;  %18142 = vmatmul.mubr.msk.f32.vlgmr.msra.gmra.mrb[56].mxu1 %vm298_vm1, %v18140_v46  ;;  %v16827_v4 = vsel %vm21709_vm3, %v21339_v41, %v16821_v55  ;;  %vm21718_vm9 = vmmov %vm21710_vm4 }
 0x523   : > { %18523 = vmatpush3.msra.mxu1 %v21197_v9  ;;  %18524 = vmatprep.mubr.msk.f32.mxu1 %vm18933_vm2, %v21335_v63  ;;  %vm21719_vm10 = vmmov %vm21716_vm7 }
 0x524   : > { %18141 = vmatmul.mubr.msk.f32.vlgmr.msra.gmra.mrb[4].mxu0 %vm298_vm1, %v18140_v46  ;;  %16587 = vmatprep.subr.mxu1 %v16503_v19  ;;  %vm21720_vm0 = vmmov %vm21716_vm7 }
 0x525   : > { %16337 = vmatpush1.msra.mxu0 %v16182_v54  ;;  %16400 = vmatprep.mubr.f32.mxu0 %v21335_v63  ;;  %v21385_v25 = vpop.permute.xlu0 %17132  ;;  %v21387_v60 = vpop.permute.xlu1 %17138  ;;  %vm21721_vm3 = vmmov %vm21720_vm0 }
 0x526   : > { %16516 = vmatprep.subr.mxu0 %v16501_v0  ;;  %18525 = vmatmul.mubr.msk.f32.vlgmr.msra.gmra.mrb[102].mxu1 %vm298_vm1, %v18140_v46  ;;  %v17147_v13 = vsel %vm21710_vm4, %v21364_v45, %v21387_v60  ;;  %vm21722_vm4 = vmmov %vm21720_vm0 }
 0x527   : > { %16588 = vmatpush1.msra.mxu1 %v16502_v33  ;;  %16651 = vmatprep.mubr.f32.mxu1 %v21335_v63 }
 0x528   : > { %18143 = vmatmul.mubr.msk.f32.vlgmr.msra.gmra.mrb[6].mxu0 %vm298_vm1, %v18140_v46  ;;  %18527 = vmatprep.subr.mxu1 %v21335_v63 }
 0x529   : > { %16517 = vmatpush1.msra.mxu0 %v16500_v42  ;;  %16580 = vmatprep.mubr.f32.mxu0 %v21335_v63 }
 0x52a   : > { %16658 = vmatprep.subr.mxu0 %v16505_v10  ;;  %18147 = vmatmul.mubr.msk.f32.vlgmr.msra.gmra.mrb[56].mxu1 %vm298_vm1, %v18145_v7  ;;  %v17131_v11 = vpop.permute.xlu0 %17130 }
 0x52b   : > { %18528 = vmatpush3.msra.mxu1 %v21265_v18  ;;  %18529 = vmatprep.mubr.msk.f32.mxu1 %vm18933_vm2, %v21335_v63  ;;  %v17135_v29 = vpop.permute.xlu1 %17134  ;;  %v17144_v58 = vsel %vm21714_vm13, %v17131_v11, %v21385_v25 }
 0x52c   : > { %18146 = vmatmul.mubr.msk.f32.vlgmr.msra.gmra.mrb[4].mxu0 %vm298_vm1, %v18145_v7  ;;  %16909 = vmatprep.subr.mxu1 %v16825_v50  ;;  %v17145_v20 = vsel %vm21712_vm15, %v21385_v25, %v17135_v29  ;;  %v17146_v21 = vsel %vm21713_vm5, %v17135_v29, %v21364_v45 }
 0x52d   : > { %16659 = vmatpush1.msra.mxu0 %v16504_v32  ;;  %16722 = vmatprep.mubr.f32.mxu0 %v21335_v63 }
 0x52e   : > { %16838 = vmatprep.subr.mxu0 %v16823_v17  ;;  %18530 = vmatmul.mubr.msk.f32.vlgmr.msra.gmra.mrb[104].mxu1 %vm298_vm1, %v18145_v7 }
 0x52f   : > { %16910 = vmatpush1.msra.mxu1 %v16824_v57  ;;  %16973 = vmatprep.mubr.f32.mxu1 %v21335_v63  ;;  %v17143_v16 = vpop.permute.xlu0 %17142  ;;  %v17141_v9 = vpop.permute.xlu1 %17140 }
 0x530   : > { %18148 = vmatmul.mubr.msk.f32.vlgmr.msra.gmra.mrb[6].mxu0 %vm298_vm1, %v18145_v7  ;;  %18532 = vmatprep.subr.mxu1 %v21335_v63  ;;  %v17149_v52 = vsel %vm21715_vm6, %v17141_v9, %v17143_v16  ;;  %v17148_v30 = vsel %vm21718_vm9, %v21387_v60, %v17141_v9 }
 0x531   : > { %16839 = vmatpush1.msra.mxu0 %v16822_v8  ;;  %16902 = vmatprep.mubr.f32.mxu0 %v21335_v63  ;;  %v9407_v40 = vpop.f32.mrb[58].mxu1 }
 0x532   : > { %16980 = vmatprep.subr.mxu0 %v16827_v4  ;;  %18152 = vmatmul.mubr.msk.f32.vlgmr.msra.gmra.mrb[56].mxu1 %vm298_vm1, %v18150_v48  ;;  %v18416_v6 = vpop.f32.mrb[59].mxu1 }
 0x533   : > { %18533 = vmatpush3.msra.mxu1 %v16821_v55  ;;  %18534 = vmatprep.mubr.msk.f32.mxu1 %vm18933_vm2, %v21335_v63 }
 0x534   : > { %18151 = vmatmul.mubr.msk.f32.vlgmr.msra.gmra.mrb[4].mxu0 %vm298_vm1, %v18150_v48  ;;  %17231 = vmatprep.subr.mxu1 %v17147_v13  ;;  %v17461_v37 = vpop.permute.xlu0 %17460 }
 0x535   : > { %16981 = vmatpush1.msra.mxu0 %v16826_v53  ;;  %17044 = vmatprep.mubr.f32.mxu0 %v21335_v63  ;;  %v17459_v23 = vpop.permute.xlu1 %17458 }
 0x536   : > { %17160 = vmatprep.subr.mxu0 %v17145_v20  ;;  %18535 = vmatmul.mubr.msk.f32.vlgmr.msra.gmra.mrb[106].mxu1 %vm298_vm1, %v18150_v48  ;;  %v17469_v1 = vsel %vm21716_vm7, %v17459_v23, %v17461_v37 }
 0x537   : > { %17232 = vmatpush1.msra.mxu1 %v17146_v21  ;;  %17295 = vmatprep.mubr.f32.mxu1 %v21335_v63 }
 0x538   : > { %18153 = vmatmul.mubr.msk.f32.vlgmr.msra.gmra.mrb[6].mxu0 %vm298_vm1, %v18150_v48  ;;  %18537 = vmatprep.subr.mxu1 %v21335_v63  ;;  %v17457_v36 = vpop.permute.xlu0 %17456 }
 0x539   : > { %17161 = vmatpush1.msra.mxu0 %v17144_v58  ;;  %17224 = vmatprep.mubr.f32.mxu0 %v21335_v63  ;;  %v17455_v12 = vpop.permute.xlu1 %17454  ;;  %v17468_v22 = vsel %vm21719_vm10, %v17457_v36, %v17459_v23 }
 0x53a   : > { %17302 = vmatprep.subr.mxu0 %v17149_v52  ;;  %18157 = vmatmul.mubr.msk.f32.vlgmr.msra.gmra.mrb[56].mxu1 %vm298_vm1, %v18155_v26  ;;  %v17467_v18 = vsel %vm21717_vm8, %v17455_v12, %v17457_v36 }
 0x53b   : > { %18538 = vmatpush3.msra.mxu1 %v17143_v16  ;;  %18539 = vmatprep.mubr.msk.f32.mxu1 %vm18933_vm2, %v21335_v63 }
 0x53c   : > { %18156 = vmatmul.mubr.msk.f32.vlgmr.msra.gmra.mrb[4].mxu0 %vm298_vm1, %v18155_v26  ;;  %17553 = vmatprep.subr.mxu1 %v17469_v1  ;;  %v9693_v59 = vpop.f32.mrb[60].mxu1  ;;  %v17463_v28 = vpop.permute.xlu0 %17462 }
 0x53d   : > { %17303 = vmatpush1.msra.mxu0 %v17148_v30  ;;  %17366 = vmatprep.mubr.f32.mxu0 %v21335_v63  ;;  %v17453_v34 = vpop.permute.xlu1 %17452  ;;  %v9694_v24 = vadd.f32 %v9693_v59, %v9407_v40  ;;  %v18421_v49 = vpop.f32.mrb[61].mxu1  ;;  %v17470_v62 = vsel %vm21722_vm4, %v17461_v37, %v17463_v28 }
 0x53e   : > { %17482 = vmatprep.subr.mxu0 %v17467_v18  ;;  %18540 = vmatmul.mubr.msk.f32.vlgmr.msra.gmra.mrb[108].mxu1 %vm298_vm1, %v18155_v26  ;;  %v17466_v38 = vsel %vm21720_vm0, %v17453_v34, %v17455_v12 }
 0x53f   : > { %17554 = vmatpush1.msra.mxu1 %v17468_v22  ;;  %17617 = vmatprep.mubr.f32.mxu1 %v21335_v63 }
 0x540   : > { %18158 = vmatmul.mubr.msk.f32.vlgmr.msra.gmra.mrb[6].mxu0 %vm298_vm1, %v18155_v26  ;;  %18542 = vmatprep.subr.mxu1 %v21335_v63 }
 0x541   : > { %17483 = vmatpush1.msra.mxu0 %v17466_v38  ;;  %17546 = vmatprep.mubr.f32.mxu0 %v21335_v63 }
 0x542   : > { %18162 = vmatmul.mubr.msk.f32.vlgmr.msra.gmra.mrb[56].mxu1 %vm298_vm1, %v18160_v39  ;;  %17775 = vperm.xlu0 %18898, %v17772_v61  }
 0x543   : > { %v17465_v47 = vpop.permute.xlu1 %17464  ;;  %18544 = vmatprep.mubr.msk.f32.mxu1 %vm18933_vm2, %v21335_v63 }
 0x544   : > { %18161 = vmatmul.mubr.msk.f32.vlgmr.msra.gmra.mrb[4].mxu0 %vm298_vm1, %v18160_v39  ;;  %v17471_v35 = vsel %vm21721_vm3, %v17463_v28, %v17465_v47  ;;  %18543 = vmatpush3.msra.mxu1 %v17465_v47 }
 0x545   : > { %17624 = vmatprep.subr.mxu0 %v17471_v35  ;;  %17688 = vmatprep.mubr.f32.mxu0 %v21335_v63 }
 0x546   : > { %17625 = vmatpush1.msra.mxu0 %v17470_v62  ;;  %18545 = vmatmul.mubr.msk.f32.vlgmr.msra.gmra.mrb[110].mxu1 %vm298_vm1, %v18160_v39  ;;  %v10008_v56 = vpop.f32.mrb[62].mxu1 }
 0x547   : > { %v10018_v31 = vadd.f32 %v10008_v56, %v9694_v24  ;;  %v18426_v44 = vpop.f32.mrb[63].mxu1 }
 0x548   : > { %18163 = vmatmul.mubr.msk.f32.vlgmr.msra.gmra.mrb[6].mxu0 %vm298_vm1, %v18160_v39  ;;  %vm21724_vm1 = vcmask 1048440  }
 0x54f   : > { %v10330_v43 = vpop.f32.mrb[64].mxu1 }
 0x550   : > { %v10340_v51 = vadd.f32 %v10330_v43, %v10018_v31  ;;  %v18431_v41 = vpop.f32.mrb[65].mxu1 }
 0x55a   : > { %v10652_v14 = vpop.f32.mrb[66].mxu1 }
 0x55b   : > { %v10662_v3 = vadd.f32 %v10652_v14, %v10340_v51  ;;  %v18436_v15 = vpop.f32.mrb[67].mxu1 }
 0x563   : > { %v10974_v2 = vpop.f32.mrb[68].mxu1 }
 0x564   : > { %v10984_v46 = vadd.f32 %v10974_v2, %v10662_v3  ;;  %v18441_v27 = vpop.f32.mrb[69].mxu1 }
 0x56e   : > { %v11296_v45 = vpop.f32.mrb[70].mxu1 }
 0x56f   : > { %v11306_v5 = vadd.f32 %v11296_v45, %v10984_v46  ;;  %v18446_v63 = vpop.f32.mrb[71].mxu1 }
 0x577   : > { %v11618_v55 = vpop.f32.mrb[72].mxu1 }
 0x578   : > { %v11628_v19 = vadd.f32 %v11618_v55, %v11306_v5  ;;  %v18451_v54 = vpop.f32.mrb[73].mxu1 }
 0x582   : > { %v11940_v0 = vpop.f32.mrb[74].mxu1 }
 0x583   : > { %v11950_v25 = vadd.f32 %v11940_v0, %v11628_v19  ;;  %v18456_v60 = vpop.f32.mrb[75].mxu1 }
 0x58c   : > { %v12262_v33 = vpop.f32.mrb[76].mxu1 }
 0x58d   : > { %v12272_v7 = vadd.f32 %v12262_v33, %v11950_v25  ;;  %v18461_v42 = vpop.f32.mrb[77].mxu1 }
 0x596   : > { %v12584_v10 = vpop.f32.mrb[78].mxu1 }
 0x597   : > { %v12594_v11 = vadd.f32 %v12584_v10, %v12272_v7  ;;  %v18466_v50 = vpop.f32.mrb[79].mxu1 }
 0x59f   : > { %v12906_v29 = vpop.f32.mrb[80].mxu1 }
 0x5a0   : > { %v12916_v32 = vadd.f32 %v12906_v29, %v12594_v11  ;;  %v18471_v17 = vpop.f32.mrb[81].mxu1 }
 0x5a8   : > { %v13228_v57 = vpop.f32.mrb[82].mxu1 }
 0x5a9   : > { %v13238_v48 = vadd.f32 %v13228_v57, %v12916_v32  ;;  %v18476_v16 = vpop.f32.mrb[83].mxu1 }
 0x5b0   : > { %v13550_v9 = vpop.f32.mrb[84].mxu1 }
 0x5b1   : > { %v13560_v8 = vadd.f32 %v13550_v9, %v13238_v48  ;;  %v18481_v4 = vpop.f32.mrb[85].mxu1 }
 0x5b8   : > { %v13872_v40 = vpop.f32.mrb[86].mxu1 }
 0x5b9   : > { %v13882_v6 = vadd.f32 %v13872_v40, %v13560_v8  ;;  %v18486_v13 = vpop.f32.mrb[87].mxu1 }
 0x5c1   : > { %v14213_v53 = vpop.f32.mrb[88].mxu1  ;;  %v17776_v15 = vpop.permute.xlu0 %17775 }
 0x5c2   : > { %v14223_v37 = vadd.f32 %v14213_v53, %v13882_v6  ;;  %v18491_v20 = vpop.f32.mrb[89].mxu1 }
 0x5c9   : > { %v14538_v23 = vpop.f32.mrb[90].mxu1 }
 0x5ca   : > { %v14548_v21 = vadd.f32 %v14538_v23, %v14223_v37  ;;  %v18496_v26 = vpop.f32.mrb[91].mxu1 }
 0x5d1   : > { %v14863_v58 = vpop.f32.mrb[92].mxu1 }
 0x5d2   : > { %v14873_v36 = vadd.f32 %v14863_v58, %v14548_v21  ;;  %v18501_v52 = vpop.f32.mrb[93].mxu1 }
 0x5d9   : > { %v15185_v12 = vpop.f32.mrb[94].mxu1 }
 0x5da   : > { %v15195_v1 = vadd.f32 %v15185_v12, %v14873_v36  ;;  %v18506_v18 = vpop.f32.mrb[95].mxu1 }
 0x5e1   : > { %v15507_v30 = vpop.f32.mrb[96].mxu1 }
 0x5e2   : > { %v15517_v22 = vadd.f32 %v15507_v30, %v15195_v1  ;;  %v18511_v59 = vpop.f32.mrb[97].mxu1 }
 0x5e9   : > { %v15829_v34 = vpop.f32.mrb[98].mxu1 }
 0x5ea   : > { %v15839_v24 = vadd.f32 %v15829_v34, %v15517_v22  ;;  %v18516_v49 = vpop.f32.mrb[99].mxu1 }
 0x5f1   : > { %v16151_v38 = vpop.f32.mrb[100].mxu1 }
 0x5f2   : > { %v16161_v39 = vadd.f32 %v16151_v38, %v15839_v24  ;;  %v18521_v61 = vpop.f32.mrb[101].mxu1 }
 0x5f9   : > { %v16473_v28 = vpop.f32.mrb[102].mxu1 }
 0x5fa   : > { %v16483_v47 = vadd.f32 %v16473_v28, %v16161_v39  ;;  %v18526_v35 = vpop.f32.mrb[103].mxu1 }
 0x601   : > { %v16795_v62 = vpop.f32.mrb[104].mxu1 }
 0x602   : > { %v16805_v56 = vadd.f32 %v16795_v62, %v16483_v47  ;;  %v18531_v31 = vpop.f32.mrb[105].mxu1 }
 0x609   : > { %v17117_v44 = vpop.f32.mrb[106].mxu1 }
 0x60a   : > { %v17127_v43 = vadd.f32 %v17117_v44, %v16805_v56  ;;  %v18536_v51 = vpop.f32.mrb[107].mxu1 }
 0x611   : > { %v17439_v41 = vpop.f32.mrb[108].mxu1 }
 0x612   : > { %v17449_v14 = vadd.f32 %v17439_v41, %v17127_v43  ;;  %v18541_v3 = vpop.f32.mrb[109].mxu1 }
 0x615   : > { %v17619_v2 = vpop.f32.mrb[56].mxu1 }
 0x616   : > { %v17780_v46 = vadd.f32 %v17776_v15, %v17619_v2  ;;  %v17621_v27 = vpop.f32.mrb[57].mxu1 }
 0x617   : > { %v17548_v45 = vpop.f32.mrb[4].mxu0  ;;  %v17781_v10 = vadd.f32 %v17776_v15, %v17621_v27 }
 0x618   : > { %v17787_v5 = vmax.f32 %v17780_v46, 0.0  ;;  %v17778_v63 = vadd.f32 %v17776_v15, %v17548_v45  ;;  %v17550_v55 = vpop.f32.mrb[5].mxu0 }
 0x619   : > { %v17761_v19 = vpop.f32.mrb[110].mxu1  ;;  %v17779_v0 = vadd.f32 %v17776_v15, %v17550_v55  ;;  %v17788_v32 = vmax.f32 %v17781_v10, 0.0 }
 0x61a   : > { %v17785_v54 = vmax.f32 %v17778_v63, 0.0  ;;  %v17771_v25 = vadd.f32 %v17761_v19, %v17449_v14  ;;  %17803 = vrot.lane.b32.xlu0 %v17787_v5, %s18951_s23  ;;  %v18546_v60 = vpop.f32.mrb[111].mxu1 }
 0x61b   : > { %v17690_v33 = vpop.f32.mrb[6].mxu0  ;;  %v17786_v11 = vmax.f32 %v17779_v0, 0.0 }
 0x61c   : > { %v17782_v7 = vadd.f32 %v17776_v15, %v17690_v33  ;;  %17799 = vrot.lane.b32.xlu1 %v17785_v54, %s18951_s23  ;;  %v17692_v42 = vpop.f32.mrb[7].mxu0  ;;  %v17784_v50 = vadd.f32 %v17776_v15, %v17771_v25 }
 0x61d   : > { %v17783_v57 = vadd.f32 %v17776_v15, %v17692_v42 }
 0x61e   : > { %v17789_v29 = vmax.f32 %v17782_v7, 0.0  ;;  %v17791_v17 = vmax.f32 %v17784_v50, 0.0 }
 0x61f   : > { %v17790_v48 = vmax.f32 %v17783_v57, 0.0 }
 0x620   : > { %17801 = vrot.lane.b32.xlu1 %v17786_v11, %s18951_s23  ;;  %17807 = vrot.lane.b32.xlu0 %v17789_v29, %s18951_s23 }
 0x624   : > { %17805 = vrot.lane.b32.xlu1 %v17788_v32, %s18951_s23  ;;  %17811 = vrot.lane.b32.xlu0 %v17791_v17, %s18951_s23 }
 0x628   : > { %17809 = vrot.lane.b32.xlu1 %v17790_v48, %s18951_s23 }
 0x68c   : > { %v17804_v16 = vpop.permute.xlu0 %17803 }
 0x68e   : > { %v17800_v9 = vpop.permute.xlu1 %17799 }
 0x68f   : > { %17826 = vst.msk [vmem:[%s251_s28] sm:$0xff] %vm21724_vm1, %v17800_v9 }
 0x692   : > { %v17802_v8 = vpop.permute.xlu1 %17801  ;;  %v17808_v6 = vpop.permute.xlu0 %17807 }
 0x693   : > { %v17813_v4 = vsel %vm9033_vm11, %v17800_v9, %v17802_v8  ;;  %v17814_v40 = vsel %vm9033_vm11, %v17802_v8, %v17804_v16 }
 0x694   : > { %17827 = vst [vmem:[%s251_s28 + $0x8] sm:$0xff] %v17813_v4  ;;  %17828 = vst [vmem:[%s251_s28 + $0x10] sm:$0xff] %v17814_v40 }
 0x696   : > { %v17806_v13 = vpop.permute.xlu1 %17805  ;;  %v17812_v20 = vpop.permute.xlu0 %17811 }
 0x697   : > { %v17815_v53 = vsel %vm9033_vm11, %v17804_v16, %v17806_v13  ;;  %v17816_v37 = vsel %vm9033_vm11, %v17806_v13, %v17808_v6 }
 0x698   : > { %17829 = vst [vmem:[%s251_s28 + $0x18] sm:$0xff] %v17815_v53  ;;  %17830 = vst [vmem:[%s251_s28 + $0x20] sm:$0xff] %v17816_v37 }
 0x69a   : > { %v17810_v23 = vpop.permute.xlu1 %17809 }
 0x69b   : > { %v17817_v21 = vsel %vm9033_vm11, %v17808_v6, %v17810_v23  ;;  %v17818_v26 = vsel %vm9033_vm11, %v17810_v23, %v17812_v20 }
 0x69c   : > { %17831 = vst [vmem:[%s251_s28 + $0x28] sm:$0xff] %v17817_v21  ;;  %17832 = vst.msk [vmem:[%s251_s28 + $0x30] sm:$0xff] %vm9079_vm12, %v17818_v26 }
 0x69d PF: > { %s16_s21 = sadd.s32 1, %s18920_s21  }
 0x69e   : > { %p13_p4 = scmp.ge.s32.totalorder %s16_s21, 4  }
 0x6a0   :  { %15 = sbr.rel (!%p13_p4) target bundleno = 1 (0x1), region = 126 }

</bundles_post_ra>
